<compile_context>
chip_gen: v5e
topology: v5e:2x2
jax: 0.10.0
libtpu: 0.0.40
codegen_flags: <defaults>
</compile_context>

<pallas_src>
import functools
import math

import jax
import jax.numpy as jnp
from jax.experimental import pallas as pl
from jax.experimental.pallas import tpu as pltpu

F32 = jnp.float32
BF16 = jnp.bfloat16

_PROJ_NAMES = ('K_e', 'V_e', 'Q_ev', 'Q_sv', 'K_s', 'V_s', 'Q_sh', 'Q_eh')

# Weight matrices that feed the MXU -> stored / DMA'd as bf16.
_BF16_WEIGHTS = frozenset(
    ['attn_wq', 'attn_wk', 'attn_wv', 'attn_wo',
     'linear_v_w', 'linear_h_w',
     'mlp_v_w1', 'mlp_v_w2', 'mlp_h_w1', 'mlp_h_w2']
    + [n + '_w' for n in _PROJ_NAMES]
    + [f'{g}_W_{t}' for g in ('gate1', 'gate2') for t in ('i', 'f', 'z')]
)


# ------------------------------ fused Pallas kernel ---------------------------------

def _fused_layer_kernel(*refs, pnames, head_num, head_dim):
    n_fix = 3
    x_ref, kc_ref, vc_ref = refs[:n_fix]
    n_in = n_fix + len(pnames)
    p = {name: ref[...] for name, ref in zip(pnames, refs[n_fix:n_in])}
    out_ref, nstate_ref, nkc_ref, nvc_ref = refs[n_in:]

    x = x_ref[0]                      # (L, d_in)       f32
    key_cache = kc_ref[0]             # (W, d_model)    f32
    value_cache = vc_ref[0]           # (W, d_model)    f32

    L = x.shape[0]
    dm = head_num * head_dim
    scale = 1.0 / math.sqrt(head_dim)

    # ---------- helpers (matmuls: bf16 operands, f32 accumulation) ----------
    def mm(a, w):
        return jnp.dot(a.astype(BF16), w.astype(BF16), preferred_element_type=F32)

    def linear(a, name):
        return mm(a, p[name + '_w']) + p[name + '_b']

    def ln(a, g):                                      # LayerNorm (beta == 0)
        mu = jnp.mean(a, axis=-1, keepdims=True)
        var = jnp.mean(jnp.square(a - mu), axis=-1, keepdims=True)
        return (a - mu) * jax.lax.rsqrt(var + 1e-5) * g

    rot_p = p['rot_p']                # (dm, dm) +-1 rotate-half permutation (precomputed)
    head_mask = p['head_mask']        # (head_num, dm) bf16 {0,1} lane masks (precomputed)

    def rope(a, cos, sin):
        # TODO(synk): utils.apply_rotary_pos_emb source not given; standard
        # rotate-half RoPE with an xpos-style scalar scale folded into cos/sin.
        a_rot = jnp.dot(a, rot_p, preferred_element_type=F32)
        return a * cos + a_rot * sin

    def attn_kv(k_in, v_in):
        # MultiHeadAttention K/V projections; done once per distinct K/V source.
        k = mm(k_in, p['attn_wk']) + p['attn_bk']
        v = mm(v_in, p['attn_wv']) + p['attn_bv']
        return k.astype(BF16), v.astype(BF16)

    def attn_core(q_in, k_bf, v_bf, bias):
        # Per-head block masking: every contraction stays at d_model granularity
        # (no head-split transposes / reshapes / lane slices).
        q_bf = (mm(q_in, p['attn_wq']) + p['attn_bq']).astype(BF16)
        ctx = jnp.zeros((q_in.shape[0], dm), F32)
        for h in range(head_num):
            hm = head_mask[h:h + 1]
            s = jax.lax.dot_general(q_bf * hm, k_bf * hm, (((1,), (1,)), ((), ())),
                                    preferred_element_type=F32) * scale
            if bias is not None:
                s = s + bias
            s = s - jnp.max(s, axis=-1, keepdims=True)
            e = jnp.exp(s)
            pa = e * pl.reciprocal(jnp.sum(e, axis=-1, keepdims=True), approx=True)
            # dropout = identity (eval semantics)
            ctx = ctx + jnp.dot(pa.astype(BF16), v_bf * hm,
                                preferred_element_type=F32)
        return mm(ctx, p['attn_wo']) + p['attn_bo']

    def ffn(a, pre):                                   # PoswiseFeedForwardNet
        h = jnp.maximum(mm(ln(a, p[pre + '_ln_g']), p[pre + '_w1']), 0.0)
        return mm(h, p[pre + '_w2'])

    def gate(h, c, pre):                               # LSTMGate
        ones = p[pre + '_ones']
        i_t = jax.nn.sigmoid(mm(h, p[pre + '_W_i']) + p[pre + '_b_i'] - ones)
        f_t = jax.nn.sigmoid(mm(h, p[pre + '_W_f']) + p[pre + '_b_f'] + ones)
        z_t = jnp.tanh(mm(h, p[pre + '_W_z']) + p[pre + '_b_z'])
        return f_t * c + i_t * z_t

    # ------------- shared projections (deduped across vertical / horizontal) -------------
    xin = ln(x, p['norm_g'])
    k_pre = linear(xin, 'K_e')          # pre-knorm keys (horizontal reuses these)
    v_new = linear(xin, 'V_e')

    state_c = p['state']                # (S, d_in) -- same initial state for every batch row
    pos = p['state_pos_ids']
    s_n = ln(state_c, p['state_norm_g'])
    sp = s_n + pos
    # K_s/V_s projections + the attention's own K/V projections, shared by the
    # vertical-cross and horizontal-self attentions.
    k_state_bf, v_state_bf = attn_kv(linear(sp, 'K_s'), linear(sp, 'V_s'))

    # ----------------------------------- vertical ----------------------------------------
    k_all = jnp.concatenate([key_cache, ln(k_pre, p['knorm_g'])], axis=0)   # (W+L, dm)
    v_all = jnp.concatenate([value_cache, v_new], axis=0)                   # (W+L, dm)
    nkc_ref[0] = k_all[L:]              # new caches = last W rows (post-knorm keys)
    nvc_ref[0] = v_all[L:]

    q_r = rope(ln(linear(xin, 'Q_ev'), p['qnorm_g']),
               p['rope_cos_q'], p['rope_sin_q'])
    k_r = rope(k_all, p['rope_cos_k'], p['rope_sin_k'])
    k_self_bf, v_self_bf = attn_kv(k_r, v_all)
    out_self = attn_core(q_r, k_self_bf, v_self_bf, p['attn_bias'])         # (L, dm)

    out_cross = attn_core(linear(xin, 'Q_sv'), k_state_bf, v_state_bf, None)  # (L, dm)

    # linear_v(concat([out_cross, out_self], -1)) in split-weight form (no lane concat)
    w_v = p['linear_v_w']
    output = mm(out_cross, w_v[:dm]) + mm(out_self, w_v[dm:]) + p['linear_v_b'] + xin
    output = ffn(output, 'mlp_v') + output
    out_ref[0] = output

    # ---------------------------------- horizontal ---------------------------------------
    k_x_bf, v_x_bf = attn_kv(k_pre, v_new)
    out_cr = attn_core(linear(state_c + pos, 'Q_eh'), k_x_bf, v_x_bf, None)    # (S, dm)
    out_s = attn_core(linear(sp, 'Q_sh'), k_state_bf, v_state_bf, None)        # (S, dm)

    # linear_h(concat([out_self, out_cross], -1)) in split-weight form
    w_h = p['linear_h_w']
    h_out = mm(out_s, w_h[:dm]) + mm(out_cr, w_h[dm:]) + p['linear_h_b']
    c1 = gate(h_out, state_c, 'gate1')
    nstate_ref[0] = gate(ffn(c1, 'mlp_h'), c1, 'gate2')


# --------------------------------- wrapper / glue ------------------------------------

def _flatten_params(params):
    flat = {}
    for k, v in params.items():
        if isinstance(v, dict):
            for kk, vv in v.items():
                flat[f'{k}_{kk}'] = vv
        else:
            flat[k] = v
    return flat


def _prep_params(flat):
    prepped = {}
    for k, v in flat.items():
        if k in _BF16_WEIGHTS:
            prepped[k] = v.astype(BF16)
        else:
            a = v.astype(F32)
            if a.ndim == 1:
                a = a.reshape(1, -1)
            prepped[k] = a
    return prepped


def block_recurrent_forward(params, x, rotary_freqs, *, xpos_scale,
                            head_num, head_dim, block_size, window_size, state_num,
                            key_cache=None, value_cache=None):
    B, L, d_in = x.shape
    d_model = head_num * head_dim
    W = window_size
    assert L == block_size  # module updates cache/state only when L == block_size

    # First-call caches (the module lazily initializes them to zeros); mutable module
    # state is returned as extra outputs instead of mutated in place.
    if key_cache is None:
        key_cache = jnp.zeros((B, W, d_model), F32)
    if value_cache is None:
        value_cache = jnp.zeros((B, W, d_model), F32)

    flat = _prep_params(_flatten_params(params))

    # -------- derived, grid-invariant tensors (computed once outside the kernel) --------
    freqs = rotary_freqs.astype(F32)                      # (W + L, d_model)
    xs = float(xpos_scale)
    flat['rope_cos_q'] = jnp.cos(freqs[W:]) * xs          # queries live at positions W..W+L-1
    flat['rope_sin_q'] = jnp.sin(freqs[W:]) * xs
    flat['rope_cos_k'] = jnp.cos(freqs) * (1.0 / xs)
    flat['rope_sin_k'] = jnp.sin(freqs) * (1.0 / xs)

    # TODO(synk): utils.sliding_window_mask source not given; standard causal sliding
    # window (query i at absolute position W+i sees keys i..i+W) as an additive bias.
    qi = jnp.arange(L, dtype=jnp.int32)[:, None]
    kj = jnp.arange(W + L, dtype=jnp.int32)[None, :]
    flat['attn_bias'] = jnp.where((kj >= qi) & (kj <= qi + W), 0.0, -1e9).astype(F32)

    # rotate-half as an exact +-1 permutation matmul (avoids lane concat / roll).
    half = d_model // 2
    r = jnp.arange(d_model)[:, None]
    c = jnp.arange(d_model)[None, :]
    flat['rot_p'] = (jnp.where(r == c + half, -1.0, 0.0)
                     + jnp.where(c == r + half, 1.0, 0.0)).astype(F32)

    # per-head {0,1} lane masks, bf16 so masking happens on the bf16 matmul operands.
    hh = jnp.arange(head_num)[:, None]
    dd = jnp.arange(d_model)[None, :]
    flat['head_mask'] = ((dd >= hh * head_dim) & (dd < (hh + 1) * head_dim)).astype(BF16)

    pnames = tuple(sorted(flat.keys()))
    pvals = [flat[n] for n in pnames]

    kern = functools.partial(_fused_layer_kernel, pnames=pnames,
                             head_num=head_num, head_dim=head_dim)

    def batch_spec(shape):
        nd = len(shape)
        return pl.BlockSpec((1,) + tuple(shape[1:]),
                            lambda b: (b,) + (0,) * (nd - 1))

    def shared_spec(shape):
        nd = len(shape)
        return pl.BlockSpec(tuple(shape), lambda b: (0,) * nd)

    in_specs = ([batch_spec(x.shape), batch_spec(key_cache.shape),
                 batch_spec(value_cache.shape)]
                + [shared_spec(v.shape) for v in pvals])

    out_shape = (jax.ShapeDtypeStruct((B, L, d_in), F32),
                 jax.ShapeDtypeStruct((B, state_num, d_in), F32),
                 jax.ShapeDtypeStruct((B, W, d_model), F32),
                 jax.ShapeDtypeStruct((B, W, d_model), F32))
    out_specs = (batch_spec((B, L, d_in)),
                 batch_spec((B, state_num, d_in)),
                 batch_spec((B, W, d_model)),
                 batch_spec((B, W, d_model)))

    return pl.pallas_call(
        kern,
        grid=(B,),
        in_specs=in_specs,
        out_specs=out_specs,
        out_shape=out_shape,
        compiler_params=pltpu.CompilerParams(
            dimension_semantics=("parallel",)),
    )(x.astype(F32), key_cache, value_cache, *pvals)


def build_rotary_freqs(max_len, dim):
    inv = 1.0 / (10000.0 ** (jnp.arange(0, dim, 2, dtype=F32) / dim))
    t = jnp.arange(max_len, dtype=F32)
    f = t[:, None] * inv[None, :]
    return jnp.concatenate([f, f], axis=-1)  # (max_len, dim)


# --------------------------------- parameter init ------------------------------------

def init_params(key, d_input, d_model, state_num):
    keys = iter(jax.random.split(key, 96))

    def xavier(shape):
        lim = math.sqrt(6.0 / (shape[0] + shape[-1]))
        return jax.random.uniform(next(keys), shape, F32, -lim, lim)

    def bias(shape):
        return jax.random.normal(next(keys), shape, F32) * 0.02

    p = {}
    p['norm_g'] = jnp.ones((d_input,), F32)
    p['state_norm_g'] = jnp.ones((d_input,), F32)
    p['qnorm_g'] = jnp.ones((d_model,), F32)
    p['knorm_g'] = jnp.ones((d_model,), F32)

    for name in ['attn_wq', 'attn_wk', 'attn_wv', 'attn_wo']:
        p[name] = xavier((d_model, d_model))
    for name in ['attn_bq', 'attn_bk', 'attn_bv', 'attn_bo']:
        p[name] = bias((d_model,))

    for name in _PROJ_NAMES:
        p[name + '_w'] = xavier((d_input, d_model))
        p[name + '_b'] = bias((d_model,))

    for name in ['linear_v', 'linear_h']:
        p[name + '_w'] = xavier((2 * d_model, d_input))
        p[name + '_b'] = bias((d_input,))

    for name in ['mlp_v', 'mlp_h']:
        p[name + '_ln_g'] = jnp.ones((d_input,), F32)
        p[name + '_w1'] = xavier((d_input, 2 * d_input))
        p[name + '_w2'] = xavier((2 * d_input, d_input))

    p['state'] = jax.random.normal(next(keys), (state_num, d_input), F32) * 0.1
    p['state_pos_ids'] = jax.random.normal(next(keys), (state_num, d_input), F32)

    for g in ['gate1', 'gate2']:
        gp = {}
        for w in ['W_i', 'W_f', 'W_z']:
            gp[w] = xavier((d_input, d_input))
        # NOTE: LSTMGate xavier-inits b_* and `ones` too (all >=2-D params).
        for b in ['b_i', 'b_f', 'b_z', 'ones']:
            gp[b] = xavier((state_num, d_input))
        p[g] = gp
    return p


# --------------------------------------- main ----------------------------------------

if __name__ == "__main__":
    D_INPUT = 32
    STATE_NUM = 8
    HEAD_NUM = 4
    HEAD_DIM = 8
    D_MODEL = HEAD_NUM * HEAD_DIM
    BLOCK_SIZE = 8
    WINDOW_SIZE = 8
    BATCH = 2
    XPOS_SCALE = 1.0

    key = jax.random.PRNGKey(0)
    pkey, xkey = jax.random.split(key)
    params = init_params(pkey, D_INPUT, D_MODEL, STATE_NUM)
    x = jax.random.normal(xkey, (BATCH, BLOCK_SIZE, D_INPUT), F32)
    rotary_freqs = build_rotary_freqs(BLOCK_SIZE + WINDOW_SIZE, D_MODEL)

    fwd = jax.jit(functools.partial(
        block_recurrent_forward,
        xpos_scale=XPOS_SCALE, head_num=HEAD_NUM, head_dim=HEAD_DIM,
        block_size=BLOCK_SIZE, window_size=WINDOW_SIZE, state_num=STATE_NUM))

    out, new_state, key_cache, value_cache = fwd(params, x, rotary_freqs)
    jax.block_until_ready((out, new_state, key_cache, value_cache))

    assert out.shape == (BATCH, BLOCK_SIZE, D_INPUT)
    assert new_state.shape == (BATCH, STATE_NUM, D_INPUT)
    assert key_cache.shape == (BATCH, WINDOW_SIZE, D_MODEL)
    assert value_cache.shape == (BATCH, WINDOW_SIZE, D_MODEL)
    assert bool(jnp.all(jnp.isfinite(out)))
    assert bool(jnp.all(jnp.isfinite(new_state)))
    print("KERNEL_OK")
</pallas_src>

<mosaic_0001>
module attributes {stable_mosaic.version = 11 : i64} {
  func.func @_fused_layer_kernel(%arg0: i32, %arg1: memref<1x8x32xf32, #tpu.memory_space<vmem>>, %arg2: memref<1x8x32xf32, #tpu.memory_space<vmem>>, %arg3: memref<1x8x32xf32, #tpu.memory_space<vmem>>, %arg4: memref<1x32xf32, #tpu.memory_space<vmem>>, %arg5: memref<32x32xbf16, #tpu.memory_space<vmem>>, %arg6: memref<1x32xf32, #tpu.memory_space<vmem>>, %arg7: memref<32x32xbf16, #tpu.memory_space<vmem>>, %arg8: memref<1x32xf32, #tpu.memory_space<vmem>>, %arg9: memref<32x32xbf16, #tpu.memory_space<vmem>>, %arg10: memref<1x32xf32, #tpu.memory_space<vmem>>, %arg11: memref<32x32xbf16, #tpu.memory_space<vmem>>, %arg12: memref<1x32xf32, #tpu.memory_space<vmem>>, %arg13: memref<32x32xbf16, #tpu.memory_space<vmem>>, %arg14: memref<1x32xf32, #tpu.memory_space<vmem>>, %arg15: memref<32x32xbf16, #tpu.memory_space<vmem>>, %arg16: memref<1x32xf32, #tpu.memory_space<vmem>>, %arg17: memref<32x32xbf16, #tpu.memory_space<vmem>>, %arg18: memref<1x32xf32, #tpu.memory_space<vmem>>, %arg19: memref<32x32xbf16, #tpu.memory_space<vmem>>, %arg20: memref<8x16xf32, #tpu.memory_space<vmem>>, %arg21: memref<1x32xf32, #tpu.memory_space<vmem>>, %arg22: memref<1x32xf32, #tpu.memory_space<vmem>>, %arg23: memref<1x32xf32, #tpu.memory_space<vmem>>, %arg24: memref<1x32xf32, #tpu.memory_space<vmem>>, %arg25: memref<32x32xbf16, #tpu.memory_space<vmem>>, %arg26: memref<32x32xbf16, #tpu.memory_space<vmem>>, %arg27: memref<32x32xbf16, #tpu.memory_space<vmem>>, %arg28: memref<32x32xbf16, #tpu.memory_space<vmem>>, %arg29: memref<32x32xbf16, #tpu.memory_space<vmem>>, %arg30: memref<32x32xbf16, #tpu.memory_space<vmem>>, %arg31: memref<32x32xbf16, #tpu.memory_space<vmem>>, %arg32: memref<8x32xf32, #tpu.memory_space<vmem>>, %arg33: memref<8x32xf32, #tpu.memory_space<vmem>>, %arg34: memref<8x32xf32, #tpu.memory_space<vmem>>, %arg35: memref<8x32xf32, #tpu.memory_space<vmem>>, %arg36: memref<32x32xbf16, #tpu.memory_space<vmem>>, %arg37: memref<32x32xbf16, #tpu.memory_space<vmem>>, %arg38: memref<32x32xbf16, #tpu.memory_space<vmem>>, %arg39: memref<8x32xf32, #tpu.memory_space<vmem>>, %arg40: memref<8x32xf32, #tpu.memory_space<vmem>>, %arg41: memref<8x32xf32, #tpu.memory_space<vmem>>, %arg42: memref<8x32xf32, #tpu.memory_space<vmem>>, %arg43: memref<4x32xbf16, #tpu.memory_space<vmem>>, %arg44: memref<1x32xf32, #tpu.memory_space<vmem>>, %arg45: memref<1x32xf32, #tpu.memory_space<vmem>>, %arg46: memref<64x32xbf16, #tpu.memory_space<vmem>>, %arg47: memref<1x32xf32, #tpu.memory_space<vmem>>, %arg48: memref<64x32xbf16, #tpu.memory_space<vmem>>, %arg49: memref<1x32xf32, #tpu.memory_space<vmem>>, %arg50: memref<32x64xbf16, #tpu.memory_space<vmem>>, %arg51: memref<64x32xbf16, #tpu.memory_space<vmem>>, %arg52: memref<1x32xf32, #tpu.memory_space<vmem>>, %arg53: memref<32x64xbf16, #tpu.memory_space<vmem>>, %arg54: memref<64x32xbf16, #tpu.memory_space<vmem>>, %arg55: memref<1x32xf32, #tpu.memory_space<vmem>>, %arg56: memref<1x32xf32, #tpu.memory_space<vmem>>, %arg57: memref<16x32xf32, #tpu.memory_space<vmem>>, %arg58: memref<8x32xf32, #tpu.memory_space<vmem>>, %arg59: memref<16x32xf32, #tpu.memory_space<vmem>>, %arg60: memref<8x32xf32, #tpu.memory_space<vmem>>, %arg61: memref<32x32xf32, #tpu.memory_space<vmem>>, %arg62: memref<8x32xf32, #tpu.memory_space<vmem>>, %arg63: memref<1x32xf32, #tpu.memory_space<vmem>>, %arg64: memref<8x32xf32, #tpu.memory_space<vmem>>, %arg65: memref<1x8x32xf32, #tpu.memory_space<vmem>>, %arg66: memref<1x8x32xf32, #tpu.memory_space<vmem>>, %arg67: memref<1x8x32xf32, #tpu.memory_space<vmem>>, %arg68: memref<1x8x32xf32, #tpu.memory_space<vmem>>) attributes {dimension_semantics = [#tpu.dimension_semantics<parallel>], iteration_bounds = array<i64: 2>, scalar_prefetch = 0 : i64, scratch_operands = 0 : i64, tpu.core_type = #tpu.core_type<tc>, window_params = [{transform_indices = @transform_0, window_bounds = array<i64: 1, 8, 32>}, {transform_indices = @transform_1, window_bounds = array<i64: 1, 8, 32>}, {transform_indices = @transform_2, window_bounds = array<i64: 1, 8, 32>}, {pipeline_mode = #tpu.pipeline_mode<synchronous>, transform_indices = @transform_3, window_bounds = array<i64: 1, 32>}, {pipeline_mode = #tpu.pipeline_mode<synchronous>, transform_indices = @transform_4, window_bounds = array<i64: 32, 32>}, {pipeline_mode = #tpu.pipeline_mode<synchronous>, transform_indices = @transform_5, window_bounds = array<i64: 1, 32>}, {pipeline_mode = #tpu.pipeline_mode<synchronous>, transform_indices = @transform_6, window_bounds = array<i64: 32, 32>}, {pipeline_mode = #tpu.pipeline_mode<synchronous>, transform_indices = @transform_7, window_bounds = array<i64: 1, 32>}, {pipeline_mode = #tpu.pipeline_mode<synchronous>, transform_indices = @transform_8, window_bounds = array<i64: 32, 32>}, {pipeline_mode = #tpu.pipeline_mode<synchronous>, transform_indices = @transform_9, window_bounds = array<i64: 1, 32>}, {pipeline_mode = #tpu.pipeline_mode<synchronous>, transform_indices = @transform_10, window_bounds = array<i64: 32, 32>}, {pipeline_mode = #tpu.pipeline_mode<synchronous>, transform_indices = @transform_11, window_bounds = array<i64: 1, 32>}, {pipeline_mode = #tpu.pipeline_mode<synchronous>, transform_indices = @transform_12, window_bounds = array<i64: 32, 32>}, {pipeline_mode = #tpu.pipeline_mode<synchronous>, transform_indices = @transform_13, window_bounds = array<i64: 1, 32>}, {pipeline_mode = #tpu.pipeline_mode<synchronous>, transform_indices = @transform_14, window_bounds = array<i64: 32, 32>}, {pipeline_mode = #tpu.pipeline_mode<synchronous>, transform_indices = @transform_15, window_bounds = array<i64: 1, 32>}, {pipeline_mode = #tpu.pipeline_mode<synchronous>, transform_indices = @transform_16, window_bounds = array<i64: 32, 32>}, {pipeline_mode = #tpu.pipeline_mode<synchronous>, transform_indices = @transform_17, window_bounds = array<i64: 1, 32>}, {pipeline_mode = #tpu.pipeline_mode<synchronous>, transform_indices = @transform_18, window_bounds = array<i64: 32, 32>}, {pipeline_mode = #tpu.pipeline_mode<synchronous>, transform_indices = @transform_19, window_bounds = array<i64: 8, 16>}, {pipeline_mode = #tpu.pipeline_mode<synchronous>, transform_indices = @transform_20, window_bounds = array<i64: 1, 32>}, {pipeline_mode = #tpu.pipeline_mode<synchronous>, transform_indices = @transform_21, window_bounds = array<i64: 1, 32>}, {pipeline_mode = #tpu.pipeline_mode<synchronous>, transform_indices = @transform_22, window_bounds = array<i64: 1, 32>}, {pipeline_mode = #tpu.pipeline_mode<synchronous>, transform_indices = @transform_23, window_bounds = array<i64: 1, 32>}, {pipeline_mode = #tpu.pipeline_mode<synchronous>, transform_indices = @transform_24, window_bounds = array<i64: 32, 32>}, {pipeline_mode = #tpu.pipeline_mode<synchronous>, transform_indices = @transform_25, window_bounds = array<i64: 32, 32>}, {pipeline_mode = #tpu.pipeline_mode<synchronous>, transform_indices = @transform_26, window_bounds = array<i64: 32, 32>}, {pipeline_mode = #tpu.pipeline_mode<synchronous>, transform_indices = @transform_27, window_bounds = array<i64: 32, 32>}, {pipeline_mode = #tpu.pipeline_mode<synchronous>, transform_indices = @transform_28, window_bounds = array<i64: 32, 32>}, {pipeline_mode = #tpu.pipeline_mode<synchronous>, transform_indices = @transform_29, window_bounds = array<i64: 32, 32>}, {pipeline_mode = #tpu.pipeline_mode<synchronous>, transform_indices = @transform_30, window_bounds = array<i64: 32, 32>}, {pipeline_mode = #tpu.pipeline_mode<synchronous>, transform_indices = @transform_31, window_bounds = array<i64: 8, 32>}, {pipeline_mode = #tpu.pipeline_mode<synchronous>, transform_indices = @transform_32, window_bounds = array<i64: 8, 32>}, {pipeline_mode = #tpu.pipeline_mode<synchronous>, transform_indices = @transform_33, window_bounds = array<i64: 8, 32>}, {pipeline_mode = #tpu.pipeline_mode<synchronous>, transform_indices = @transform_34, window_bounds = array<i64: 8, 32>}, {pipeline_mode = #tpu.pipeline_mode<synchronous>, transform_indices = @transform_35, window_bounds = array<i64: 32, 32>}, {pipeline_mode = #tpu.pipeline_mode<synchronous>, transform_indices = @transform_36, window_bounds = array<i64: 32, 32>}, {pipeline_mode = #tpu.pipeline_mode<synchronous>, transform_indices = @transform_37, window_bounds = array<i64: 32, 32>}, {pipeline_mode = #tpu.pipeline_mode<synchronous>, transform_indices = @transform_38, window_bounds = array<i64: 8, 32>}, {pipeline_mode = #tpu.pipeline_mode<synchronous>, transform_indices = @transform_39, window_bounds = array<i64: 8, 32>}, {pipeline_mode = #tpu.pipeline_mode<synchronous>, transform_indices = @transform_40, window_bounds = array<i64: 8, 32>}, {pipeline_mode = #tpu.pipeline_mode<synchronous>, transform_indices = @transform_41, window_bounds = array<i64: 8, 32>}, {pipeline_mode = #tpu.pipeline_mode<synchronous>, transform_indices = @transform_42, window_bounds = array<i64: 4, 32>}, {pipeline_mode = #tpu.pipeline_mode<synchronous>, transform_indices = @transform_43, window_bounds = array<i64: 1, 32>}, {pipeline_mode = #tpu.pipeline_mode<synchronous>, transform_indices = @transform_44, window_bounds = array<i64: 1, 32>}, {pipeline_mode = #tpu.pipeline_mode<synchronous>, transform_indices = @transform_45, window_bounds = array<i64: 64, 32>}, {pipeline_mode = #tpu.pipeline_mode<synchronous>, transform_indices = @transform_46, window_bounds = array<i64: 1, 32>}, {pipeline_mode = #tpu.pipeline_mode<synchronous>, transform_indices = @transform_47, window_bounds = array<i64: 64, 32>}, {pipeline_mode = #tpu.pipeline_mode<synchronous>, transform_indices = @transform_48, window_bounds = array<i64: 1, 32>}, {pipeline_mode = #tpu.pipeline_mode<synchronous>, transform_indices = @transform_49, window_bounds = array<i64: 32, 64>}, {pipeline_mode = #tpu.pipeline_mode<synchronous>, transform_indices = @transform_50, window_bounds = array<i64: 64, 32>}, {pipeline_mode = #tpu.pipeline_mode<synchronous>, transform_indices = @transform_51, window_bounds = array<i64: 1, 32>}, {pipeline_mode = #tpu.pipeline_mode<synchronous>, transform_indices = @transform_52, window_bounds = array<i64: 32, 64>}, {pipeline_mode = #tpu.pipeline_mode<synchronous>, transform_indices = @transform_53, window_bounds = array<i64: 64, 32>}, {pipeline_mode = #tpu.pipeline_mode<synchronous>, transform_indices = @transform_54, window_bounds = array<i64: 1, 32>}, {pipeline_mode = #tpu.pipeline_mode<synchronous>, transform_indices = @transform_55, window_bounds = array<i64: 1, 32>}, {pipeline_mode = #tpu.pipeline_mode<synchronous>, transform_indices = @transform_56, window_bounds = array<i64: 16, 32>}, {pipeline_mode = #tpu.pipeline_mode<synchronous>, transform_indices = @transform_57, window_bounds = array<i64: 8, 32>}, {pipeline_mode = #tpu.pipeline_mode<synchronous>, transform_indices = @transform_58, window_bounds = array<i64: 16, 32>}, {pipeline_mode = #tpu.pipeline_mode<synchronous>, transform_indices = @transform_59, window_bounds = array<i64: 8, 32>}, {pipeline_mode = #tpu.pipeline_mode<synchronous>, transform_indices = @transform_60, window_bounds = array<i64: 32, 32>}, {pipeline_mode = #tpu.pipeline_mode<synchronous>, transform_indices = @transform_61, window_bounds = array<i64: 8, 32>}, {pipeline_mode = #tpu.pipeline_mode<synchronous>, transform_indices = @transform_62, window_bounds = array<i64: 1, 32>}, {pipeline_mode = #tpu.pipeline_mode<synchronous>, transform_indices = @transform_63, window_bounds = array<i64: 8, 32>}, {transform_indices = @transform_64, window_bounds = array<i64: 1, 8, 32>}, {transform_indices = @transform_65, window_bounds = array<i64: 1, 8, 32>}, {transform_indices = @transform_66, window_bounds = array<i64: 1, 8, 32>}, {transform_indices = @transform_67, window_bounds = array<i64: 1, 8, 32>}]} {
    %c0 = arith.constant 0 : index
    %c0_0 = arith.constant 0 : index
    %0 = vector.load %arg4[%c0, %c0_0] : memref<1x32xf32, #tpu.memory_space<vmem>>, vector<1x32xf32>
    %c0_1 = arith.constant 0 : index
    %c0_2 = arith.constant 0 : index
    %1 = vector.load %arg5[%c0_1, %c0_2] : memref<32x32xbf16, #tpu.memory_space<vmem>>, vector<32x32xbf16>
    %c0_3 = arith.constant 0 : index
    %c0_4 = arith.constant 0 : index
    %2 = vector.load %arg6[%c0_3, %c0_4] : memref<1x32xf32, #tpu.memory_space<vmem>>, vector<1x32xf32>
    %c0_5 = arith.constant 0 : index
    %c0_6 = arith.constant 0 : index
    %3 = vector.load %arg7[%c0_5, %c0_6] : memref<32x32xbf16, #tpu.memory_space<vmem>>, vector<32x32xbf16>
    %c0_7 = arith.constant 0 : index
    %c0_8 = arith.constant 0 : index
    %4 = vector.load %arg8[%c0_7, %c0_8] : memref<1x32xf32, #tpu.memory_space<vmem>>, vector<1x32xf32>
    %c0_9 = arith.constant 0 : index
    %c0_10 = arith.constant 0 : index
    %5 = vector.load %arg9[%c0_9, %c0_10] : memref<32x32xbf16, #tpu.memory_space<vmem>>, vector<32x32xbf16>
    %c0_11 = arith.constant 0 : index
    %c0_12 = arith.constant 0 : index
    %6 = vector.load %arg10[%c0_11, %c0_12] : memref<1x32xf32, #tpu.memory_space<vmem>>, vector<1x32xf32>
    %c0_13 = arith.constant 0 : index
    %c0_14 = arith.constant 0 : index
    %7 = vector.load %arg11[%c0_13, %c0_14] : memref<32x32xbf16, #tpu.memory_space<vmem>>, vector<32x32xbf16>
    %c0_15 = arith.constant 0 : index
    %c0_16 = arith.constant 0 : index
    %8 = vector.load %arg12[%c0_15, %c0_16] : memref<1x32xf32, #tpu.memory_space<vmem>>, vector<1x32xf32>
    %c0_17 = arith.constant 0 : index
    %c0_18 = arith.constant 0 : index
    %9 = vector.load %arg13[%c0_17, %c0_18] : memref<32x32xbf16, #tpu.memory_space<vmem>>, vector<32x32xbf16>
    %c0_19 = arith.constant 0 : index
    %c0_20 = arith.constant 0 : index
    %10 = vector.load %arg14[%c0_19, %c0_20] : memref<1x32xf32, #tpu.memory_space<vmem>>, vector<1x32xf32>
    %c0_21 = arith.constant 0 : index
    %c0_22 = arith.constant 0 : index
    %11 = vector.load %arg15[%c0_21, %c0_22] : memref<32x32xbf16, #tpu.memory_space<vmem>>, vector<32x32xbf16>
    %c0_23 = arith.constant 0 : index
    %c0_24 = arith.constant 0 : index
    %12 = vector.load %arg16[%c0_23, %c0_24] : memref<1x32xf32, #tpu.memory_space<vmem>>, vector<1x32xf32>
    %c0_25 = arith.constant 0 : index
    %c0_26 = arith.constant 0 : index
    %13 = vector.load %arg17[%c0_25, %c0_26] : memref<32x32xbf16, #tpu.memory_space<vmem>>, vector<32x32xbf16>
    %c0_27 = arith.constant 0 : index
    %c0_28 = arith.constant 0 : index
    %14 = vector.load %arg18[%c0_27, %c0_28] : memref<1x32xf32, #tpu.memory_space<vmem>>, vector<1x32xf32>
    %c0_29 = arith.constant 0 : index
    %c0_30 = arith.constant 0 : index
    %15 = vector.load %arg19[%c0_29, %c0_30] : memref<32x32xbf16, #tpu.memory_space<vmem>>, vector<32x32xbf16>
    %c0_31 = arith.constant 0 : index
    %c0_32 = arith.constant 0 : index
    %16 = vector.load %arg20[%c0_31, %c0_32] : memref<8x16xf32, #tpu.memory_space<vmem>>, vector<8x16xf32>
    %c0_33 = arith.constant 0 : index
    %c0_34 = arith.constant 0 : index
    %17 = vector.load %arg21[%c0_33, %c0_34] : memref<1x32xf32, #tpu.memory_space<vmem>>, vector<1x32xf32>
    %c0_35 = arith.constant 0 : index
    %c0_36 = arith.constant 0 : index
    %18 = vector.load %arg22[%c0_35, %c0_36] : memref<1x32xf32, #tpu.memory_space<vmem>>, vector<1x32xf32>
    %c0_37 = arith.constant 0 : index
    %c0_38 = arith.constant 0 : index
    %19 = vector.load %arg23[%c0_37, %c0_38] : memref<1x32xf32, #tpu.memory_space<vmem>>, vector<1x32xf32>
    %c0_39 = arith.constant 0 : index
    %c0_40 = arith.constant 0 : index
    %20 = vector.load %arg24[%c0_39, %c0_40] : memref<1x32xf32, #tpu.memory_space<vmem>>, vector<1x32xf32>
    %c0_41 = arith.constant 0 : index
    %c0_42 = arith.constant 0 : index
    %21 = vector.load %arg25[%c0_41, %c0_42] : memref<32x32xbf16, #tpu.memory_space<vmem>>, vector<32x32xbf16>
    %c0_43 = arith.constant 0 : index
    %c0_44 = arith.constant 0 : index
    %22 = vector.load %arg26[%c0_43, %c0_44] : memref<32x32xbf16, #tpu.memory_space<vmem>>, vector<32x32xbf16>
    %c0_45 = arith.constant 0 : index
    %c0_46 = arith.constant 0 : index
    %23 = vector.load %arg27[%c0_45, %c0_46] : memref<32x32xbf16, #tpu.memory_space<vmem>>, vector<32x32xbf16>
    %c0_47 = arith.constant 0 : index
    %c0_48 = arith.constant 0 : index
    %24 = vector.load %arg28[%c0_47, %c0_48] : memref<32x32xbf16, #tpu.memory_space<vmem>>, vector<32x32xbf16>
    %c0_49 = arith.constant 0 : index
    %c0_50 = arith.constant 0 : index
    %25 = vector.load %arg29[%c0_49, %c0_50] : memref<32x32xbf16, #tpu.memory_space<vmem>>, vector<32x32xbf16>
    %c0_51 = arith.constant 0 : index
    %c0_52 = arith.constant 0 : index
    %26 = vector.load %arg30[%c0_51, %c0_52] : memref<32x32xbf16, #tpu.memory_space<vmem>>, vector<32x32xbf16>
    %c0_53 = arith.constant 0 : index
    %c0_54 = arith.constant 0 : index
    %27 = vector.load %arg31[%c0_53, %c0_54] : memref<32x32xbf16, #tpu.memory_space<vmem>>, vector<32x32xbf16>
    %c0_55 = arith.constant 0 : index
    %c0_56 = arith.constant 0 : index
    %28 = vector.load %arg32[%c0_55, %c0_56] : memref<8x32xf32, #tpu.memory_space<vmem>>, vector<8x32xf32>
    %c0_57 = arith.constant 0 : index
    %c0_58 = arith.constant 0 : index
    %29 = vector.load %arg33[%c0_57, %c0_58] : memref<8x32xf32, #tpu.memory_space<vmem>>, vector<8x32xf32>
    %c0_59 = arith.constant 0 : index
    %c0_60 = arith.constant 0 : index
    %30 = vector.load %arg34[%c0_59, %c0_60] : memref<8x32xf32, #tpu.memory_space<vmem>>, vector<8x32xf32>
    %c0_61 = arith.constant 0 : index
    %c0_62 = arith.constant 0 : index
    %31 = vector.load %arg35[%c0_61, %c0_62] : memref<8x32xf32, #tpu.memory_space<vmem>>, vector<8x32xf32>
    %c0_63 = arith.constant 0 : index
    %c0_64 = arith.constant 0 : index
    %32 = vector.load %arg36[%c0_63, %c0_64] : memref<32x32xbf16, #tpu.memory_space<vmem>>, vector<32x32xbf16>
    %c0_65 = arith.constant 0 : index
    %c0_66 = arith.constant 0 : index
    %33 = vector.load %arg37[%c0_65, %c0_66] : memref<32x32xbf16, #tpu.memory_space<vmem>>, vector<32x32xbf16>
    %c0_67 = arith.constant 0 : index
    %c0_68 = arith.constant 0 : index
    %34 = vector.load %arg38[%c0_67, %c0_68] : memref<32x32xbf16, #tpu.memory_space<vmem>>, vector<32x32xbf16>
    %c0_69 = arith.constant 0 : index
    %c0_70 = arith.constant 0 : index
    %35 = vector.load %arg39[%c0_69, %c0_70] : memref<8x32xf32, #tpu.memory_space<vmem>>, vector<8x32xf32>
    %c0_71 = arith.constant 0 : index
    %c0_72 = arith.constant 0 : index
    %36 = vector.load %arg40[%c0_71, %c0_72] : memref<8x32xf32, #tpu.memory_space<vmem>>, vector<8x32xf32>
    %c0_73 = arith.constant 0 : index
    %c0_74 = arith.constant 0 : index
    %37 = vector.load %arg41[%c0_73, %c0_74] : memref<8x32xf32, #tpu.memory_space<vmem>>, vector<8x32xf32>
    %c0_75 = arith.constant 0 : index
    %c0_76 = arith.constant 0 : index
    %38 = vector.load %arg42[%c0_75, %c0_76] : memref<8x32xf32, #tpu.memory_space<vmem>>, vector<8x32xf32>
    %c0_77 = arith.constant 0 : index
    %c0_78 = arith.constant 0 : index
    %39 = vector.load %arg43[%c0_77, %c0_78] : memref<4x32xbf16, #tpu.memory_space<vmem>>, vector<4x32xbf16>
    %c0_79 = arith.constant 0 : index
    %c0_80 = arith.constant 0 : index
    %40 = vector.load %arg44[%c0_79, %c0_80] : memref<1x32xf32, #tpu.memory_space<vmem>>, vector<1x32xf32>
    %c0_81 = arith.constant 0 : index
    %c0_82 = arith.constant 0 : index
    %41 = vector.load %arg45[%c0_81, %c0_82] : memref<1x32xf32, #tpu.memory_space<vmem>>, vector<1x32xf32>
    %c0_83 = arith.constant 0 : index
    %c0_84 = arith.constant 0 : index
    %42 = vector.load %arg46[%c0_83, %c0_84] : memref<64x32xbf16, #tpu.memory_space<vmem>>, vector<64x32xbf16>
    %c0_85 = arith.constant 0 : index
    %c0_86 = arith.constant 0 : index
    %43 = vector.load %arg47[%c0_85, %c0_86] : memref<1x32xf32, #tpu.memory_space<vmem>>, vector<1x32xf32>
    %c0_87 = arith.constant 0 : index
    %c0_88 = arith.constant 0 : index
    %44 = vector.load %arg48[%c0_87, %c0_88] : memref<64x32xbf16, #tpu.memory_space<vmem>>, vector<64x32xbf16>
    %c0_89 = arith.constant 0 : index
    %c0_90 = arith.constant 0 : index
    %45 = vector.load %arg49[%c0_89, %c0_90] : memref<1x32xf32, #tpu.memory_space<vmem>>, vector<1x32xf32>
    %c0_91 = arith.constant 0 : index
    %c0_92 = arith.constant 0 : index
    %46 = vector.load %arg50[%c0_91, %c0_92] : memref<32x64xbf16, #tpu.memory_space<vmem>>, vector<32x64xbf16>
    %c0_93 = arith.constant 0 : index
    %c0_94 = arith.constant 0 : index
    %47 = vector.load %arg51[%c0_93, %c0_94] : memref<64x32xbf16, #tpu.memory_space<vmem>>, vector<64x32xbf16>
    %c0_95 = arith.constant 0 : index
    %c0_96 = arith.constant 0 : index
    %48 = vector.load %arg52[%c0_95, %c0_96] : memref<1x32xf32, #tpu.memory_space<vmem>>, vector<1x32xf32>
    %c0_97 = arith.constant 0 : index
    %c0_98 = arith.constant 0 : index
    %49 = vector.load %arg53[%c0_97, %c0_98] : memref<32x64xbf16, #tpu.memory_space<vmem>>, vector<32x64xbf16>
    %c0_99 = arith.constant 0 : index
    %c0_100 = arith.constant 0 : index
    %50 = vector.load %arg54[%c0_99, %c0_100] : memref<64x32xbf16, #tpu.memory_space<vmem>>, vector<64x32xbf16>
    %c0_101 = arith.constant 0 : index
    %c0_102 = arith.constant 0 : index
    %51 = vector.load %arg55[%c0_101, %c0_102] : memref<1x32xf32, #tpu.memory_space<vmem>>, vector<1x32xf32>
    %c0_103 = arith.constant 0 : index
    %c0_104 = arith.constant 0 : index
    %52 = vector.load %arg56[%c0_103, %c0_104] : memref<1x32xf32, #tpu.memory_space<vmem>>, vector<1x32xf32>
    %c0_105 = arith.constant 0 : index
    %c0_106 = arith.constant 0 : index
    %53 = vector.load %arg57[%c0_105, %c0_106] : memref<16x32xf32, #tpu.memory_space<vmem>>, vector<16x32xf32>
    %c0_107 = arith.constant 0 : index
    %c0_108 = arith.constant 0 : index
    %54 = vector.load %arg58[%c0_107, %c0_108] : memref<8x32xf32, #tpu.memory_space<vmem>>, vector<8x32xf32>
    %c0_109 = arith.constant 0 : index
    %c0_110 = arith.constant 0 : index
    %55 = vector.load %arg59[%c0_109, %c0_110] : memref<16x32xf32, #tpu.memory_space<vmem>>, vector<16x32xf32>
    %c0_111 = arith.constant 0 : index
    %c0_112 = arith.constant 0 : index
    %56 = vector.load %arg60[%c0_111, %c0_112] : memref<8x32xf32, #tpu.memory_space<vmem>>, vector<8x32xf32>
    %c0_113 = arith.constant 0 : index
    %c0_114 = arith.constant 0 : index
    %57 = vector.load %arg61[%c0_113, %c0_114] : memref<32x32xf32, #tpu.memory_space<vmem>>, vector<32x32xf32>
    %c0_115 = arith.constant 0 : index
    %c0_116 = arith.constant 0 : index
    %58 = vector.load %arg62[%c0_115, %c0_116] : memref<8x32xf32, #tpu.memory_space<vmem>>, vector<8x32xf32>
    %c0_117 = arith.constant 0 : index
    %c0_118 = arith.constant 0 : index
    %59 = vector.load %arg63[%c0_117, %c0_118] : memref<1x32xf32, #tpu.memory_space<vmem>>, vector<1x32xf32>
    %c0_119 = arith.constant 0 : index
    %c0_120 = arith.constant 0 : index
    %60 = vector.load %arg64[%c0_119, %c0_120] : memref<8x32xf32, #tpu.memory_space<vmem>>, vector<8x32xf32>
    %c0_121 = arith.constant 0 : index
    %c0_122 = arith.constant 0 : index
    %c0_123 = arith.constant 0 : index
    %61 = vector.load %arg1[%c0_121, %c0_122, %c0_123] : memref<1x8x32xf32, #tpu.memory_space<vmem>>, vector<1x8x32xf32>
    %62 = vector.shape_cast %61 : vector<1x8x32xf32> to vector<8x32xf32>
    %c0_124 = arith.constant 0 : index
    %c0_125 = arith.constant 0 : index
    %c0_126 = arith.constant 0 : index
    %63 = vector.load %arg2[%c0_124, %c0_125, %c0_126] : memref<1x8x32xf32, #tpu.memory_space<vmem>>, vector<1x8x32xf32>
    %64 = vector.shape_cast %63 : vector<1x8x32xf32> to vector<8x32xf32>
    %c0_127 = arith.constant 0 : index
    %c0_128 = arith.constant 0 : index
    %c0_129 = arith.constant 0 : index
    %65 = vector.load %arg3[%c0_127, %c0_128, %c0_129] : memref<1x8x32xf32, #tpu.memory_space<vmem>>, vector<1x8x32xf32>
    %66 = vector.shape_cast %65 : vector<1x8x32xf32> to vector<8x32xf32>
    %cst = arith.constant dense<0.000000e+00> : vector<8xf32>
    %67 = vector.multi_reduction <add>, %62, %cst [1] : vector<8x32xf32> to vector<8xf32>
    %68 = vector.shape_cast %67 : vector<8xf32> to vector<8x1xf32>
    %cst_130 = arith.constant 3.200000e+01 : f32
    %69 = vector.broadcast %cst_130 : f32 to vector<8x1xf32>
    %70 = arith.divf %68, %69 : vector<8x1xf32>
    %71 = vector.broadcast %70 : vector<8x1xf32> to vector<8x32xf32>
    %72 = arith.subf %62, %71 : vector<8x32xf32>
    %73 = arith.mulf %72, %72 : vector<8x32xf32>
    %cst_131 = arith.constant dense<0.000000e+00> : vector<8xf32>
    %74 = vector.multi_reduction <add>, %73, %cst_131 [1] : vector<8x32xf32> to vector<8xf32>
    %75 = vector.shape_cast %74 : vector<8xf32> to vector<8x1xf32>
    %cst_132 = arith.constant 3.200000e+01 : f32
    %76 = vector.broadcast %cst_132 : f32 to vector<8x1xf32>
    %77 = arith.divf %75, %76 : vector<8x1xf32>
    %78 = vector.broadcast %70 : vector<8x1xf32> to vector<8x32xf32>
    %79 = arith.subf %62, %78 : vector<8x32xf32>
    %cst_133 = arith.constant 9.99999974E-6 : f32
    %80 = vector.broadcast %cst_133 : f32 to vector<8x1xf32>
    %81 = arith.addf %77, %80 : vector<8x1xf32>
    %82 = math.rsqrt %81 : vector<8x1xf32>
    %83 = vector.broadcast %82 : vector<8x1xf32> to vector<8x32xf32>
    %84 = arith.mulf %79, %83 : vector<8x32xf32>
    %85 = vector.broadcast %51 : vector<1x32xf32> to vector<8x32xf32>
    %86 = arith.mulf %84, %85 : vector<8x32xf32>
    %87 = arith.truncf %86 : vector<8x32xf32> to vector<8x32xbf16>
    %cst_134 = arith.constant dense<0.000000e+00> : vector<8x32xf32>
    %88 = tpu.matmul %87, %1, %cst_134 {dimension_numbers = #tpu.dot_dimension_numbers<[1], [0], [0], [1], [0, 0, 1, 1], [], []>} : vector<8x32xbf16>, vector<32x32xbf16>, vector<8x32xf32> -> vector<8x32xf32>
    %89 = vector.broadcast %0 : vector<1x32xf32> to vector<8x32xf32>
    %90 = arith.addf %88, %89 : vector<8x32xf32>
    %91 = arith.truncf %86 : vector<8x32xf32> to vector<8x32xbf16>
    %cst_135 = arith.constant dense<0.000000e+00> : vector<8x32xf32>
    %92 = tpu.matmul %91, %13, %cst_135 {dimension_numbers = #tpu.dot_dimension_numbers<[1], [0], [0], [1], [0, 0, 1, 1], [], []>} : vector<8x32xbf16>, vector<32x32xbf16>, vector<8x32xf32> -> vector<8x32xf32>
    %93 = vector.broadcast %12 : vector<1x32xf32> to vector<8x32xf32>
    %94 = arith.addf %92, %93 : vector<8x32xf32>
    %cst_136 = arith.constant dense<0.000000e+00> : vector<8xf32>
    %95 = vector.multi_reduction <add>, %58, %cst_136 [1] : vector<8x32xf32> to vector<8xf32>
    %96 = vector.shape_cast %95 : vector<8xf32> to vector<8x1xf32>
    %cst_137 = arith.constant 3.200000e+01 : f32
    %97 = vector.broadcast %cst_137 : f32 to vector<8x1xf32>
    %98 = arith.divf %96, %97 : vector<8x1xf32>
    %99 = vector.broadcast %98 : vector<8x1xf32> to vector<8x32xf32>
    %100 = arith.subf %58, %99 : vector<8x32xf32>
    %101 = arith.mulf %100, %100 : vector<8x32xf32>
    %cst_138 = arith.constant dense<0.000000e+00> : vector<8xf32>
    %102 = vector.multi_reduction <add>, %101, %cst_138 [1] : vector<8x32xf32> to vector<8xf32>
    %103 = vector.shape_cast %102 : vector<8xf32> to vector<8x1xf32>
    %cst_139 = arith.constant 3.200000e+01 : f32
    %104 = vector.broadcast %cst_139 : f32 to vector<8x1xf32>
    %105 = arith.divf %103, %104 : vector<8x1xf32>
    %106 = vector.broadcast %98 : vector<8x1xf32> to vector<8x32xf32>
    %107 = arith.subf %58, %106 : vector<8x32xf32>
    %cst_140 = arith.constant 9.99999974E-6 : f32
    %108 = vector.broadcast %cst_140 : f32 to vector<8x1xf32>
    %109 = arith.addf %105, %108 : vector<8x1xf32>
    %110 = math.rsqrt %109 : vector<8x1xf32>
    %111 = vector.broadcast %110 : vector<8x1xf32> to vector<8x32xf32>
    %112 = arith.mulf %107, %111 : vector<8x32xf32>
    %113 = vector.broadcast %59 : vector<1x32xf32> to vector<8x32xf32>
    %114 = arith.mulf %112, %113 : vector<8x32xf32>
    %115 = arith.addf %114, %60 : vector<8x32xf32>
    %116 = arith.truncf %115 : vector<8x32xf32> to vector<8x32xbf16>
    %cst_141 = arith.constant dense<0.000000e+00> : vector<8x32xf32>
    %117 = tpu.matmul %116, %3, %cst_141 {dimension_numbers = #tpu.dot_dimension_numbers<[1], [0], [0], [1], [0, 0, 1, 1], [], []>} : vector<8x32xbf16>, vector<32x32xbf16>, vector<8x32xf32> -> vector<8x32xf32>
    %118 = vector.broadcast %2 : vector<1x32xf32> to vector<8x32xf32>
    %119 = arith.addf %117, %118 : vector<8x32xf32>
    %120 = arith.truncf %115 : vector<8x32xf32> to vector<8x32xbf16>
    %cst_142 = arith.constant dense<0.000000e+00> : vector<8x32xf32>
    %121 = tpu.matmul %120, %15, %cst_142 {dimension_numbers = #tpu.dot_dimension_numbers<[1], [0], [0], [1], [0, 0, 1, 1], [], []>} : vector<8x32xbf16>, vector<32x32xbf16>, vector<8x32xf32> -> vector<8x32xf32>
    %122 = vector.broadcast %14 : vector<1x32xf32> to vector<8x32xf32>
    %123 = arith.addf %121, %122 : vector<8x32xf32>
    %124 = arith.truncf %119 : vector<8x32xf32> to vector<8x32xbf16>
    %cst_143 = arith.constant dense<0.000000e+00> : vector<8x32xf32>
    %125 = tpu.matmul %124, %21, %cst_143 {dimension_numbers = #tpu.dot_dimension_numbers<[1], [0], [0], [1], [0, 0, 1, 1], [], []>} : vector<8x32xbf16>, vector<32x32xbf16>, vector<8x32xf32> -> vector<8x32xf32>
    %126 = vector.broadcast %17 : vector<1x32xf32> to vector<8x32xf32>
    %127 = arith.addf %125, %126 : vector<8x32xf32>
    %128 = arith.truncf %123 : vector<8x32xf32> to vector<8x32xbf16>
    %cst_144 = arith.constant dense<0.000000e+00> : vector<8x32xf32>
    %129 = tpu.matmul %128, %24, %cst_144 {dimension_numbers = #tpu.dot_dimension_numbers<[1], [0], [0], [1], [0, 0, 1, 1], [], []>} : vector<8x32xbf16>, vector<32x32xbf16>, vector<8x32xf32> -> vector<8x32xf32>
    %130 = vector.broadcast %20 : vector<1x32xf32> to vector<8x32xf32>
    %131 = arith.addf %129, %130 : vector<8x32xf32>
    %132 = arith.truncf %127 : vector<8x32xf32> to vector<8x32xbf16>
    %133 = arith.truncf %131 : vector<8x32xf32> to vector<8x32xbf16>
    %cst_145 = arith.constant dense<0.000000e+00> : vector<8xf32>
    %134 = vector.multi_reduction <add>, %90, %cst_145 [1] : vector<8x32xf32> to vector<8xf32>
    %135 = vector.shape_cast %134 : vector<8xf32> to vector<8x1xf32>
    %cst_146 = arith.constant 3.200000e+01 : f32
    %136 = vector.broadcast %cst_146 : f32 to vector<8x1xf32>
    %137 = arith.divf %135, %136 : vector<8x1xf32>
    %138 = vector.broadcast %137 : vector<8x1xf32> to vector<8x32xf32>
    %139 = arith.subf %90, %138 : vector<8x32xf32>
    %140 = arith.mulf %139, %139 : vector<8x32xf32>
    %cst_147 = arith.constant dense<0.000000e+00> : vector<8xf32>
    %141 = vector.multi_reduction <add>, %140, %cst_147 [1] : vector<8x32xf32> to vector<8xf32>
    %142 = vector.shape_cast %141 : vector<8xf32> to vector<8x1xf32>
    %cst_148 = arith.constant 3.200000e+01 : f32
    %143 = vector.broadcast %cst_148 : f32 to vector<8x1xf32>
    %144 = arith.divf %142, %143 : vector<8x1xf32>
    %145 = vector.broadcast %137 : vector<8x1xf32> to vector<8x32xf32>
    %146 = arith.subf %90, %145 : vector<8x32xf32>
    %cst_149 = arith.constant 9.99999974E-6 : f32
    %147 = vector.broadcast %cst_149 : f32 to vector<8x1xf32>
    %148 = arith.addf %144, %147 : vector<8x1xf32>
    %149 = math.rsqrt %148 : vector<8x1xf32>
    %150 = vector.broadcast %149 : vector<8x1xf32> to vector<8x32xf32>
    %151 = arith.mulf %146, %150 : vector<8x32xf32>
    %152 = vector.broadcast %40 : vector<1x32xf32> to vector<8x32xf32>
    %153 = arith.mulf %151, %152 : vector<8x32xf32>
    %154 = tpu.concatenate %64, %153 in 0 : vector<8x32xf32>, vector<8x32xf32> -> vector<16x32xf32>
    %155 = tpu.concatenate %66, %94 in 0 : vector<8x32xf32>, vector<8x32xf32> -> vector<16x32xf32>
    %156 = vector.extract_strided_slice %154 {offsets = [8, 0], sizes = [8, 32], strides = [1, 1]} : vector<16x32xf32> to vector<8x32xf32>
    %c0_150 = arith.constant 0 : index
    %c0_151 = arith.constant 0 : index
    %c0_152 = arith.constant 0 : index
    %157 = vector.load %arg67[%c0_150, %c0_151, %c0_152] : memref<1x8x32xf32, #tpu.memory_space<vmem>>, vector<1x8x32xf32>
    %158 = vector.shape_cast %157 : vector<1x8x32xf32> to vector<8x32xf32>
    %159 = vector.shape_cast %156 : vector<8x32xf32> to vector<1x8x32xf32>
    tpu.vector_store %arg67[%c0_150, %c0_151, %c0_152], %159 {strides = array<i32>} : memref<1x8x32xf32, #tpu.memory_space<vmem>>, vector<1x8x32xf32>,
    %160 = vector.extract_strided_slice %155 {offsets = [8, 0], sizes = [8, 32], strides = [1, 1]} : vector<16x32xf32> to vector<8x32xf32>
    %c0_153 = arith.constant 0 : index
    %c0_154 = arith.constant 0 : index
    %c0_155 = arith.constant 0 : index
    %161 = vector.load %arg68[%c0_153, %c0_154, %c0_155] : memref<1x8x32xf32, #tpu.memory_space<vmem>>, vector<1x8x32xf32>
    %162 = vector.shape_cast %161 : vector<1x8x32xf32> to vector<8x32xf32>
    %163 = vector.shape_cast %160 : vector<8x32xf32> to vector<1x8x32xf32>
    tpu.vector_store %arg68[%c0_153, %c0_154, %c0_155], %163 {strides = array<i32>} : memref<1x8x32xf32, #tpu.memory_space<vmem>>, vector<1x8x32xf32>,
    %164 = arith.truncf %86 : vector<8x32xf32> to vector<8x32xbf16>
    %cst_156 = arith.constant dense<0.000000e+00> : vector<8x32xf32>
    %165 = tpu.matmul %164, %7, %cst_156 {dimension_numbers = #tpu.dot_dimension_numbers<[1], [0], [0], [1], [0, 0, 1, 1], [], []>} : vector<8x32xbf16>, vector<32x32xbf16>, vector<8x32xf32> -> vector<8x32xf32>
    %166 = vector.broadcast %6 : vector<1x32xf32> to vector<8x32xf32>
    %167 = arith.addf %165, %166 : vector<8x32xf32>
    %cst_157 = arith.constant dense<0.000000e+00> : vector<8xf32>
    %168 = vector.multi_reduction <add>, %167, %cst_157 [1] : vector<8x32xf32> to vector<8xf32>
    %169 = vector.shape_cast %168 : vector<8xf32> to vector<8x1xf32>
    %cst_158 = arith.constant 3.200000e+01 : f32
    %170 = vector.broadcast %cst_158 : f32 to vector<8x1xf32>
    %171 = arith.divf %169, %170 : vector<8x1xf32>
    %172 = vector.broadcast %171 : vector<8x1xf32> to vector<8x32xf32>
    %173 = arith.subf %167, %172 : vector<8x32xf32>
    %174 = arith.mulf %173, %173 : vector<8x32xf32>
    %cst_159 = arith.constant dense<0.000000e+00> : vector<8xf32>
    %175 = vector.multi_reduction <add>, %174, %cst_159 [1] : vector<8x32xf32> to vector<8xf32>
    %176 = vector.shape_cast %175 : vector<8xf32> to vector<8x1xf32>
    %cst_160 = arith.constant 3.200000e+01 : f32
    %177 = vector.broadcast %cst_160 : f32 to vector<8x1xf32>
    %178 = arith.divf %176, %177 : vector<8x1xf32>
    %179 = vector.broadcast %171 : vector<8x1xf32> to vector<8x32xf32>
    %180 = arith.subf %167, %179 : vector<8x32xf32>
    %cst_161 = arith.constant 9.99999974E-6 : f32
    %181 = vector.broadcast %cst_161 : f32 to vector<8x1xf32>
    %182 = arith.addf %178, %181 : vector<8x1xf32>
    %183 = math.rsqrt %182 : vector<8x1xf32>
    %184 = vector.broadcast %183 : vector<8x1xf32> to vector<8x32xf32>
    %185 = arith.mulf %180, %184 : vector<8x32xf32>
    %186 = vector.broadcast %52 : vector<1x32xf32> to vector<8x32xf32>
    %187 = arith.mulf %185, %186 : vector<8x32xf32>
    %cst_162 = arith.constant dense<0.000000e+00> : vector<8x32xf32>
    %188 = tpu.matmul %187, %57, %cst_162 {dimension_numbers = #tpu.dot_dimension_numbers<[1], [0], [0], [1], [0, 0, 1, 1], [], []>} : vector<8x32xf32>, vector<32x32xf32>, vector<8x32xf32> -> vector<8x32xf32>
    %189 = arith.mulf %187, %54 : vector<8x32xf32>
    %190 = arith.mulf %188, %56 : vector<8x32xf32>
    %191 = arith.addf %189, %190 : vector<8x32xf32>
    %cst_163 = arith.constant dense<0.000000e+00> : vector<16x32xf32>
    %192 = tpu.matmul %154, %57, %cst_163 {dimension_numbers = #tpu.dot_dimension_numbers<[1], [0], [0], [1], [0, 0, 1, 1], [], []>} : vector<16x32xf32>, vector<32x32xf32>, vector<16x32xf32> -> vector<16x32xf32>
    %193 = arith.mulf %154, %53 : vector<16x32xf32>
    %194 = arith.mulf %192, %55 : vector<16x32xf32>
    %195 = arith.addf %193, %194 : vector<16x32xf32>
    %196 = arith.truncf %195 : vector<16x32xf32> to vector<16x32xbf16>
    %cst_164 = arith.constant dense<0.000000e+00> : vector<16x32xf32>
    %197 = tpu.matmul %196, %21, %cst_164 {dimension_numbers = #tpu.dot_dimension_numbers<[1], [0], [0], [1], [0, 0, 1, 1], [], []>} : vector<16x32xbf16>, vector<32x32xbf16>, vector<16x32xf32> -> vector<16x32xf32>
    %198 = vector.broadcast %17 : vector<1x32xf32> to vector<16x32xf32>
    %199 = arith.addf %197, %198 : vector<16x32xf32>
    %200 = arith.truncf %155 : vector<16x32xf32> to vector<16x32xbf16>
    %cst_165 = arith.constant dense<0.000000e+00> : vector<16x32xf32>
    %201 = tpu.matmul %200, %24, %cst_165 {dimension_numbers = #tpu.dot_dimension_numbers<[1], [0], [0], [1], [0, 0, 1, 1], [], []>} : vector<16x32xbf16>, vector<32x32xbf16>, vector<16x32xf32> -> vector<16x32xf32>
    %202 = vector.broadcast %20 : vector<1x32xf32> to vector<16x32xf32>
    %203 = arith.addf %201, %202 : vector<16x32xf32>
    %204 = arith.truncf %199 : vector<16x32xf32> to vector<16x32xbf16>
    %205 = arith.truncf %203 : vector<16x32xf32> to vector<16x32xbf16>
    %206 = arith.truncf %191 : vector<8x32xf32> to vector<8x32xbf16>
    %cst_166 = arith.constant dense<0.000000e+00> : vector<8x32xf32>
    %207 = tpu.matmul %206, %23, %cst_166 {dimension_numbers = #tpu.dot_dimension_numbers<[1], [0], [0], [1], [0, 0, 1, 1], [], []>} : vector<8x32xbf16>, vector<32x32xbf16>, vector<8x32xf32> -> vector<8x32xf32>
    %208 = vector.broadcast %19 : vector<1x32xf32> to vector<8x32xf32>
    %209 = arith.addf %207, %208 : vector<8x32xf32>
    %210 = arith.truncf %209 : vector<8x32xf32> to vector<8x32xbf16>
    %cst_167 = arith.constant 0.000000e+00 : f32
    %211 = vector.broadcast %cst_167 : f32 to vector<8x32xf32>
    %212 = vector.extract_strided_slice %39 {offsets = [0, 0], sizes = [1, 32], strides = [1, 1]} : vector<4x32xbf16> to vector<1x32xbf16>
    %213 = vector.broadcast %212 : vector<1x32xbf16> to vector<8x32xbf16>
    %214 = arith.mulf %210, %213 : vector<8x32xbf16>
    %215 = vector.broadcast %212 : vector<1x32xbf16> to vector<16x32xbf16>
    %216 = arith.mulf %204, %215 : vector<16x32xbf16>
    %cst_168 = arith.constant dense<0.000000e+00> : vector<8x16xf32>
    %217 = tpu.matmul %214, %216, %cst_168 {dimension_numbers = #tpu.dot_dimension_numbers<[1], [1], [0], [0], [0, 0, 1, 0], [], []>} : vector<8x32xbf16>, vector<16x32xbf16>, vector<8x16xf32> -> vector<8x16xf32>
    %cst_169 = arith.constant 0.353553385 : f32
    %218 = vector.broadcast %cst_169 : f32 to vector<8x16xf32>
    %219 = arith.mulf %217, %218 : vector<8x16xf32>
    %220 = arith.addf %219, %16 : vector<8x16xf32>
    %cst_170 = arith.constant dense<0xFF800000> : vector<8xf32>
    %221 = vector.multi_reduction <maximumf>, %220, %cst_170 [1] : vector<8x16xf32> to vector<8xf32>
    %222 = vector.shape_cast %221 : vector<8xf32> to vector<8x1xf32>
    %223 = vector.broadcast %222 : vector<8x1xf32> to vector<8x16xf32>
    %224 = arith.subf %220, %223 : vector<8x16xf32>
    %225 = math.exp %224 : vector<8x16xf32>
    %cst_171 = arith.constant dense<0.000000e+00> : vector<8xf32>
    %226 = vector.multi_reduction <add>, %225, %cst_171 [1] : vector<8x16xf32> to vector<8xf32>
    %227 = vector.shape_cast %226 : vector<8xf32> to vector<8x1xf32>
    %228 = tpu.reciprocal %227 {approx = true} : vector<8x1xf32> -> vector<8x1xf32>
    %229 = vector.broadcast %228 : vector<8x1xf32> to vector<8x16xf32>
    %230 = arith.mulf %225, %229 : vector<8x16xf32>
    %231 = arith.truncf %230 : vector<8x16xf32> to vector<8x16xbf16>
    %232 = vector.broadcast %212 : vector<1x32xbf16> to vector<16x32xbf16>
    %233 = arith.mulf %205, %232 : vector<16x32xbf16>
    %cst_172 = arith.constant dense<0.000000e+00> : vector<8x32xf32>
    %234 = tpu.matmul %231, %233, %cst_172 {dimension_numbers = #tpu.dot_dimension_numbers<[1], [0], [0], [1], [0, 0, 1, 1], [], []>} : vector<8x16xbf16>, vector<16x32xbf16>, vector<8x32xf32> -> vector<8x32xf32>
    %235 = arith.addf %211, %234 : vector<8x32xf32>
    %236 = vector.extract_strided_slice %39 {offsets = [1, 0], sizes = [1, 32], strides = [1, 1]} : vector<4x32xbf16> to vector<1x32xbf16>
    %237 = vector.broadcast %236 : vector<1x32xbf16> to vector<8x32xbf16>
    %238 = arith.mulf %210, %237 : vector<8x32xbf16>
    %239 = vector.broadcast %236 : vector<1x32xbf16> to vector<16x32xbf16>
    %240 = arith.mulf %204, %239 : vector<16x32xbf16>
    %cst_173 = arith.constant dense<0.000000e+00> : vector<8x16xf32>
    %241 = tpu.matmul %238, %240, %cst_173 {dimension_numbers = #tpu.dot_dimension_numbers<[1], [1], [0], [0], [0, 0, 1, 0], [], []>} : vector<8x32xbf16>, vector<16x32xbf16>, vector<8x16xf32> -> vector<8x16xf32>
    %cst_174 = arith.constant 0.353553385 : f32
    %242 = vector.broadcast %cst_174 : f32 to vector<8x16xf32>
    %243 = arith.mulf %241, %242 : vector<8x16xf32>
    %244 = arith.addf %243, %16 : vector<8x16xf32>
    %cst_175 = arith.constant dense<0xFF800000> : vector<8xf32>
    %245 = vector.multi_reduction <maximumf>, %244, %cst_175 [1] : vector<8x16xf32> to vector<8xf32>
    %246 = vector.shape_cast %245 : vector<8xf32> to vector<8x1xf32>
    %247 = vector.broadcast %246 : vector<8x1xf32> to vector<8x16xf32>
    %248 = arith.subf %244, %247 : vector<8x16xf32>
    %249 = math.exp %248 : vector<8x16xf32>
    %cst_176 = arith.constant dense<0.000000e+00> : vector<8xf32>
    %250 = vector.multi_reduction <add>, %249, %cst_176 [1] : vector<8x16xf32> to vector<8xf32>
    %251 = vector.shape_cast %250 : vector<8xf32> to vector<8x1xf32>
    %252 = tpu.reciprocal %251 {approx = true} : vector<8x1xf32> -> vector<8x1xf32>
    %253 = vector.broadcast %252 : vector<8x1xf32> to vector<8x16xf32>
    %254 = arith.mulf %249, %253 : vector<8x16xf32>
    %255 = arith.truncf %254 : vector<8x16xf32> to vector<8x16xbf16>
    %256 = vector.broadcast %236 : vector<1x32xbf16> to vector<16x32xbf16>
    %257 = arith.mulf %205, %256 : vector<16x32xbf16>
    %cst_177 = arith.constant dense<0.000000e+00> : vector<8x32xf32>
    %258 = tpu.matmul %255, %257, %cst_177 {dimension_numbers = #tpu.dot_dimension_numbers<[1], [0], [0], [1], [0, 0, 1, 1], [], []>} : vector<8x16xbf16>, vector<16x32xbf16>, vector<8x32xf32> -> vector<8x32xf32>
    %259 = arith.addf %235, %258 : vector<8x32xf32>
    %260 = vector.extract_strided_slice %39 {offsets = [2, 0], sizes = [1, 32], strides = [1, 1]} : vector<4x32xbf16> to vector<1x32xbf16>
    %261 = vector.broadcast %260 : vector<1x32xbf16> to vector<8x32xbf16>
    %262 = arith.mulf %210, %261 : vector<8x32xbf16>
    %263 = vector.broadcast %260 : vector<1x32xbf16> to vector<16x32xbf16>
    %264 = arith.mulf %204, %263 : vector<16x32xbf16>
    %cst_178 = arith.constant dense<0.000000e+00> : vector<8x16xf32>
    %265 = tpu.matmul %262, %264, %cst_178 {dimension_numbers = #tpu.dot_dimension_numbers<[1], [1], [0], [0], [0, 0, 1, 0], [], []>} : vector<8x32xbf16>, vector<16x32xbf16>, vector<8x16xf32> -> vector<8x16xf32>
    %cst_179 = arith.constant 0.353553385 : f32
    %266 = vector.broadcast %cst_179 : f32 to vector<8x16xf32>
    %267 = arith.mulf %265, %266 : vector<8x16xf32>
    %268 = arith.addf %267, %16 : vector<8x16xf32>
    %cst_180 = arith.constant dense<0xFF800000> : vector<8xf32>
    %269 = vector.multi_reduction <maximumf>, %268, %cst_180 [1] : vector<8x16xf32> to vector<8xf32>
    %270 = vector.shape_cast %269 : vector<8xf32> to vector<8x1xf32>
    %271 = vector.broadcast %270 : vector<8x1xf32> to vector<8x16xf32>
    %272 = arith.subf %268, %271 : vector<8x16xf32>
    %273 = math.exp %272 : vector<8x16xf32>
    %cst_181 = arith.constant dense<0.000000e+00> : vector<8xf32>
    %274 = vector.multi_reduction <add>, %273, %cst_181 [1] : vector<8x16xf32> to vector<8xf32>
    %275 = vector.shape_cast %274 : vector<8xf32> to vector<8x1xf32>
    %276 = tpu.reciprocal %275 {approx = true} : vector<8x1xf32> -> vector<8x1xf32>
    %277 = vector.broadcast %276 : vector<8x1xf32> to vector<8x16xf32>
    %278 = arith.mulf %273, %277 : vector<8x16xf32>
    %279 = arith.truncf %278 : vector<8x16xf32> to vector<8x16xbf16>
    %280 = vector.broadcast %260 : vector<1x32xbf16> to vector<16x32xbf16>
    %281 = arith.mulf %205, %280 : vector<16x32xbf16>
    %cst_182 = arith.constant dense<0.000000e+00> : vector<8x32xf32>
    %282 = tpu.matmul %279, %281, %cst_182 {dimension_numbers = #tpu.dot_dimension_numbers<[1], [0], [0], [1], [0, 0, 1, 1], [], []>} : vector<8x16xbf16>, vector<16x32xbf16>, vector<8x32xf32> -> vector<8x32xf32>
    %283 = arith.addf %259, %282 : vector<8x32xf32>
    %284 = vector.extract_strided_slice %39 {offsets = [3, 0], sizes = [1, 32], strides = [1, 1]} : vector<4x32xbf16> to vector<1x32xbf16>
    %285 = vector.broadcast %284 : vector<1x32xbf16> to vector<8x32xbf16>
    %286 = arith.mulf %210, %285 : vector<8x32xbf16>
    %287 = vector.broadcast %284 : vector<1x32xbf16> to vector<16x32xbf16>
    %288 = arith.mulf %204, %287 : vector<16x32xbf16>
    %cst_183 = arith.constant dense<0.000000e+00> : vector<8x16xf32>
    %289 = tpu.matmul %286, %288, %cst_183 {dimension_numbers = #tpu.dot_dimension_numbers<[1], [1], [0], [0], [0, 0, 1, 0], [], []>} : vector<8x32xbf16>, vector<16x32xbf16>, vector<8x16xf32> -> vector<8x16xf32>
    %cst_184 = arith.constant 0.353553385 : f32
    %290 = vector.broadcast %cst_184 : f32 to vector<8x16xf32>
    %291 = arith.mulf %289, %290 : vector<8x16xf32>
    %292 = arith.addf %291, %16 : vector<8x16xf32>
    %cst_185 = arith.constant dense<0xFF800000> : vector<8xf32>
    %293 = vector.multi_reduction <maximumf>, %292, %cst_185 [1] : vector<8x16xf32> to vector<8xf32>
    %294 = vector.shape_cast %293 : vector<8xf32> to vector<8x1xf32>
    %295 = vector.broadcast %294 : vector<8x1xf32> to vector<8x16xf32>
    %296 = arith.subf %292, %295 : vector<8x16xf32>
    %297 = math.exp %296 : vector<8x16xf32>
    %cst_186 = arith.constant dense<0.000000e+00> : vector<8xf32>
    %298 = vector.multi_reduction <add>, %297, %cst_186 [1] : vector<8x16xf32> to vector<8xf32>
    %299 = vector.shape_cast %298 : vector<8xf32> to vector<8x1xf32>
    %300 = tpu.reciprocal %299 {approx = true} : vector<8x1xf32> -> vector<8x1xf32>
    %301 = vector.broadcast %300 : vector<8x1xf32> to vector<8x16xf32>
    %302 = arith.mulf %297, %301 : vector<8x16xf32>
    %303 = arith.truncf %302 : vector<8x16xf32> to vector<8x16xbf16>
    %304 = vector.broadcast %284 : vector<1x32xbf16> to vector<16x32xbf16>
    %305 = arith.mulf %205, %304 : vector<16x32xbf16>
    %cst_187 = arith.constant dense<0.000000e+00> : vector<8x32xf32>
    %306 = tpu.matmul %303, %305, %cst_187 {dimension_numbers = #tpu.dot_dimension_numbers<[1], [0], [0], [1], [0, 0, 1, 1], [], []>} : vector<8x16xbf16>, vector<16x32xbf16>, vector<8x32xf32> -> vector<8x32xf32>
    %307 = arith.addf %283, %306 : vector<8x32xf32>
    %308 = arith.truncf %307 : vector<8x32xf32> to vector<8x32xbf16>
    %cst_188 = arith.constant dense<0.000000e+00> : vector<8x32xf32>
    %309 = tpu.matmul %308, %22, %cst_188 {dimension_numbers = #tpu.dot_dimension_numbers<[1], [0], [0], [1], [0, 0, 1, 1], [], []>} : vector<8x32xbf16>, vector<32x32xbf16>, vector<8x32xf32> -> vector<8x32xf32>
    %310 = vector.broadcast %18 : vector<1x32xf32> to vector<8x32xf32>
    %311 = arith.addf %309, %310 : vector<8x32xf32>
    %312 = arith.truncf %86 : vector<8x32xf32> to vector<8x32xbf16>
    %cst_189 = arith.constant dense<0.000000e+00> : vector<8x32xf32>
    %313 = tpu.matmul %312, %11, %cst_189 {dimension_numbers = #tpu.dot_dimension_numbers<[1], [0], [0], [1], [0, 0, 1, 1], [], []>} : vector<8x32xbf16>, vector<32x32xbf16>, vector<8x32xf32> -> vector<8x32xf32>
    %314 = vector.broadcast %10 : vector<1x32xf32> to vector<8x32xf32>
    %315 = arith.addf %313, %314 : vector<8x32xf32>
    %316 = arith.truncf %315 : vector<8x32xf32> to vector<8x32xbf16>
    %cst_190 = arith.constant dense<0.000000e+00> : vector<8x32xf32>
    %317 = tpu.matmul %316, %23, %cst_190 {dimension_numbers = #tpu.dot_dimension_numbers<[1], [0], [0], [1], [0, 0, 1, 1], [], []>} : vector<8x32xbf16>, vector<32x32xbf16>, vector<8x32xf32> -> vector<8x32xf32>
    %318 = vector.broadcast %19 : vector<1x32xf32> to vector<8x32xf32>
    %319 = arith.addf %317, %318 : vector<8x32xf32>
    %320 = arith.truncf %319 : vector<8x32xf32> to vector<8x32xbf16>
    %cst_191 = arith.constant 0.000000e+00 : f32
    %321 = vector.broadcast %cst_191 : f32 to vector<8x32xf32>
    %322 = vector.extract_strided_slice %39 {offsets = [0, 0], sizes = [1, 32], strides = [1, 1]} : vector<4x32xbf16> to vector<1x32xbf16>
    %323 = vector.broadcast %322 : vector<1x32xbf16> to vector<8x32xbf16>
    %324 = arith.mulf %320, %323 : vector<8x32xbf16>
    %325 = vector.broadcast %322 : vector<1x32xbf16> to vector<8x32xbf16>
    %326 = arith.mulf %132, %325 : vector<8x32xbf16>
    %cst_192 = arith.constant dense<0.000000e+00> : vector<8x8xf32>
    %327 = tpu.matmul %324, %326, %cst_192 {dimension_numbers = #tpu.dot_dimension_numbers<[1], [1], [0], [0], [0, 0, 1, 0], [], []>} : vector<8x32xbf16>, vector<8x32xbf16>, vector<8x8xf32> -> vector<8x8xf32>
    %cst_193 = arith.constant 0.353553385 : f32
    %328 = vector.broadcast %cst_193 : f32 to vector<8x8xf32>
    %329 = arith.mulf %327, %328 : vector<8x8xf32>
    %cst_194 = arith.constant dense<0xFF800000> : vector<8xf32>
    %330 = vector.multi_reduction <maximumf>, %329, %cst_194 [1] : vector<8x8xf32> to vector<8xf32>
    %331 = vector.shape_cast %330 : vector<8xf32> to vector<8x1xf32>
    %332 = vector.broadcast %331 : vector<8x1xf32> to vector<8x8xf32>
    %333 = arith.subf %329, %332 : vector<8x8xf32>
    %334 = math.exp %333 : vector<8x8xf32>
    %cst_195 = arith.constant dense<0.000000e+00> : vector<8xf32>
    %335 = vector.multi_reduction <add>, %334, %cst_195 [1] : vector<8x8xf32> to vector<8xf32>
    %336 = vector.shape_cast %335 : vector<8xf32> to vector<8x1xf32>
    %337 = tpu.reciprocal %336 {approx = true} : vector<8x1xf32> -> vector<8x1xf32>
    %338 = vector.broadcast %337 : vector<8x1xf32> to vector<8x8xf32>
    %339 = arith.mulf %334, %338 : vector<8x8xf32>
    %340 = arith.truncf %339 : vector<8x8xf32> to vector<8x8xbf16>
    %341 = vector.broadcast %322 : vector<1x32xbf16> to vector<8x32xbf16>
    %342 = arith.mulf %133, %341 : vector<8x32xbf16>
    %cst_196 = arith.constant dense<0.000000e+00> : vector<8x32xf32>
    %343 = tpu.matmul %340, %342, %cst_196 {dimension_numbers = #tpu.dot_dimension_numbers<[1], [0], [0], [1], [0, 0, 1, 1], [], []>} : vector<8x8xbf16>, vector<8x32xbf16>, vector<8x32xf32> -> vector<8x32xf32>
    %344 = arith.addf %321, %343 : vector<8x32xf32>
    %345 = vector.extract_strided_slice %39 {offsets = [1, 0], sizes = [1, 32], strides = [1, 1]} : vector<4x32xbf16> to vector<1x32xbf16>
    %346 = vector.broadcast %345 : vector<1x32xbf16> to vector<8x32xbf16>
    %347 = arith.mulf %320, %346 : vector<8x32xbf16>
    %348 = vector.broadcast %345 : vector<1x32xbf16> to vector<8x32xbf16>
    %349 = arith.mulf %132, %348 : vector<8x32xbf16>
    %cst_197 = arith.constant dense<0.000000e+00> : vector<8x8xf32>
    %350 = tpu.matmul %347, %349, %cst_197 {dimension_numbers = #tpu.dot_dimension_numbers<[1], [1], [0], [0], [0, 0, 1, 0], [], []>} : vector<8x32xbf16>, vector<8x32xbf16>, vector<8x8xf32> -> vector<8x8xf32>
    %cst_198 = arith.constant 0.353553385 : f32
    %351 = vector.broadcast %cst_198 : f32 to vector<8x8xf32>
    %352 = arith.mulf %350, %351 : vector<8x8xf32>
    %cst_199 = arith.constant dense<0xFF800000> : vector<8xf32>
    %353 = vector.multi_reduction <maximumf>, %352, %cst_199 [1] : vector<8x8xf32> to vector<8xf32>
    %354 = vector.shape_cast %353 : vector<8xf32> to vector<8x1xf32>
    %355 = vector.broadcast %354 : vector<8x1xf32> to vector<8x8xf32>
    %356 = arith.subf %352, %355 : vector<8x8xf32>
    %357 = math.exp %356 : vector<8x8xf32>
    %cst_200 = arith.constant dense<0.000000e+00> : vector<8xf32>
    %358 = vector.multi_reduction <add>, %357, %cst_200 [1] : vector<8x8xf32> to vector<8xf32>
    %359 = vector.shape_cast %358 : vector<8xf32> to vector<8x1xf32>
    %360 = tpu.reciprocal %359 {approx = true} : vector<8x1xf32> -> vector<8x1xf32>
    %361 = vector.broadcast %360 : vector<8x1xf32> to vector<8x8xf32>
    %362 = arith.mulf %357, %361 : vector<8x8xf32>
    %363 = arith.truncf %362 : vector<8x8xf32> to vector<8x8xbf16>
    %364 = vector.broadcast %345 : vector<1x32xbf16> to vector<8x32xbf16>
    %365 = arith.mulf %133, %364 : vector<8x32xbf16>
    %cst_201 = arith.constant dense<0.000000e+00> : vector<8x32xf32>
    %366 = tpu.matmul %363, %365, %cst_201 {dimension_numbers = #tpu.dot_dimension_numbers<[1], [0], [0], [1], [0, 0, 1, 1], [], []>} : vector<8x8xbf16>, vector<8x32xbf16>, vector<8x32xf32> -> vector<8x32xf32>
    %367 = arith.addf %344, %366 : vector<8x32xf32>
    %368 = vector.extract_strided_slice %39 {offsets = [2, 0], sizes = [1, 32], strides = [1, 1]} : vector<4x32xbf16> to vector<1x32xbf16>
    %369 = vector.broadcast %368 : vector<1x32xbf16> to vector<8x32xbf16>
    %370 = arith.mulf %320, %369 : vector<8x32xbf16>
    %371 = vector.broadcast %368 : vector<1x32xbf16> to vector<8x32xbf16>
    %372 = arith.mulf %132, %371 : vector<8x32xbf16>
    %cst_202 = arith.constant dense<0.000000e+00> : vector<8x8xf32>
    %373 = tpu.matmul %370, %372, %cst_202 {dimension_numbers = #tpu.dot_dimension_numbers<[1], [1], [0], [0], [0, 0, 1, 0], [], []>} : vector<8x32xbf16>, vector<8x32xbf16>, vector<8x8xf32> -> vector<8x8xf32>
    %cst_203 = arith.constant 0.353553385 : f32
    %374 = vector.broadcast %cst_203 : f32 to vector<8x8xf32>
    %375 = arith.mulf %373, %374 : vector<8x8xf32>
    %cst_204 = arith.constant dense<0xFF800000> : vector<8xf32>
    %376 = vector.multi_reduction <maximumf>, %375, %cst_204 [1] : vector<8x8xf32> to vector<8xf32>
    %377 = vector.shape_cast %376 : vector<8xf32> to vector<8x1xf32>
    %378 = vector.broadcast %377 : vector<8x1xf32> to vector<8x8xf32>
    %379 = arith.subf %375, %378 : vector<8x8xf32>
    %380 = math.exp %379 : vector<8x8xf32>
    %cst_205 = arith.constant dense<0.000000e+00> : vector<8xf32>
    %381 = vector.multi_reduction <add>, %380, %cst_205 [1] : vector<8x8xf32> to vector<8xf32>
    %382 = vector.shape_cast %381 : vector<8xf32> to vector<8x1xf32>
    %383 = tpu.reciprocal %382 {approx = true} : vector<8x1xf32> -> vector<8x1xf32>
    %384 = vector.broadcast %383 : vector<8x1xf32> to vector<8x8xf32>
    %385 = arith.mulf %380, %384 : vector<8x8xf32>
    %386 = arith.truncf %385 : vector<8x8xf32> to vector<8x8xbf16>
    %387 = vector.broadcast %368 : vector<1x32xbf16> to vector<8x32xbf16>
    %388 = arith.mulf %133, %387 : vector<8x32xbf16>
    %cst_206 = arith.constant dense<0.000000e+00> : vector<8x32xf32>
    %389 = tpu.matmul %386, %388, %cst_206 {dimension_numbers = #tpu.dot_dimension_numbers<[1], [0], [0], [1], [0, 0, 1, 1], [], []>} : vector<8x8xbf16>, vector<8x32xbf16>, vector<8x32xf32> -> vector<8x32xf32>
    %390 = arith.addf %367, %389 : vector<8x32xf32>
    %391 = vector.extract_strided_slice %39 {offsets = [3, 0], sizes = [1, 32], strides = [1, 1]} : vector<4x32xbf16> to vector<1x32xbf16>
    %392 = vector.broadcast %391 : vector<1x32xbf16> to vector<8x32xbf16>
    %393 = arith.mulf %320, %392 : vector<8x32xbf16>
    %394 = vector.broadcast %391 : vector<1x32xbf16> to vector<8x32xbf16>
    %395 = arith.mulf %132, %394 : vector<8x32xbf16>
    %cst_207 = arith.constant dense<0.000000e+00> : vector<8x8xf32>
    %396 = tpu.matmul %393, %395, %cst_207 {dimension_numbers = #tpu.dot_dimension_numbers<[1], [1], [0], [0], [0, 0, 1, 0], [], []>} : vector<8x32xbf16>, vector<8x32xbf16>, vector<8x8xf32> -> vector<8x8xf32>
    %cst_208 = arith.constant 0.353553385 : f32
    %397 = vector.broadcast %cst_208 : f32 to vector<8x8xf32>
    %398 = arith.mulf %396, %397 : vector<8x8xf32>
    %cst_209 = arith.constant dense<0xFF800000> : vector<8xf32>
    %399 = vector.multi_reduction <maximumf>, %398, %cst_209 [1] : vector<8x8xf32> to vector<8xf32>
    %400 = vector.shape_cast %399 : vector<8xf32> to vector<8x1xf32>
    %401 = vector.broadcast %400 : vector<8x1xf32> to vector<8x8xf32>
    %402 = arith.subf %398, %401 : vector<8x8xf32>
    %403 = math.exp %402 : vector<8x8xf32>
    %cst_210 = arith.constant dense<0.000000e+00> : vector<8xf32>
    %404 = vector.multi_reduction <add>, %403, %cst_210 [1] : vector<8x8xf32> to vector<8xf32>
    %405 = vector.shape_cast %404 : vector<8xf32> to vector<8x1xf32>
    %406 = tpu.reciprocal %405 {approx = true} : vector<8x1xf32> -> vector<8x1xf32>
    %407 = vector.broadcast %406 : vector<8x1xf32> to vector<8x8xf32>
    %408 = arith.mulf %403, %407 : vector<8x8xf32>
    %409 = arith.truncf %408 : vector<8x8xf32> to vector<8x8xbf16>
    %410 = vector.broadcast %391 : vector<1x32xbf16> to vector<8x32xbf16>
    %411 = arith.mulf %133, %410 : vector<8x32xbf16>
    %cst_211 = arith.constant dense<0.000000e+00> : vector<8x32xf32>
    %412 = tpu.matmul %409, %411, %cst_211 {dimension_numbers = #tpu.dot_dimension_numbers<[1], [0], [0], [1], [0, 0, 1, 1], [], []>} : vector<8x8xbf16>, vector<8x32xbf16>, vector<8x32xf32> -> vector<8x32xf32>
    %413 = arith.addf %390, %412 : vector<8x32xf32>
    %414 = arith.truncf %413 : vector<8x32xf32> to vector<8x32xbf16>
    %cst_212 = arith.constant dense<0.000000e+00> : vector<8x32xf32>
    %415 = tpu.matmul %414, %22, %cst_212 {dimension_numbers = #tpu.dot_dimension_numbers<[1], [0], [0], [1], [0, 0, 1, 1], [], []>} : vector<8x32xbf16>, vector<32x32xbf16>, vector<8x32xf32> -> vector<8x32xf32>
    %416 = vector.broadcast %18 : vector<1x32xf32> to vector<8x32xf32>
    %417 = arith.addf %415, %416 : vector<8x32xf32>
    %418 = vector.extract_strided_slice %44 {offsets = [0, 0], sizes = [32, 32], strides = [1, 1]} : vector<64x32xbf16> to vector<32x32xbf16>
    %419 = arith.truncf %417 : vector<8x32xf32> to vector<8x32xbf16>
    %cst_213 = arith.constant dense<0.000000e+00> : vector<8x32xf32>
    %420 = tpu.matmul %419, %418, %cst_213 {dimension_numbers = #tpu.dot_dimension_numbers<[1], [0], [0], [1], [0, 0, 1, 1], [], []>} : vector<8x32xbf16>, vector<32x32xbf16>, vector<8x32xf32> -> vector<8x32xf32>
    %421 = vector.extract_strided_slice %44 {offsets = [32, 0], sizes = [32, 32], strides = [1, 1]} : vector<64x32xbf16> to vector<32x32xbf16>
    %422 = arith.truncf %311 : vector<8x32xf32> to vector<8x32xbf16>
    %cst_214 = arith.constant dense<0.000000e+00> : vector<8x32xf32>
    %423 = tpu.matmul %422, %421, %cst_214 {dimension_numbers = #tpu.dot_dimension_numbers<[1], [0], [0], [1], [0, 0, 1, 1], [], []>} : vector<8x32xbf16>, vector<32x32xbf16>, vector<8x32xf32> -> vector<8x32xf32>
    %424 = arith.addf %420, %423 : vector<8x32xf32>
    %425 = vector.broadcast %43 : vector<1x32xf32> to vector<8x32xf32>
    %426 = arith.addf %424, %425 : vector<8x32xf32>
    %427 = arith.addf %426, %86 : vector<8x32xf32>
    %cst_215 = arith.constant dense<0.000000e+00> : vector<8xf32>
    %428 = vector.multi_reduction <add>, %427, %cst_215 [1] : vector<8x32xf32> to vector<8xf32>
    %429 = vector.shape_cast %428 : vector<8xf32> to vector<8x1xf32>
    %cst_216 = arith.constant 3.200000e+01 : f32
    %430 = vector.broadcast %cst_216 : f32 to vector<8x1xf32>
    %431 = arith.divf %429, %430 : vector<8x1xf32>
    %432 = vector.broadcast %431 : vector<8x1xf32> to vector<8x32xf32>
    %433 = arith.subf %427, %432 : vector<8x32xf32>
    %434 = arith.mulf %433, %433 : vector<8x32xf32>
    %cst_217 = arith.constant dense<0.000000e+00> : vector<8xf32>
    %435 = vector.multi_reduction <add>, %434, %cst_217 [1] : vector<8x32xf32> to vector<8xf32>
    %436 = vector.shape_cast %435 : vector<8xf32> to vector<8x1xf32>
    %cst_218 = arith.constant 3.200000e+01 : f32
    %437 = vector.broadcast %cst_218 : f32 to vector<8x1xf32>
    %438 = arith.divf %436, %437 : vector<8x1xf32>
    %439 = vector.broadcast %431 : vector<8x1xf32> to vector<8x32xf32>
    %440 = arith.subf %427, %439 : vector<8x32xf32>
    %cst_219 = arith.constant 9.99999974E-6 : f32
    %441 = vector.broadcast %cst_219 : f32 to vector<8x1xf32>
    %442 = arith.addf %438, %441 : vector<8x1xf32>
    %443 = math.rsqrt %442 : vector<8x1xf32>
    %444 = vector.broadcast %443 : vector<8x1xf32> to vector<8x32xf32>
    %445 = arith.mulf %440, %444 : vector<8x32xf32>
    %446 = vector.broadcast %48 : vector<1x32xf32> to vector<8x32xf32>
    %447 = arith.mulf %445, %446 : vector<8x32xf32>
    %448 = arith.truncf %447 : vector<8x32xf32> to vector<8x32xbf16>
    %cst_220 = arith.constant dense<0.000000e+00> : vector<8x64xf32>
    %449 = tpu.matmul %448, %49, %cst_220 {dimension_numbers = #tpu.dot_dimension_numbers<[1], [0], [0], [1], [0, 0, 1, 1], [], []>} : vector<8x32xbf16>, vector<32x64xbf16>, vector<8x64xf32> -> vector<8x64xf32>
    %cst_221 = arith.constant 0.000000e+00 : f32
    %450 = vector.broadcast %cst_221 : f32 to vector<8x64xf32>
    %451 = arith.maximumf %449, %450 : vector<8x64xf32>
    %452 = arith.truncf %451 : vector<8x64xf32> to vector<8x64xbf16>
    %cst_222 = arith.constant dense<0.000000e+00> : vector<8x32xf32>
    %453 = tpu.matmul %452, %50, %cst_222 {dimension_numbers = #tpu.dot_dimension_numbers<[1], [0], [0], [1], [0, 0, 1, 1], [], []>} : vector<8x64xbf16>, vector<64x32xbf16>, vector<8x32xf32> -> vector<8x32xf32>
    %454 = arith.addf %453, %427 : vector<8x32xf32>
    %c0_223 = arith.constant 0 : index
    %c0_224 = arith.constant 0 : index
    %c0_225 = arith.constant 0 : index
    %455 = vector.load %arg65[%c0_223, %c0_224, %c0_225] : memref<1x8x32xf32, #tpu.memory_space<vmem>>, vector<1x8x32xf32>
    %456 = vector.shape_cast %455 : vector<1x8x32xf32> to vector<8x32xf32>
    %457 = vector.shape_cast %454 : vector<8x32xf32> to vector<1x8x32xf32>
    tpu.vector_store %arg65[%c0_223, %c0_224, %c0_225], %457 {strides = array<i32>} : memref<1x8x32xf32, #tpu.memory_space<vmem>>, vector<1x8x32xf32>,
    %458 = arith.truncf %90 : vector<8x32xf32> to vector<8x32xbf16>
    %cst_226 = arith.constant dense<0.000000e+00> : vector<8x32xf32>
    %459 = tpu.matmul %458, %21, %cst_226 {dimension_numbers = #tpu.dot_dimension_numbers<[1], [0], [0], [1], [0, 0, 1, 1], [], []>} : vector<8x32xbf16>, vector<32x32xbf16>, vector<8x32xf32> -> vector<8x32xf32>
    %460 = vector.broadcast %17 : vector<1x32xf32> to vector<8x32xf32>
    %461 = arith.addf %459, %460 : vector<8x32xf32>
    %462 = arith.truncf %94 : vector<8x32xf32> to vector<8x32xbf16>
    %cst_227 = arith.constant dense<0.000000e+00> : vector<8x32xf32>
    %463 = tpu.matmul %462, %24, %cst_227 {dimension_numbers = #tpu.dot_dimension_numbers<[1], [0], [0], [1], [0, 0, 1, 1], [], []>} : vector<8x32xbf16>, vector<32x32xbf16>, vector<8x32xf32> -> vector<8x32xf32>
    %464 = vector.broadcast %20 : vector<1x32xf32> to vector<8x32xf32>
    %465 = arith.addf %463, %464 : vector<8x32xf32>
    %466 = arith.truncf %461 : vector<8x32xf32> to vector<8x32xbf16>
    %467 = arith.truncf %465 : vector<8x32xf32> to vector<8x32xbf16>
    %468 = arith.addf %58, %60 : vector<8x32xf32>
    %469 = arith.truncf %468 : vector<8x32xf32> to vector<8x32xbf16>
    %cst_228 = arith.constant dense<0.000000e+00> : vector<8x32xf32>
    %470 = tpu.matmul %469, %5, %cst_228 {dimension_numbers = #tpu.dot_dimension_numbers<[1], [0], [0], [1], [0, 0, 1, 1], [], []>} : vector<8x32xbf16>, vector<32x32xbf16>, vector<8x32xf32> -> vector<8x32xf32>
    %471 = vector.broadcast %4 : vector<1x32xf32> to vector<8x32xf32>
    %472 = arith.addf %470, %471 : vector<8x32xf32>
    %473 = arith.truncf %472 : vector<8x32xf32> to vector<8x32xbf16>
    %cst_229 = arith.constant dense<0.000000e+00> : vector<8x32xf32>
    %474 = tpu.matmul %473, %23, %cst_229 {dimension_numbers = #tpu.dot_dimension_numbers<[1], [0], [0], [1], [0, 0, 1, 1], [], []>} : vector<8x32xbf16>, vector<32x32xbf16>, vector<8x32xf32> -> vector<8x32xf32>
    %475 = vector.broadcast %19 : vector<1x32xf32> to vector<8x32xf32>
    %476 = arith.addf %474, %475 : vector<8x32xf32>
    %477 = arith.truncf %476 : vector<8x32xf32> to vector<8x32xbf16>
    %cst_230 = arith.constant 0.000000e+00 : f32
    %478 = vector.broadcast %cst_230 : f32 to vector<8x32xf32>
    %479 = vector.extract_strided_slice %39 {offsets = [0, 0], sizes = [1, 32], strides = [1, 1]} : vector<4x32xbf16> to vector<1x32xbf16>
    %480 = vector.broadcast %479 : vector<1x32xbf16> to vector<8x32xbf16>
    %481 = arith.mulf %477, %480 : vector<8x32xbf16>
    %482 = vector.broadcast %479 : vector<1x32xbf16> to vector<8x32xbf16>
    %483 = arith.mulf %466, %482 : vector<8x32xbf16>
    %cst_231 = arith.constant dense<0.000000e+00> : vector<8x8xf32>
    %484 = tpu.matmul %481, %483, %cst_231 {dimension_numbers = #tpu.dot_dimension_numbers<[1], [1], [0], [0], [0, 0, 1, 0], [], []>} : vector<8x32xbf16>, vector<8x32xbf16>, vector<8x8xf32> -> vector<8x8xf32>
    %cst_232 = arith.constant 0.353553385 : f32
    %485 = vector.broadcast %cst_232 : f32 to vector<8x8xf32>
    %486 = arith.mulf %484, %485 : vector<8x8xf32>
    %cst_233 = arith.constant dense<0xFF800000> : vector<8xf32>
    %487 = vector.multi_reduction <maximumf>, %486, %cst_233 [1] : vector<8x8xf32> to vector<8xf32>
    %488 = vector.shape_cast %487 : vector<8xf32> to vector<8x1xf32>
    %489 = vector.broadcast %488 : vector<8x1xf32> to vector<8x8xf32>
    %490 = arith.subf %486, %489 : vector<8x8xf32>
    %491 = math.exp %490 : vector<8x8xf32>
    %cst_234 = arith.constant dense<0.000000e+00> : vector<8xf32>
    %492 = vector.multi_reduction <add>, %491, %cst_234 [1] : vector<8x8xf32> to vector<8xf32>
    %493 = vector.shape_cast %492 : vector<8xf32> to vector<8x1xf32>
    %494 = tpu.reciprocal %493 {approx = true} : vector<8x1xf32> -> vector<8x1xf32>
    %495 = vector.broadcast %494 : vector<8x1xf32> to vector<8x8xf32>
    %496 = arith.mulf %491, %495 : vector<8x8xf32>
    %497 = arith.truncf %496 : vector<8x8xf32> to vector<8x8xbf16>
    %498 = vector.broadcast %479 : vector<1x32xbf16> to vector<8x32xbf16>
    %499 = arith.mulf %467, %498 : vector<8x32xbf16>
    %cst_235 = arith.constant dense<0.000000e+00> : vector<8x32xf32>
    %500 = tpu.matmul %497, %499, %cst_235 {dimension_numbers = #tpu.dot_dimension_numbers<[1], [0], [0], [1], [0, 0, 1, 1], [], []>} : vector<8x8xbf16>, vector<8x32xbf16>, vector<8x32xf32> -> vector<8x32xf32>
    %501 = arith.addf %478, %500 : vector<8x32xf32>
    %502 = vector.extract_strided_slice %39 {offsets = [1, 0], sizes = [1, 32], strides = [1, 1]} : vector<4x32xbf16> to vector<1x32xbf16>
    %503 = vector.broadcast %502 : vector<1x32xbf16> to vector<8x32xbf16>
    %504 = arith.mulf %477, %503 : vector<8x32xbf16>
    %505 = vector.broadcast %502 : vector<1x32xbf16> to vector<8x32xbf16>
    %506 = arith.mulf %466, %505 : vector<8x32xbf16>
    %cst_236 = arith.constant dense<0.000000e+00> : vector<8x8xf32>
    %507 = tpu.matmul %504, %506, %cst_236 {dimension_numbers = #tpu.dot_dimension_numbers<[1], [1], [0], [0], [0, 0, 1, 0], [], []>} : vector<8x32xbf16>, vector<8x32xbf16>, vector<8x8xf32> -> vector<8x8xf32>
    %cst_237 = arith.constant 0.353553385 : f32
    %508 = vector.broadcast %cst_237 : f32 to vector<8x8xf32>
    %509 = arith.mulf %507, %508 : vector<8x8xf32>
    %cst_238 = arith.constant dense<0xFF800000> : vector<8xf32>
    %510 = vector.multi_reduction <maximumf>, %509, %cst_238 [1] : vector<8x8xf32> to vector<8xf32>
    %511 = vector.shape_cast %510 : vector<8xf32> to vector<8x1xf32>
    %512 = vector.broadcast %511 : vector<8x1xf32> to vector<8x8xf32>
    %513 = arith.subf %509, %512 : vector<8x8xf32>
    %514 = math.exp %513 : vector<8x8xf32>
    %cst_239 = arith.constant dense<0.000000e+00> : vector<8xf32>
    %515 = vector.multi_reduction <add>, %514, %cst_239 [1] : vector<8x8xf32> to vector<8xf32>
    %516 = vector.shape_cast %515 : vector<8xf32> to vector<8x1xf32>
    %517 = tpu.reciprocal %516 {approx = true} : vector<8x1xf32> -> vector<8x1xf32>
    %518 = vector.broadcast %517 : vector<8x1xf32> to vector<8x8xf32>
    %519 = arith.mulf %514, %518 : vector<8x8xf32>
    %520 = arith.truncf %519 : vector<8x8xf32> to vector<8x8xbf16>
    %521 = vector.broadcast %502 : vector<1x32xbf16> to vector<8x32xbf16>
    %522 = arith.mulf %467, %521 : vector<8x32xbf16>
    %cst_240 = arith.constant dense<0.000000e+00> : vector<8x32xf32>
    %523 = tpu.matmul %520, %522, %cst_240 {dimension_numbers = #tpu.dot_dimension_numbers<[1], [0], [0], [1], [0, 0, 1, 1], [], []>} : vector<8x8xbf16>, vector<8x32xbf16>, vector<8x32xf32> -> vector<8x32xf32>
    %524 = arith.addf %501, %523 : vector<8x32xf32>
    %525 = vector.extract_strided_slice %39 {offsets = [2, 0], sizes = [1, 32], strides = [1, 1]} : vector<4x32xbf16> to vector<1x32xbf16>
    %526 = vector.broadcast %525 : vector<1x32xbf16> to vector<8x32xbf16>
    %527 = arith.mulf %477, %526 : vector<8x32xbf16>
    %528 = vector.broadcast %525 : vector<1x32xbf16> to vector<8x32xbf16>
    %529 = arith.mulf %466, %528 : vector<8x32xbf16>
    %cst_241 = arith.constant dense<0.000000e+00> : vector<8x8xf32>
    %530 = tpu.matmul %527, %529, %cst_241 {dimension_numbers = #tpu.dot_dimension_numbers<[1], [1], [0], [0], [0, 0, 1, 0], [], []>} : vector<8x32xbf16>, vector<8x32xbf16>, vector<8x8xf32> -> vector<8x8xf32>
    %cst_242 = arith.constant 0.353553385 : f32
    %531 = vector.broadcast %cst_242 : f32 to vector<8x8xf32>
    %532 = arith.mulf %530, %531 : vector<8x8xf32>
    %cst_243 = arith.constant dense<0xFF800000> : vector<8xf32>
    %533 = vector.multi_reduction <maximumf>, %532, %cst_243 [1] : vector<8x8xf32> to vector<8xf32>
    %534 = vector.shape_cast %533 : vector<8xf32> to vector<8x1xf32>
    %535 = vector.broadcast %534 : vector<8x1xf32> to vector<8x8xf32>
    %536 = arith.subf %532, %535 : vector<8x8xf32>
    %537 = math.exp %536 : vector<8x8xf32>
    %cst_244 = arith.constant dense<0.000000e+00> : vector<8xf32>
    %538 = vector.multi_reduction <add>, %537, %cst_244 [1] : vector<8x8xf32> to vector<8xf32>
    %539 = vector.shape_cast %538 : vector<8xf32> to vector<8x1xf32>
    %540 = tpu.reciprocal %539 {approx = true} : vector<8x1xf32> -> vector<8x1xf32>
    %541 = vector.broadcast %540 : vector<8x1xf32> to vector<8x8xf32>
    %542 = arith.mulf %537, %541 : vector<8x8xf32>
    %543 = arith.truncf %542 : vector<8x8xf32> to vector<8x8xbf16>
    %544 = vector.broadcast %525 : vector<1x32xbf16> to vector<8x32xbf16>
    %545 = arith.mulf %467, %544 : vector<8x32xbf16>
    %cst_245 = arith.constant dense<0.000000e+00> : vector<8x32xf32>
    %546 = tpu.matmul %543, %545, %cst_245 {dimension_numbers = #tpu.dot_dimension_numbers<[1], [0], [0], [1], [0, 0, 1, 1], [], []>} : vector<8x8xbf16>, vector<8x32xbf16>, vector<8x32xf32> -> vector<8x32xf32>
    %547 = arith.addf %524, %546 : vector<8x32xf32>
    %548 = vector.extract_strided_slice %39 {offsets = [3, 0], sizes = [1, 32], strides = [1, 1]} : vector<4x32xbf16> to vector<1x32xbf16>
    %549 = vector.broadcast %548 : vector<1x32xbf16> to vector<8x32xbf16>
    %550 = arith.mulf %477, %549 : vector<8x32xbf16>
    %551 = vector.broadcast %548 : vector<1x32xbf16> to vector<8x32xbf16>
    %552 = arith.mulf %466, %551 : vector<8x32xbf16>
    %cst_246 = arith.constant dense<0.000000e+00> : vector<8x8xf32>
    %553 = tpu.matmul %550, %552, %cst_246 {dimension_numbers = #tpu.dot_dimension_numbers<[1], [1], [0], [0], [0, 0, 1, 0], [], []>} : vector<8x32xbf16>, vector<8x32xbf16>, vector<8x8xf32> -> vector<8x8xf32>
    %cst_247 = arith.constant 0.353553385 : f32
    %554 = vector.broadcast %cst_247 : f32 to vector<8x8xf32>
    %555 = arith.mulf %553, %554 : vector<8x8xf32>
    %cst_248 = arith.constant dense<0xFF800000> : vector<8xf32>
    %556 = vector.multi_reduction <maximumf>, %555, %cst_248 [1] : vector<8x8xf32> to vector<8xf32>
    %557 = vector.shape_cast %556 : vector<8xf32> to vector<8x1xf32>
    %558 = vector.broadcast %557 : vector<8x1xf32> to vector<8x8xf32>
    %559 = arith.subf %555, %558 : vector<8x8xf32>
    %560 = math.exp %559 : vector<8x8xf32>
    %cst_249 = arith.constant dense<0.000000e+00> : vector<8xf32>
    %561 = vector.multi_reduction <add>, %560, %cst_249 [1] : vector<8x8xf32> to vector<8xf32>
    %562 = vector.shape_cast %561 : vector<8xf32> to vector<8x1xf32>
    %563 = tpu.reciprocal %562 {approx = true} : vector<8x1xf32> -> vector<8x1xf32>
    %564 = vector.broadcast %563 : vector<8x1xf32> to vector<8x8xf32>
    %565 = arith.mulf %560, %564 : vector<8x8xf32>
    %566 = arith.truncf %565 : vector<8x8xf32> to vector<8x8xbf16>
    %567 = vector.broadcast %548 : vector<1x32xbf16> to vector<8x32xbf16>
    %568 = arith.mulf %467, %567 : vector<8x32xbf16>
    %cst_250 = arith.constant dense<0.000000e+00> : vector<8x32xf32>
    %569 = tpu.matmul %566, %568, %cst_250 {dimension_numbers = #tpu.dot_dimension_numbers<[1], [0], [0], [1], [0, 0, 1, 1], [], []>} : vector<8x8xbf16>, vector<8x32xbf16>, vector<8x32xf32> -> vector<8x32xf32>
    %570 = arith.addf %547, %569 : vector<8x32xf32>
    %571 = arith.truncf %570 : vector<8x32xf32> to vector<8x32xbf16>
    %cst_251 = arith.constant dense<0.000000e+00> : vector<8x32xf32>
    %572 = tpu.matmul %571, %22, %cst_251 {dimension_numbers = #tpu.dot_dimension_numbers<[1], [0], [0], [1], [0, 0, 1, 1], [], []>} : vector<8x32xbf16>, vector<32x32xbf16>, vector<8x32xf32> -> vector<8x32xf32>
    %573 = vector.broadcast %18 : vector<1x32xf32> to vector<8x32xf32>
    %574 = arith.addf %572, %573 : vector<8x32xf32>
    %575 = arith.truncf %115 : vector<8x32xf32> to vector<8x32xbf16>
    %cst_252 = arith.constant dense<0.000000e+00> : vector<8x32xf32>
    %576 = tpu.matmul %575, %9, %cst_252 {dimension_numbers = #tpu.dot_dimension_numbers<[1], [0], [0], [1], [0, 0, 1, 1], [], []>} : vector<8x32xbf16>, vector<32x32xbf16>, vector<8x32xf32> -> vector<8x32xf32>
    %577 = vector.broadcast %8 : vector<1x32xf32> to vector<8x32xf32>
    %578 = arith.addf %576, %577 : vector<8x32xf32>
    %579 = arith.truncf %578 : vector<8x32xf32> to vector<8x32xbf16>
    %cst_253 = arith.constant dense<0.000000e+00> : vector<8x32xf32>
    %580 = tpu.matmul %579, %23, %cst_253 {dimension_numbers = #tpu.dot_dimension_numbers<[1], [0], [0], [1], [0, 0, 1, 1], [], []>} : vector<8x32xbf16>, vector<32x32xbf16>, vector<8x32xf32> -> vector<8x32xf32>
    %581 = vector.broadcast %19 : vector<1x32xf32> to vector<8x32xf32>
    %582 = arith.addf %580, %581 : vector<8x32xf32>
    %583 = arith.truncf %582 : vector<8x32xf32> to vector<8x32xbf16>
    %cst_254 = arith.constant 0.000000e+00 : f32
    %584 = vector.broadcast %cst_254 : f32 to vector<8x32xf32>
    %585 = vector.extract_strided_slice %39 {offsets = [0, 0], sizes = [1, 32], strides = [1, 1]} : vector<4x32xbf16> to vector<1x32xbf16>
    %586 = vector.broadcast %585 : vector<1x32xbf16> to vector<8x32xbf16>
    %587 = arith.mulf %583, %586 : vector<8x32xbf16>
    %588 = vector.broadcast %585 : vector<1x32xbf16> to vector<8x32xbf16>
    %589 = arith.mulf %132, %588 : vector<8x32xbf16>
    %cst_255 = arith.constant dense<0.000000e+00> : vector<8x8xf32>
    %590 = tpu.matmul %587, %589, %cst_255 {dimension_numbers = #tpu.dot_dimension_numbers<[1], [1], [0], [0], [0, 0, 1, 0], [], []>} : vector<8x32xbf16>, vector<8x32xbf16>, vector<8x8xf32> -> vector<8x8xf32>
    %cst_256 = arith.constant 0.353553385 : f32
    %591 = vector.broadcast %cst_256 : f32 to vector<8x8xf32>
    %592 = arith.mulf %590, %591 : vector<8x8xf32>
    %cst_257 = arith.constant dense<0xFF800000> : vector<8xf32>
    %593 = vector.multi_reduction <maximumf>, %592, %cst_257 [1] : vector<8x8xf32> to vector<8xf32>
    %594 = vector.shape_cast %593 : vector<8xf32> to vector<8x1xf32>
    %595 = vector.broadcast %594 : vector<8x1xf32> to vector<8x8xf32>
    %596 = arith.subf %592, %595 : vector<8x8xf32>
    %597 = math.exp %596 : vector<8x8xf32>
    %cst_258 = arith.constant dense<0.000000e+00> : vector<8xf32>
    %598 = vector.multi_reduction <add>, %597, %cst_258 [1] : vector<8x8xf32> to vector<8xf32>
    %599 = vector.shape_cast %598 : vector<8xf32> to vector<8x1xf32>
    %600 = tpu.reciprocal %599 {approx = true} : vector<8x1xf32> -> vector<8x1xf32>
    %601 = vector.broadcast %600 : vector<8x1xf32> to vector<8x8xf32>
    %602 = arith.mulf %597, %601 : vector<8x8xf32>
    %603 = arith.truncf %602 : vector<8x8xf32> to vector<8x8xbf16>
    %604 = vector.broadcast %585 : vector<1x32xbf16> to vector<8x32xbf16>
    %605 = arith.mulf %133, %604 : vector<8x32xbf16>
    %cst_259 = arith.constant dense<0.000000e+00> : vector<8x32xf32>
    %606 = tpu.matmul %603, %605, %cst_259 {dimension_numbers = #tpu.dot_dimension_numbers<[1], [0], [0], [1], [0, 0, 1, 1], [], []>} : vector<8x8xbf16>, vector<8x32xbf16>, vector<8x32xf32> -> vector<8x32xf32>
    %607 = arith.addf %584, %606 : vector<8x32xf32>
    %608 = vector.extract_strided_slice %39 {offsets = [1, 0], sizes = [1, 32], strides = [1, 1]} : vector<4x32xbf16> to vector<1x32xbf16>
    %609 = vector.broadcast %608 : vector<1x32xbf16> to vector<8x32xbf16>
    %610 = arith.mulf %583, %609 : vector<8x32xbf16>
    %611 = vector.broadcast %608 : vector<1x32xbf16> to vector<8x32xbf16>
    %612 = arith.mulf %132, %611 : vector<8x32xbf16>
    %cst_260 = arith.constant dense<0.000000e+00> : vector<8x8xf32>
    %613 = tpu.matmul %610, %612, %cst_260 {dimension_numbers = #tpu.dot_dimension_numbers<[1], [1], [0], [0], [0, 0, 1, 0], [], []>} : vector<8x32xbf16>, vector<8x32xbf16>, vector<8x8xf32> -> vector<8x8xf32>
    %cst_261 = arith.constant 0.353553385 : f32
    %614 = vector.broadcast %cst_261 : f32 to vector<8x8xf32>
    %615 = arith.mulf %613, %614 : vector<8x8xf32>
    %cst_262 = arith.constant dense<0xFF800000> : vector<8xf32>
    %616 = vector.multi_reduction <maximumf>, %615, %cst_262 [1] : vector<8x8xf32> to vector<8xf32>
    %617 = vector.shape_cast %616 : vector<8xf32> to vector<8x1xf32>
    %618 = vector.broadcast %617 : vector<8x1xf32> to vector<8x8xf32>
    %619 = arith.subf %615, %618 : vector<8x8xf32>
    %620 = math.exp %619 : vector<8x8xf32>
    %cst_263 = arith.constant dense<0.000000e+00> : vector<8xf32>
    %621 = vector.multi_reduction <add>, %620, %cst_263 [1] : vector<8x8xf32> to vector<8xf32>
    %622 = vector.shape_cast %621 : vector<8xf32> to vector<8x1xf32>
    %623 = tpu.reciprocal %622 {approx = true} : vector<8x1xf32> -> vector<8x1xf32>
    %624 = vector.broadcast %623 : vector<8x1xf32> to vector<8x8xf32>
    %625 = arith.mulf %620, %624 : vector<8x8xf32>
    %626 = arith.truncf %625 : vector<8x8xf32> to vector<8x8xbf16>
    %627 = vector.broadcast %608 : vector<1x32xbf16> to vector<8x32xbf16>
    %628 = arith.mulf %133, %627 : vector<8x32xbf16>
    %cst_264 = arith.constant dense<0.000000e+00> : vector<8x32xf32>
    %629 = tpu.matmul %626, %628, %cst_264 {dimension_numbers = #tpu.dot_dimension_numbers<[1], [0], [0], [1], [0, 0, 1, 1], [], []>} : vector<8x8xbf16>, vector<8x32xbf16>, vector<8x32xf32> -> vector<8x32xf32>
    %630 = arith.addf %607, %629 : vector<8x32xf32>
    %631 = vector.extract_strided_slice %39 {offsets = [2, 0], sizes = [1, 32], strides = [1, 1]} : vector<4x32xbf16> to vector<1x32xbf16>
    %632 = vector.broadcast %631 : vector<1x32xbf16> to vector<8x32xbf16>
    %633 = arith.mulf %583, %632 : vector<8x32xbf16>
    %634 = vector.broadcast %631 : vector<1x32xbf16> to vector<8x32xbf16>
    %635 = arith.mulf %132, %634 : vector<8x32xbf16>
    %cst_265 = arith.constant dense<0.000000e+00> : vector<8x8xf32>
    %636 = tpu.matmul %633, %635, %cst_265 {dimension_numbers = #tpu.dot_dimension_numbers<[1], [1], [0], [0], [0, 0, 1, 0], [], []>} : vector<8x32xbf16>, vector<8x32xbf16>, vector<8x8xf32> -> vector<8x8xf32>
    %cst_266 = arith.constant 0.353553385 : f32
    %637 = vector.broadcast %cst_266 : f32 to vector<8x8xf32>
    %638 = arith.mulf %636, %637 : vector<8x8xf32>
    %cst_267 = arith.constant dense<0xFF800000> : vector<8xf32>
    %639 = vector.multi_reduction <maximumf>, %638, %cst_267 [1] : vector<8x8xf32> to vector<8xf32>
    %640 = vector.shape_cast %639 : vector<8xf32> to vector<8x1xf32>
    %641 = vector.broadcast %640 : vector<8x1xf32> to vector<8x8xf32>
    %642 = arith.subf %638, %641 : vector<8x8xf32>
    %643 = math.exp %642 : vector<8x8xf32>
    %cst_268 = arith.constant dense<0.000000e+00> : vector<8xf32>
    %644 = vector.multi_reduction <add>, %643, %cst_268 [1] : vector<8x8xf32> to vector<8xf32>
    %645 = vector.shape_cast %644 : vector<8xf32> to vector<8x1xf32>
    %646 = tpu.reciprocal %645 {approx = true} : vector<8x1xf32> -> vector<8x1xf32>
    %647 = vector.broadcast %646 : vector<8x1xf32> to vector<8x8xf32>
    %648 = arith.mulf %643, %647 : vector<8x8xf32>
    %649 = arith.truncf %648 : vector<8x8xf32> to vector<8x8xbf16>
    %650 = vector.broadcast %631 : vector<1x32xbf16> to vector<8x32xbf16>
    %651 = arith.mulf %133, %650 : vector<8x32xbf16>
    %cst_269 = arith.constant dense<0.000000e+00> : vector<8x32xf32>
    %652 = tpu.matmul %649, %651, %cst_269 {dimension_numbers = #tpu.dot_dimension_numbers<[1], [0], [0], [1], [0, 0, 1, 1], [], []>} : vector<8x8xbf16>, vector<8x32xbf16>, vector<8x32xf32> -> vector<8x32xf32>
    %653 = arith.addf %630, %652 : vector<8x32xf32>
    %654 = vector.extract_strided_slice %39 {offsets = [3, 0], sizes = [1, 32], strides = [1, 1]} : vector<4x32xbf16> to vector<1x32xbf16>
    %655 = vector.broadcast %654 : vector<1x32xbf16> to vector<8x32xbf16>
    %656 = arith.mulf %583, %655 : vector<8x32xbf16>
    %657 = vector.broadcast %654 : vector<1x32xbf16> to vector<8x32xbf16>
    %658 = arith.mulf %132, %657 : vector<8x32xbf16>
    %cst_270 = arith.constant dense<0.000000e+00> : vector<8x8xf32>
    %659 = tpu.matmul %656, %658, %cst_270 {dimension_numbers = #tpu.dot_dimension_numbers<[1], [1], [0], [0], [0, 0, 1, 0], [], []>} : vector<8x32xbf16>, vector<8x32xbf16>, vector<8x8xf32> -> vector<8x8xf32>
    %cst_271 = arith.constant 0.353553385 : f32
    %660 = vector.broadcast %cst_271 : f32 to vector<8x8xf32>
    %661 = arith.mulf %659, %660 : vector<8x8xf32>
    %cst_272 = arith.constant dense<0xFF800000> : vector<8xf32>
    %662 = vector.multi_reduction <maximumf>, %661, %cst_272 [1] : vector<8x8xf32> to vector<8xf32>
    %663 = vector.shape_cast %662 : vector<8xf32> to vector<8x1xf32>
    %664 = vector.broadcast %663 : vector<8x1xf32> to vector<8x8xf32>
    %665 = arith.subf %661, %664 : vector<8x8xf32>
    %666 = math.exp %665 : vector<8x8xf32>
    %cst_273 = arith.constant dense<0.000000e+00> : vector<8xf32>
    %667 = vector.multi_reduction <add>, %666, %cst_273 [1] : vector<8x8xf32> to vector<8xf32>
    %668 = vector.shape_cast %667 : vector<8xf32> to vector<8x1xf32>
    %669 = tpu.reciprocal %668 {approx = true} : vector<8x1xf32> -> vector<8x1xf32>
    %670 = vector.broadcast %669 : vector<8x1xf32> to vector<8x8xf32>
    %671 = arith.mulf %666, %670 : vector<8x8xf32>
    %672 = arith.truncf %671 : vector<8x8xf32> to vector<8x8xbf16>
    %673 = vector.broadcast %654 : vector<1x32xbf16> to vector<8x32xbf16>
    %674 = arith.mulf %133, %673 : vector<8x32xbf16>
    %cst_274 = arith.constant dense<0.000000e+00> : vector<8x32xf32>
    %675 = tpu.matmul %672, %674, %cst_274 {dimension_numbers = #tpu.dot_dimension_numbers<[1], [0], [0], [1], [0, 0, 1, 1], [], []>} : vector<8x8xbf16>, vector<8x32xbf16>, vector<8x32xf32> -> vector<8x32xf32>
    %676 = arith.addf %653, %675 : vector<8x32xf32>
    %677 = arith.truncf %676 : vector<8x32xf32> to vector<8x32xbf16>
    %cst_275 = arith.constant dense<0.000000e+00> : vector<8x32xf32>
    %678 = tpu.matmul %677, %22, %cst_275 {dimension_numbers = #tpu.dot_dimension_numbers<[1], [0], [0], [1], [0, 0, 1, 1], [], []>} : vector<8x32xbf16>, vector<32x32xbf16>, vector<8x32xf32> -> vector<8x32xf32>
    %679 = vector.broadcast %18 : vector<1x32xf32> to vector<8x32xf32>
    %680 = arith.addf %678, %679 : vector<8x32xf32>
    %681 = vector.extract_strided_slice %42 {offsets = [0, 0], sizes = [32, 32], strides = [1, 1]} : vector<64x32xbf16> to vector<32x32xbf16>
    %682 = arith.truncf %680 : vector<8x32xf32> to vector<8x32xbf16>
    %cst_276 = arith.constant dense<0.000000e+00> : vector<8x32xf32>
    %683 = tpu.matmul %682, %681, %cst_276 {dimension_numbers = #tpu.dot_dimension_numbers<[1], [0], [0], [1], [0, 0, 1, 1], [], []>} : vector<8x32xbf16>, vector<32x32xbf16>, vector<8x32xf32> -> vector<8x32xf32>
    %684 = vector.extract_strided_slice %42 {offsets = [32, 0], sizes = [32, 32], strides = [1, 1]} : vector<64x32xbf16> to vector<32x32xbf16>
    %685 = arith.truncf %574 : vector<8x32xf32> to vector<8x32xbf16>
    %cst_277 = arith.constant dense<0.000000e+00> : vector<8x32xf32>
    %686 = tpu.matmul %685, %684, %cst_277 {dimension_numbers = #tpu.dot_dimension_numbers<[1], [0], [0], [1], [0, 0, 1, 1], [], []>} : vector<8x32xbf16>, vector<32x32xbf16>, vector<8x32xf32> -> vector<8x32xf32>
    %687 = arith.addf %683, %686 : vector<8x32xf32>
    %688 = vector.broadcast %41 : vector<1x32xf32> to vector<8x32xf32>
    %689 = arith.addf %687, %688 : vector<8x32xf32>
    %690 = arith.truncf %689 : vector<8x32xf32> to vector<8x32xbf16>
    %cst_278 = arith.constant dense<0.000000e+00> : vector<8x32xf32>
    %691 = tpu.matmul %690, %26, %cst_278 {dimension_numbers = #tpu.dot_dimension_numbers<[1], [0], [0], [1], [0, 0, 1, 1], [], []>} : vector<8x32xbf16>, vector<32x32xbf16>, vector<8x32xf32> -> vector<8x32xf32>
    %692 = arith.addf %691, %29 : vector<8x32xf32>
    %693 = arith.subf %692, %31 : vector<8x32xf32>
    %694 = arith.negf %693 : vector<8x32xf32>
    %695 = math.exp %694 : vector<8x32xf32>
    %cst_279 = arith.constant 1.000000e+00 : f32
    %696 = vector.broadcast %cst_279 : f32 to vector<8x32xf32>
    %697 = arith.addf %696, %695 : vector<8x32xf32>
    %698 = arith.divf %696, %697 : vector<8x32xf32>
    %699 = arith.truncf %689 : vector<8x32xf32> to vector<8x32xbf16>
    %cst_280 = arith.constant dense<0.000000e+00> : vector<8x32xf32>
    %700 = tpu.matmul %699, %25, %cst_280 {dimension_numbers = #tpu.dot_dimension_numbers<[1], [0], [0], [1], [0, 0, 1, 1], [], []>} : vector<8x32xbf16>, vector<32x32xbf16>, vector<8x32xf32> -> vector<8x32xf32>
    %701 = arith.addf %700, %28 : vector<8x32xf32>
    %702 = arith.addf %701, %31 : vector<8x32xf32>
    %703 = arith.negf %702 : vector<8x32xf32>
    %704 = math.exp %703 : vector<8x32xf32>
    %cst_281 = arith.constant 1.000000e+00 : f32
    %705 = vector.broadcast %cst_281 : f32 to vector<8x32xf32>
    %706 = arith.addf %705, %704 : vector<8x32xf32>
    %707 = arith.divf %705, %706 : vector<8x32xf32>
    %708 = arith.truncf %689 : vector<8x32xf32> to vector<8x32xbf16>
    %cst_282 = arith.constant dense<0.000000e+00> : vector<8x32xf32>
    %709 = tpu.matmul %708, %27, %cst_282 {dimension_numbers = #tpu.dot_dimension_numbers<[1], [0], [0], [1], [0, 0, 1, 1], [], []>} : vector<8x32xbf16>, vector<32x32xbf16>, vector<8x32xf32> -> vector<8x32xf32>
    %710 = arith.addf %709, %30 : vector<8x32xf32>
    %711 = math.tanh %710 : vector<8x32xf32>
    %712 = arith.mulf %707, %58 : vector<8x32xf32>
    %713 = arith.mulf %698, %711 : vector<8x32xf32>
    %714 = arith.addf %712, %713 : vector<8x32xf32>
    %cst_283 = arith.constant dense<0.000000e+00> : vector<8xf32>
    %715 = vector.multi_reduction <add>, %714, %cst_283 [1] : vector<8x32xf32> to vector<8xf32>
    %716 = vector.shape_cast %715 : vector<8xf32> to vector<8x1xf32>
    %cst_284 = arith.constant 3.200000e+01 : f32
    %717 = vector.broadcast %cst_284 : f32 to vector<8x1xf32>
    %718 = arith.divf %716, %717 : vector<8x1xf32>
    %719 = vector.broadcast %718 : vector<8x1xf32> to vector<8x32xf32>
    %720 = arith.subf %714, %719 : vector<8x32xf32>
    %721 = arith.mulf %720, %720 : vector<8x32xf32>
    %cst_285 = arith.constant dense<0.000000e+00> : vector<8xf32>
    %722 = vector.multi_reduction <add>, %721, %cst_285 [1] : vector<8x32xf32> to vector<8xf32>
    %723 = vector.shape_cast %722 : vector<8xf32> to vector<8x1xf32>
    %cst_286 = arith.constant 3.200000e+01 : f32
    %724 = vector.broadcast %cst_286 : f32 to vector<8x1xf32>
    %725 = arith.divf %723, %724 : vector<8x1xf32>
    %726 = vector.broadcast %718 : vector<8x1xf32> to vector<8x32xf32>
    %727 = arith.subf %714, %726 : vector<8x32xf32>
    %cst_287 = arith.constant 9.99999974E-6 : f32
    %728 = vector.broadcast %cst_287 : f32 to vector<8x1xf32>
    %729 = arith.addf %725, %728 : vector<8x1xf32>
    %730 = math.rsqrt %729 : vector<8x1xf32>
    %731 = vector.broadcast %730 : vector<8x1xf32> to vector<8x32xf32>
    %732 = arith.mulf %727, %731 : vector<8x32xf32>
    %733 = vector.broadcast %45 : vector<1x32xf32> to vector<8x32xf32>
    %734 = arith.mulf %732, %733 : vector<8x32xf32>
    %735 = arith.truncf %734 : vector<8x32xf32> to vector<8x32xbf16>
    %cst_288 = arith.constant dense<0.000000e+00> : vector<8x64xf32>
    %736 = tpu.matmul %735, %46, %cst_288 {dimension_numbers = #tpu.dot_dimension_numbers<[1], [0], [0], [1], [0, 0, 1, 1], [], []>} : vector<8x32xbf16>, vector<32x64xbf16>, vector<8x64xf32> -> vector<8x64xf32>
    %cst_289 = arith.constant 0.000000e+00 : f32
    %737 = vector.broadcast %cst_289 : f32 to vector<8x64xf32>
    %738 = arith.maximumf %736, %737 : vector<8x64xf32>
    %739 = arith.truncf %738 : vector<8x64xf32> to vector<8x64xbf16>
    %cst_290 = arith.constant dense<0.000000e+00> : vector<8x32xf32>
    %740 = tpu.matmul %739, %47, %cst_290 {dimension_numbers = #tpu.dot_dimension_numbers<[1], [0], [0], [1], [0, 0, 1, 1], [], []>} : vector<8x64xbf16>, vector<64x32xbf16>, vector<8x32xf32> -> vector<8x32xf32>
    %741 = arith.truncf %740 : vector<8x32xf32> to vector<8x32xbf16>
    %cst_291 = arith.constant dense<0.000000e+00> : vector<8x32xf32>
    %742 = tpu.matmul %741, %33, %cst_291 {dimension_numbers = #tpu.dot_dimension_numbers<[1], [0], [0], [1], [0, 0, 1, 1], [], []>} : vector<8x32xbf16>, vector<32x32xbf16>, vector<8x32xf32> -> vector<8x32xf32>
    %743 = arith.addf %742, %36 : vector<8x32xf32>
    %744 = arith.subf %743, %38 : vector<8x32xf32>
    %745 = arith.negf %744 : vector<8x32xf32>
    %746 = math.exp %745 : vector<8x32xf32>
    %cst_292 = arith.constant 1.000000e+00 : f32
    %747 = vector.broadcast %cst_292 : f32 to vector<8x32xf32>
    %748 = arith.addf %747, %746 : vector<8x32xf32>
    %749 = arith.divf %747, %748 : vector<8x32xf32>
    %750 = arith.truncf %740 : vector<8x32xf32> to vector<8x32xbf16>
    %cst_293 = arith.constant dense<0.000000e+00> : vector<8x32xf32>
    %751 = tpu.matmul %750, %32, %cst_293 {dimension_numbers = #tpu.dot_dimension_numbers<[1], [0], [0], [1], [0, 0, 1, 1], [], []>} : vector<8x32xbf16>, vector<32x32xbf16>, vector<8x32xf32> -> vector<8x32xf32>
    %752 = arith.addf %751, %35 : vector<8x32xf32>
    %753 = arith.addf %752, %38 : vector<8x32xf32>
    %754 = arith.negf %753 : vector<8x32xf32>
    %755 = math.exp %754 : vector<8x32xf32>
    %cst_294 = arith.constant 1.000000e+00 : f32
    %756 = vector.broadcast %cst_294 : f32 to vector<8x32xf32>
    %757 = arith.addf %756, %755 : vector<8x32xf32>
    %758 = arith.divf %756, %757 : vector<8x32xf32>
    %759 = arith.truncf %740 : vector<8x32xf32> to vector<8x32xbf16>
    %cst_295 = arith.constant dense<0.000000e+00> : vector<8x32xf32>
    %760 = tpu.matmul %759, %34, %cst_295 {dimension_numbers = #tpu.dot_dimension_numbers<[1], [0], [0], [1], [0, 0, 1, 1], [], []>} : vector<8x32xbf16>, vector<32x32xbf16>, vector<8x32xf32> -> vector<8x32xf32>
    %761 = arith.addf %760, %37 : vector<8x32xf32>
    %762 = math.tanh %761 : vector<8x32xf32>
    %763 = arith.mulf %758, %714 : vector<8x32xf32>
    %764 = arith.mulf %749, %762 : vector<8x32xf32>
    %765 = arith.addf %763, %764 : vector<8x32xf32>
    %c0_296 = arith.constant 0 : index
    %c0_297 = arith.constant 0 : index
    %c0_298 = arith.constant 0 : index
    %766 = vector.load %arg66[%c0_296, %c0_297, %c0_298] : memref<1x8x32xf32, #tpu.memory_space<vmem>>, vector<1x8x32xf32>
    %767 = vector.shape_cast %766 : vector<1x8x32xf32> to vector<8x32xf32>
    %768 = vector.shape_cast %765 : vector<8x32xf32> to vector<1x8x32xf32>
    tpu.vector_store %arg66[%c0_296, %c0_297, %c0_298], %768 {strides = array<i32>} : memref<1x8x32xf32, #tpu.memory_space<vmem>>, vector<1x8x32xf32>,
    return
  }
  func.func @transform_0(%arg0: i32) -> (i32, i32, i32) {
    %c0_i32 = arith.constant 0 : i32
    %c0_i32_0 = arith.constant 0 : i32
    %c0_i32_1 = arith.constant 0 : i32
    return %arg0, %c0_i32, %c0_i32_0 : i32, i32, i32
  }
  func.func @transform_1(%arg0: i32) -> (i32, i32, i32) {
    %c0_i32 = arith.constant 0 : i32
    %c0_i32_0 = arith.constant 0 : i32
    %c0_i32_1 = arith.constant 0 : i32
    return %arg0, %c0_i32, %c0_i32_0 : i32, i32, i32
  }
  func.func @transform_2(%arg0: i32) -> (i32, i32, i32) {
    %c0_i32 = arith.constant 0 : i32
    %c0_i32_0 = arith.constant 0 : i32
    %c0_i32_1 = arith.constant 0 : i32
    return %arg0, %c0_i32, %c0_i32_0 : i32, i32, i32
  }
  func.func @transform_3(%arg0: i32) -> (i32, i32) {
    %c0_i32 = arith.constant 0 : i32
    %c0_i32_0 = arith.constant 0 : i32
    %c0_i32_1 = arith.constant 0 : i32
    return %c0_i32, %c0_i32_0 : i32, i32
  }
  func.func @transform_4(%arg0: i32) -> (i32, i32) {
    %c0_i32 = arith.constant 0 : i32
    %c0_i32_0 = arith.constant 0 : i32
    %c0_i32_1 = arith.constant 0 : i32
    return %c0_i32, %c0_i32_0 : i32, i32
  }
  func.func @transform_5(%arg0: i32) -> (i32, i32) {
    %c0_i32 = arith.constant 0 : i32
    %c0_i32_0 = arith.constant 0 : i32
    %c0_i32_1 = arith.constant 0 : i32
    return %c0_i32, %c0_i32_0 : i32, i32
  }
  func.func @transform_6(%arg0: i32) -> (i32, i32) {
    %c0_i32 = arith.constant 0 : i32
    %c0_i32_0 = arith.constant 0 : i32
    %c0_i32_1 = arith.constant 0 : i32
    return %c0_i32, %c0_i32_0 : i32, i32
  }
  func.func @transform_7(%arg0: i32) -> (i32, i32) {
    %c0_i32 = arith.constant 0 : i32
    %c0_i32_0 = arith.constant 0 : i32
    %c0_i32_1 = arith.constant 0 : i32
    return %c0_i32, %c0_i32_0 : i32, i32
  }
  func.func @transform_8(%arg0: i32) -> (i32, i32) {
    %c0_i32 = arith.constant 0 : i32
    %c0_i32_0 = arith.constant 0 : i32
    %c0_i32_1 = arith.constant 0 : i32
    return %c0_i32, %c0_i32_0 : i32, i32
  }
  func.func @transform_9(%arg0: i32) -> (i32, i32) {
    %c0_i32 = arith.constant 0 : i32
    %c0_i32_0 = arith.constant 0 : i32
    %c0_i32_1 = arith.constant 0 : i32
    return %c0_i32, %c0_i32_0 : i32, i32
  }
  func.func @transform_10(%arg0: i32) -> (i32, i32) {
    %c0_i32 = arith.constant 0 : i32
    %c0_i32_0 = arith.constant 0 : i32
    %c0_i32_1 = arith.constant 0 : i32
    return %c0_i32, %c0_i32_0 : i32, i32
  }
  func.func @transform_11(%arg0: i32) -> (i32, i32) {
    %c0_i32 = arith.constant 0 : i32
    %c0_i32_0 = arith.constant 0 : i32
    %c0_i32_1 = arith.constant 0 : i32
    return %c0_i32, %c0_i32_0 : i32, i32
  }
  func.func @transform_12(%arg0: i32) -> (i32, i32) {
    %c0_i32 = arith.constant 0 : i32
    %c0_i32_0 = arith.constant 0 : i32
    %c0_i32_1 = arith.constant 0 : i32
    return %c0_i32, %c0_i32_0 : i32, i32
  }
  func.func @transform_13(%arg0: i32) -> (i32, i32) {
    %c0_i32 = arith.constant 0 : i32
    %c0_i32_0 = arith.constant 0 : i32
    %c0_i32_1 = arith.constant 0 : i32
    return %c0_i32, %c0_i32_0 : i32, i32
  }
  func.func @transform_14(%arg0: i32) -> (i32, i32) {
    %c0_i32 = arith.constant 0 : i32
    %c0_i32_0 = arith.constant 0 : i32
    %c0_i32_1 = arith.constant 0 : i32
    return %c0_i32, %c0_i32_0 : i32, i32
  }
  func.func @transform_15(%arg0: i32) -> (i32, i32) {
    %c0_i32 = arith.constant 0 : i32
    %c0_i32_0 = arith.constant 0 : i32
    %c0_i32_1 = arith.constant 0 : i32
    return %c0_i32, %c0_i32_0 : i32, i32
  }
  func.func @transform_16(%arg0: i32) -> (i32, i32) {
    %c0_i32 = arith.constant 0 : i32
    %c0_i32_0 = arith.constant 0 : i32
    %c0_i32_1 = arith.constant 0 : i32
    return %c0_i32, %c0_i32_0 : i32, i32
  }
  func.func @transform_17(%arg0: i32) -> (i32, i32) {
    %c0_i32 = arith.constant 0 : i32
    %c0_i32_0 = arith.constant 0 : i32
    %c0_i32_1 = arith.constant 0 : i32
    return %c0_i32, %c0_i32_0 : i32, i32
  }
  func.func @transform_18(%arg0: i32) -> (i32, i32) {
    %c0_i32 = arith.constant 0 : i32
    %c0_i32_0 = arith.constant 0 : i32
    %c0_i32_1 = arith.constant 0 : i32
    return %c0_i32, %c0_i32_0 : i32, i32
  }
  func.func @transform_19(%arg0: i32) -> (i32, i32) {
    %c0_i32 = arith.constant 0 : i32
    %c0_i32_0 = arith.constant 0 : i32
    %c0_i32_1 = arith.constant 0 : i32
    return %c0_i32, %c0_i32_0 : i32, i32
  }
  func.func @transform_20(%arg0: i32) -> (i32, i32) {
    %c0_i32 = arith.constant 0 : i32
    %c0_i32_0 = arith.constant 0 : i32
    %c0_i32_1 = arith.constant 0 : i32
    return %c0_i32, %c0_i32_0 : i32, i32
  }
  func.func @transform_21(%arg0: i32) -> (i32, i32) {
    %c0_i32 = arith.constant 0 : i32
    %c0_i32_0 = arith.constant 0 : i32
    %c0_i32_1 = arith.constant 0 : i32
    return %c0_i32, %c0_i32_0 : i32, i32
  }
  func.func @transform_22(%arg0: i32) -> (i32, i32) {
    %c0_i32 = arith.constant 0 : i32
    %c0_i32_0 = arith.constant 0 : i32
    %c0_i32_1 = arith.constant 0 : i32
    return %c0_i32, %c0_i32_0 : i32, i32
  }
  func.func @transform_23(%arg0: i32) -> (i32, i32) {
    %c0_i32 = arith.constant 0 : i32
    %c0_i32_0 = arith.constant 0 : i32
    %c0_i32_1 = arith.constant 0 : i32
    return %c0_i32, %c0_i32_0 : i32, i32
  }
  func.func @transform_24(%arg0: i32) -> (i32, i32) {
    %c0_i32 = arith.constant 0 : i32
    %c0_i32_0 = arith.constant 0 : i32
    %c0_i32_1 = arith.constant 0 : i32
    return %c0_i32, %c0_i32_0 : i32, i32
  }
  func.func @transform_25(%arg0: i32) -> (i32, i32) {
    %c0_i32 = arith.constant 0 : i32
    %c0_i32_0 = arith.constant 0 : i32
    %c0_i32_1 = arith.constant 0 : i32
    return %c0_i32, %c0_i32_0 : i32, i32
  }
  func.func @transform_26(%arg0: i32) -> (i32, i32) {
    %c0_i32 = arith.constant 0 : i32
    %c0_i32_0 = arith.constant 0 : i32
    %c0_i32_1 = arith.constant 0 : i32
    return %c0_i32, %c0_i32_0 : i32, i32
  }
  func.func @transform_27(%arg0: i32) -> (i32, i32) {
    %c0_i32 = arith.constant 0 : i32
    %c0_i32_0 = arith.constant 0 : i32
    %c0_i32_1 = arith.constant 0 : i32
    return %c0_i32, %c0_i32_0 : i32, i32
  }
  func.func @transform_28(%arg0: i32) -> (i32, i32) {
    %c0_i32 = arith.constant 0 : i32
    %c0_i32_0 = arith.constant 0 : i32
    %c0_i32_1 = arith.constant 0 : i32
    return %c0_i32, %c0_i32_0 : i32, i32
  }
  func.func @transform_29(%arg0: i32) -> (i32, i32) {
    %c0_i32 = arith.constant 0 : i32
    %c0_i32_0 = arith.constant 0 : i32
    %c0_i32_1 = arith.constant 0 : i32
    return %c0_i32, %c0_i32_0 : i32, i32
  }
  func.func @transform_30(%arg0: i32) -> (i32, i32) {
    %c0_i32 = arith.constant 0 : i32
    %c0_i32_0 = arith.constant 0 : i32
    %c0_i32_1 = arith.constant 0 : i32
    return %c0_i32, %c0_i32_0 : i32, i32
  }
  func.func @transform_31(%arg0: i32) -> (i32, i32) {
    %c0_i32 = arith.constant 0 : i32
    %c0_i32_0 = arith.constant 0 : i32
    %c0_i32_1 = arith.constant 0 : i32
    return %c0_i32, %c0_i32_0 : i32, i32
  }
  func.func @transform_32(%arg0: i32) -> (i32, i32) {
    %c0_i32 = arith.constant 0 : i32
    %c0_i32_0 = arith.constant 0 : i32
    %c0_i32_1 = arith.constant 0 : i32
    return %c0_i32, %c0_i32_0 : i32, i32
  }
  func.func @transform_33(%arg0: i32) -> (i32, i32) {
    %c0_i32 = arith.constant 0 : i32
    %c0_i32_0 = arith.constant 0 : i32
    %c0_i32_1 = arith.constant 0 : i32
    return %c0_i32, %c0_i32_0 : i32, i32
  }
  func.func @transform_34(%arg0: i32) -> (i32, i32) {
    %c0_i32 = arith.constant 0 : i32
    %c0_i32_0 = arith.constant 0 : i32
    %c0_i32_1 = arith.constant 0 : i32
    return %c0_i32, %c0_i32_0 : i32, i32
  }
  func.func @transform_35(%arg0: i32) -> (i32, i32) {
    %c0_i32 = arith.constant 0 : i32
    %c0_i32_0 = arith.constant 0 : i32
    %c0_i32_1 = arith.constant 0 : i32
    return %c0_i32, %c0_i32_0 : i32, i32
  }
  func.func @transform_36(%arg0: i32) -> (i32, i32) {
    %c0_i32 = arith.constant 0 : i32
    %c0_i32_0 = arith.constant 0 : i32
    %c0_i32_1 = arith.constant 0 : i32
    return %c0_i32, %c0_i32_0 : i32, i32
  }
  func.func @transform_37(%arg0: i32) -> (i32, i32) {
    %c0_i32 = arith.constant 0 : i32
    %c0_i32_0 = arith.constant 0 : i32
    %c0_i32_1 = arith.constant 0 : i32
    return %c0_i32, %c0_i32_0 : i32, i32
  }
  func.func @transform_38(%arg0: i32) -> (i32, i32) {
    %c0_i32 = arith.constant 0 : i32
    %c0_i32_0 = arith.constant 0 : i32
    %c0_i32_1 = arith.constant 0 : i32
    return %c0_i32, %c0_i32_0 : i32, i32
  }
  func.func @transform_39(%arg0: i32) -> (i32, i32) {
    %c0_i32 = arith.constant 0 : i32
    %c0_i32_0 = arith.constant 0 : i32
    %c0_i32_1 = arith.constant 0 : i32
    return %c0_i32, %c0_i32_0 : i32, i32
  }
  func.func @transform_40(%arg0: i32) -> (i32, i32) {
    %c0_i32 = arith.constant 0 : i32
    %c0_i32_0 = arith.constant 0 : i32
    %c0_i32_1 = arith.constant 0 : i32
    return %c0_i32, %c0_i32_0 : i32, i32
  }
  func.func @transform_41(%arg0: i32) -> (i32, i32) {
    %c0_i32 = arith.constant 0 : i32
    %c0_i32_0 = arith.constant 0 : i32
    %c0_i32_1 = arith.constant 0 : i32
    return %c0_i32, %c0_i32_0 : i32, i32
  }
  func.func @transform_42(%arg0: i32) -> (i32, i32) {
    %c0_i32 = arith.constant 0 : i32
    %c0_i32_0 = arith.constant 0 : i32
    %c0_i32_1 = arith.constant 0 : i32
    return %c0_i32, %c0_i32_0 : i32, i32
  }
  func.func @transform_43(%arg0: i32) -> (i32, i32) {
    %c0_i32 = arith.constant 0 : i32
    %c0_i32_0 = arith.constant 0 : i32
    %c0_i32_1 = arith.constant 0 : i32
    return %c0_i32, %c0_i32_0 : i32, i32
  }
  func.func @transform_44(%arg0: i32) -> (i32, i32) {
    %c0_i32 = arith.constant 0 : i32
    %c0_i32_0 = arith.constant 0 : i32
    %c0_i32_1 = arith.constant 0 : i32
    return %c0_i32, %c0_i32_0 : i32, i32
  }
  func.func @transform_45(%arg0: i32) -> (i32, i32) {
    %c0_i32 = arith.constant 0 : i32
    %c0_i32_0 = arith.constant 0 : i32
    %c0_i32_1 = arith.constant 0 : i32
    return %c0_i32, %c0_i32_0 : i32, i32
  }
  func.func @transform_46(%arg0: i32) -> (i32, i32) {
    %c0_i32 = arith.constant 0 : i32
    %c0_i32_0 = arith.constant 0 : i32
    %c0_i32_1 = arith.constant 0 : i32
    return %c0_i32, %c0_i32_0 : i32, i32
  }
  func.func @transform_47(%arg0: i32) -> (i32, i32) {
    %c0_i32 = arith.constant 0 : i32
    %c0_i32_0 = arith.constant 0 : i32
    %c0_i32_1 = arith.constant 0 : i32
    return %c0_i32, %c0_i32_0 : i32, i32
  }
  func.func @transform_48(%arg0: i32) -> (i32, i32) {
    %c0_i32 = arith.constant 0 : i32
    %c0_i32_0 = arith.constant 0 : i32
    %c0_i32_1 = arith.constant 0 : i32
    return %c0_i32, %c0_i32_0 : i32, i32
  }
  func.func @transform_49(%arg0: i32) -> (i32, i32) {
    %c0_i32 = arith.constant 0 : i32
    %c0_i32_0 = arith.constant 0 : i32
    %c0_i32_1 = arith.constant 0 : i32
    return %c0_i32, %c0_i32_0 : i32, i32
  }
  func.func @transform_50(%arg0: i32) -> (i32, i32) {
    %c0_i32 = arith.constant 0 : i32
    %c0_i32_0 = arith.constant 0 : i32
    %c0_i32_1 = arith.constant 0 : i32
    return %c0_i32, %c0_i32_0 : i32, i32
  }
  func.func @transform_51(%arg0: i32) -> (i32, i32) {
    %c0_i32 = arith.constant 0 : i32
    %c0_i32_0 = arith.constant 0 : i32
    %c0_i32_1 = arith.constant 0 : i32
    return %c0_i32, %c0_i32_0 : i32, i32
  }
  func.func @transform_52(%arg0: i32) -> (i32, i32) {
    %c0_i32 = arith.constant 0 : i32
    %c0_i32_0 = arith.constant 0 : i32
    %c0_i32_1 = arith.constant 0 : i32
    return %c0_i32, %c0_i32_0 : i32, i32
  }
  func.func @transform_53(%arg0: i32) -> (i32, i32) {
    %c0_i32 = arith.constant 0 : i32
    %c0_i32_0 = arith.constant 0 : i32
    %c0_i32_1 = arith.constant 0 : i32
    return %c0_i32, %c0_i32_0 : i32, i32
  }
  func.func @transform_54(%arg0: i32) -> (i32, i32) {
    %c0_i32 = arith.constant 0 : i32
    %c0_i32_0 = arith.constant 0 : i32
    %c0_i32_1 = arith.constant 0 : i32
    return %c0_i32, %c0_i32_0 : i32, i32
  }
  func.func @transform_55(%arg0: i32) -> (i32, i32) {
    %c0_i32 = arith.constant 0 : i32
    %c0_i32_0 = arith.constant 0 : i32
    %c0_i32_1 = arith.constant 0 : i32
    return %c0_i32, %c0_i32_0 : i32, i32
  }
  func.func @transform_56(%arg0: i32) -> (i32, i32) {
    %c0_i32 = arith.constant 0 : i32
    %c0_i32_0 = arith.constant 0 : i32
    %c0_i32_1 = arith.constant 0 : i32
    return %c0_i32, %c0_i32_0 : i32, i32
  }
  func.func @transform_57(%arg0: i32) -> (i32, i32) {
    %c0_i32 = arith.constant 0 : i32
    %c0_i32_0 = arith.constant 0 : i32
    %c0_i32_1 = arith.constant 0 : i32
    return %c0_i32, %c0_i32_0 : i32, i32
  }
  func.func @transform_58(%arg0: i32) -> (i32, i32) {
    %c0_i32 = arith.constant 0 : i32
    %c0_i32_0 = arith.constant 0 : i32
    %c0_i32_1 = arith.constant 0 : i32
    return %c0_i32, %c0_i32_0 : i32, i32
  }
  func.func @transform_59(%arg0: i32) -> (i32, i32) {
    %c0_i32 = arith.constant 0 : i32
    %c0_i32_0 = arith.constant 0 : i32
    %c0_i32_1 = arith.constant 0 : i32
    return %c0_i32, %c0_i32_0 : i32, i32
  }
  func.func @transform_60(%arg0: i32) -> (i32, i32) {
    %c0_i32 = arith.constant 0 : i32
    %c0_i32_0 = arith.constant 0 : i32
    %c0_i32_1 = arith.constant 0 : i32
    return %c0_i32, %c0_i32_0 : i32, i32
  }
  func.func @transform_61(%arg0: i32) -> (i32, i32) {
    %c0_i32 = arith.constant 0 : i32
    %c0_i32_0 = arith.constant 0 : i32
    %c0_i32_1 = arith.constant 0 : i32
    return %c0_i32, %c0_i32_0 : i32, i32
  }
  func.func @transform_62(%arg0: i32) -> (i32, i32) {
    %c0_i32 = arith.constant 0 : i32
    %c0_i32_0 = arith.constant 0 : i32
    %c0_i32_1 = arith.constant 0 : i32
    return %c0_i32, %c0_i32_0 : i32, i32
  }
  func.func @transform_63(%arg0: i32) -> (i32, i32) {
    %c0_i32 = arith.constant 0 : i32
    %c0_i32_0 = arith.constant 0 : i32
    %c0_i32_1 = arith.constant 0 : i32
    return %c0_i32, %c0_i32_0 : i32, i32
  }
  func.func @transform_64(%arg0: i32) -> (i32, i32, i32) {
    %c0_i32 = arith.constant 0 : i32
    %c0_i32_0 = arith.constant 0 : i32
    %c0_i32_1 = arith.constant 0 : i32
    return %arg0, %c0_i32, %c0_i32_0 : i32, i32, i32
  }
  func.func @transform_65(%arg0: i32) -> (i32, i32, i32) {
    %c0_i32 = arith.constant 0 : i32
    %c0_i32_0 = arith.constant 0 : i32
    %c0_i32_1 = arith.constant 0 : i32
    return %arg0, %c0_i32, %c0_i32_0 : i32, i32, i32
  }
  func.func @transform_66(%arg0: i32) -> (i32, i32, i32) {
    %c0_i32 = arith.constant 0 : i32
    %c0_i32_0 = arith.constant 0 : i32
    %c0_i32_1 = arith.constant 0 : i32
    return %arg0, %c0_i32, %c0_i32_0 : i32, i32, i32
  }
  func.func @transform_67(%arg0: i32) -> (i32, i32, i32) {
    %c0_i32 = arith.constant 0 : i32
    %c0_i32_0 = arith.constant 0 : i32
    %c0_i32_1 = arith.constant 0 : i32
    return %arg0, %c0_i32, %c0_i32_0 : i32, i32, i32
  }
}

</mosaic_0001>

<bundles_post_ra>
// kernel: block_recurrent_forward.1
= control target key start
LH: loop header
LB: loop body
LE: loop exit
PB: predicated region body
PF: predicated region fallthrough
CT: control target
= control target key end

     0   :  { %s5483_s6 = smov 1   ;;  %s5484_s10 = smov 2   ;;  %s6587_s0 = inlined_call_operand.smem [shape: u32[68], index: -1, kind: input, shape index: {}] }
   0x1   :  { %s5559_s5 = sld [smem:[%s6587_s0]]   ;;  %s5485_s14 = smov 3  }
   0x2   :  { %s5564_s9 = sld [smem:[%s6587_s0 + %s5483_s6]]   ;;  %s5486_s18 = smov 4  }
   0x3   :  { %s5569_s13 = sld [smem:[%s6587_s0 + %s5484_s10]]   ;;  %s5487_s22 = smov 5  }
   0x4   :  { %s5574_s17 = sld [smem:[%s6587_s0 + %s5485_s14]]   ;;  %s5488_s26 = smov 6  }
   0x5   :  { %s5579_s21 = sld [smem:[%s6587_s0 + %s5486_s18]]   ;;  %s5489_s30 = smov 7  }
   0x6   :  { %s5584_s25 = sld [smem:[%s6587_s0 + %s5487_s22]]   ;;  %s5490_s4 = smov 8  }
   0x7   :  { %6639 = sst [smem:[#allocation12_spill]] %s5559_s5  ;;  %s5491_s10 = smov 9  }
   0x8   :  { %6640 = sst [smem:[#allocation13_spill]] %s5564_s9  ;;  %s5492_s15 = smov 10  }
   0x9   :  { %6641 = sst [smem:[#allocation14_spill]] %s5569_s13  ;;  %s5493_s20 = smov 11  }
   0xa   :  { %6642 = sst [smem:[#allocation15_spill]] %s5574_s17  ;;  %s5495_s1 = smov 13  }
   0xb   :  { %6643 = sst [smem:[#allocation16_spill]] %s5579_s21  ;;  %s5496_s7 = smov 14  }
   0xc   :  { %6644 = sst [smem:[#allocation17_spill]] %s5584_s25  ;;  %s5498_s22 = smov 16  }
   0xd   :  { %s5589_s29 = sld [smem:[%s6587_s0 + %s5488_s26]]   ;;  %s5494_s26 = smov 12  }
   0xe   :  { %s5594_s3 = sld [smem:[%s6587_s0 + %s5489_s30]]   ;;  %s5499_s28 = smov 17  }
   0xf   :  { %s5599_s8 = sld [smem:[%s6587_s0 + %s5490_s4]]  }
  0x10   :  { %s5604_s14 = sld [smem:[%s6587_s0 + %s5491_s10]]  }
  0x11   :  { %s5609_s19 = sld [smem:[%s6587_s0 + %s5492_s15]]   ;;  %s5497_s15 = smov 15  }
  0x12   :  { %s5614_s24 = sld [smem:[%s6587_s0 + %s5493_s20]]  }
  0x13   :  { %s5619_s30 = sld [smem:[%s6587_s0 + %s5494_s26]]  }
  0x14   :  { %6645 = sst [smem:[#allocation18_spill]] %s5594_s3 }
  0x15   :  { %6646 = sst [smem:[#allocation19_spill]] %s5599_s8 }
  0x16   :  { %6647 = sst [smem:[#allocation20_spill]] %s5604_s14 }
  0x17   :  { %6648 = sst [smem:[#allocation21_spill]] %s5609_s19 }
  0x18   :  { %6649 = sst [smem:[#allocation22_spill]] %s5614_s24 }
  0x19   :  { %6650 = sst [smem:[#allocation23_spill]] %s5619_s30 }
  0x1a   :  { %s5624_s6 = sld [smem:[%s6587_s0 + %s5495_s1]]  }
  0x1b   :  { %s5629_s12 = sld [smem:[%s6587_s0 + %s5496_s7]]   ;;  %s5500_s7 = smov 18  }
  0x1c   :  { %s5634_s20 = sld [smem:[%s6587_s0 + %s5497_s15]]   ;;  %s5501_s15 = smov 19  }
  0x1d   :  { %s5639_s27 = sld [smem:[%s6587_s0 + %s5498_s22]]   ;;  %s5502_s22 = smov 20  }
  0x1e   :  { %s5644_s4 = sld [smem:[%s6587_s0 + %s5499_s28]]   ;;  %s5503_s28 = smov 21  }
  0x1f   :  { %s5649_s24 = sld [smem:[%s6587_s0 + %s5500_s7]]   ;;  %s5504_s7 = smov 22  }
  0x20   :  { %6651 = sst [smem:[#allocation24_spill]] %s5624_s6 }
  0x21   :  { %6652 = sst [smem:[#allocation25_spill]] %s5629_s12 }
  0x22   :  { %6653 = sst [smem:[#allocation26_spill]] %s5634_s20 }
  0x23   :  { %s5654_s30 = sld [smem:[%s6587_s0 + %s5501_s15]]   ;;  %s5505_s15 = smov 23  }
  0x24   :  { %6654 = sst [smem:[#allocation27_spill]] %s5644_s4 }
  0x25   :  { %6655 = sst [smem:[#allocation28_spill]] %s5649_s24 }
  0x26   :  { %s5659_s3 = sld [smem:[%s6587_s0 + %s5502_s22]]   ;;  %s5506_s22 = smov 24  }
  0x27   :  { %s5664_s8 = sld [smem:[%s6587_s0 + %s5503_s28]]   ;;  %s5507_s28 = smov 25  }
  0x28   :  { %s5669_s6 = sld [smem:[%s6587_s0 + %s5504_s7]]   ;;  %s5508_s7 = smov 26  }
  0x29   :  { %6656 = sst [smem:[#allocation29_spill]] %s5654_s30 }
  0x2a   :  { %s5674_s12 = sld [smem:[%s6587_s0 + %s5505_s15]]   ;;  %s5509_s15 = smov 27  }
  0x2b   :  { %s5679_s30 = sld [smem:[%s6587_s0 + %s5506_s22]]   ;;  %s5510_s22 = smov 28  }
  0x2c   :  { %6657 = sst [smem:[#allocation30_spill]] %s5659_s3 }
  0x2d   :  { %6658 = sst [smem:[#allocation31_spill]] %s5664_s8 }
  0x2e   :  { %6659 = sst [smem:[#allocation32_spill]] %s5669_s6 }
  0x2f   :  { %s5684_s8 = sld [smem:[%s6587_s0 + %s5507_s28]]   ;;  %s5511_s28 = smov 29  }
  0x30   :  { %6660 = sst [smem:[#allocation33_spill]] %s5674_s12 }
  0x31   :  { %s5689_s6 = sld [smem:[%s6587_s0 + %s5508_s7]]   ;;  %s5512_s7 = smov 30  }
  0x32   :  { %s5694_s3 = sld [smem:[%s6587_s0 + %s5509_s15]]   ;;  %s5513_s15 = smov 31  }
  0x33   :  { %s5699_s9 = sld [smem:[%s6587_s0 + %s5510_s22]]   ;;  %s5514_s22 = smov 32  }
  0x34   :  { %s5709_s12 = sld [smem:[%s6587_s0 + %s5512_s7]]   ;;  %s5516_s7 = smov 34  }
  0x35   :  { %6661 = sst [smem:[#allocation34_spill]] %s5684_s8 }
  0x36   :  { %s5704_s8 = sld [smem:[%s6587_s0 + %s5511_s28]]   ;;  %s5515_s28 = smov 33  }
  0x37   :  { %6662 = sst [smem:[#allocation35_spill]] %s5689_s6 }
  0x38   :  { %6663 = sst [smem:[#allocation36_spill]] %s5694_s3 }
  0x39   :  { %6664 = sst [smem:[#allocation37_spill]] %s5699_s9 }
  0x3a   :  { %6666 = sst [smem:[#allocation39_spill]] %s5709_s12 }
  0x3b   :  { %s5714_s6 = sld [smem:[%s6587_s0 + %s5513_s15]]   ;;  %s5517_s15 = smov 35  }
  0x3c   :  { %6665 = sst [smem:[#allocation38_spill]] %s5704_s8 }
  0x3d   :  { %s5719_s9 = sld [smem:[%s6587_s0 + %s5514_s22]]   ;;  %s5518_s22 = smov 36  }
  0x3e   :  { %s5724_s8 = sld [smem:[%s6587_s0 + %s5515_s28]]   ;;  %s5519_s28 = smov 37  }
  0x3f   :  { %s5729_s12 = sld [smem:[%s6587_s0 + %s5516_s7]]   ;;  %s5520_s7 = smov 38  }
  0x41   :  { %6667 = sst [smem:[#allocation40_spill]] %s5714_s6 }
  0x42   :  { %s5734_s6 = sld [smem:[%s6587_s0 + %s5517_s15]]   ;;  %s5521_s15 = smov 39  }
  0x43   :  { %6668 = sst [smem:[#allocation41_spill]] %s5719_s9 }
  0x44   :  { %6669 = sst [smem:[#allocation42_spill]] %s5724_s8 }
  0x45   :  { %6670 = sst [smem:[#allocation43_spill]] %s5729_s12 }
  0x46   :  { %s5739_s9 = sld [smem:[%s6587_s0 + %s5518_s22]]   ;;  %s5522_s22 = smov 40  }
  0x47   :  { %s5744_s8 = sld [smem:[%s6587_s0 + %s5519_s28]]   ;;  %s5523_s28 = smov 41  }
  0x48   :  { %6671 = sst [smem:[#allocation44_spill]] %s5734_s6 }
  0x49   :  { %s5749_s12 = sld [smem:[%s6587_s0 + %s5520_s7]]   ;;  %s5524_s7 = smov 42  }
  0x4a   :  { %s5754_s6 = sld [smem:[%s6587_s0 + %s5521_s15]]   ;;  %s5525_s15 = smov 43  }
  0x4c   :  { %6672 = sst [smem:[#allocation45_spill]] %s5739_s9 }
  0x4d   :  { %6673 = sst [smem:[#allocation46_spill]] %s5744_s8 }
  0x4e   :  { %s5759_s9 = sld [smem:[%s6587_s0 + %s5522_s22]]   ;;  %s5526_s22 = smov 44  }
  0x4f   :  { %6674 = sst [smem:[#allocation47_spill]] %s5749_s12 }
  0x50   :  { %6675 = sst [smem:[#allocation48_spill]] %s5754_s6 }
  0x51   :  { %s5764_s8 = sld [smem:[%s6587_s0 + %s5523_s28]]   ;;  %s5527_s28 = smov 45  }
  0x52   :  { %s5769_s12 = sld [smem:[%s6587_s0 + %s5524_s7]]   ;;  %s5528_s7 = smov 46  }
  0x53   :  { %s5774_s6 = sld [smem:[%s6587_s0 + %s5525_s15]]   ;;  %s5529_s15 = smov 47  }
  0x54   :  { %6676 = sst [smem:[#allocation49_spill]] %s5759_s9 }
  0x55   :  { %s5779_s9 = sld [smem:[%s6587_s0 + %s5526_s22]]   ;;  %s5530_s22 = smov 48  }
  0x57   :  { %6677 = sst [smem:[#allocation50_spill]] %s5764_s8 }
  0x58   :  { %6678 = sst [smem:[#allocation51_spill]] %s5769_s12 }
  0x59   :  { %6679 = sst [smem:[#allocation52_spill]] %s5774_s6 }
  0x5a   :  { %s5784_s8 = sld [smem:[%s6587_s0 + %s5527_s28]]   ;;  %s5531_s28 = smov 49  }
  0x5b   :  { %6680 = sst [smem:[#allocation53_spill]] %s5779_s9 }
  0x5c   :  { %s5789_s12 = sld [smem:[%s6587_s0 + %s5528_s7]]   ;;  %s5532_s7 = smov 50  }
  0x5d   :  { %s5794_s6 = sld [smem:[%s6587_s0 + %s5529_s15]]   ;;  %s5533_s15 = smov 51  }
  0x5e   :  { %s5799_s9 = sld [smem:[%s6587_s0 + %s5530_s22]]   ;;  %s5534_s22 = smov 52  }
  0x60   :  { %6681 = sst [smem:[#allocation54_spill]] %s5784_s8 }
  0x61   :  { %s5804_s8 = sld [smem:[%s6587_s0 + %s5531_s28]]   ;;  %s5535_s28 = smov 53  }
  0x62   :  { %6682 = sst [smem:[#allocation55_spill]] %s5789_s12 }
  0x63   :  { %6683 = sst [smem:[#allocation56_spill]] %s5794_s6 }
  0x64   :  { %6684 = sst [smem:[#allocation57_spill]] %s5799_s9 }
  0x65   :  { %s5809_s12 = sld [smem:[%s6587_s0 + %s5532_s7]]   ;;  %s5536_s7 = smov 54  }
  0x66   :  { %s5814_s6 = sld [smem:[%s6587_s0 + %s5533_s15]]   ;;  %s5537_s15 = smov 55  }
  0x67   :  { %6685 = sst [smem:[#allocation58_spill]] %s5804_s8 }
  0x68   :  { %s5819_s9 = sld [smem:[%s6587_s0 + %s5534_s22]]   ;;  %s5538_s22 = smov 56  }
  0x69   :  { %s5824_s8 = sld [smem:[%s6587_s0 + %s5535_s28]]   ;;  %s5539_s28 = smov 57  }
  0x6b   :  { %6686 = sst [smem:[#allocation59_spill]] %s5809_s12 }
  0x6c   :  { %6687 = sst [smem:[#allocation60_spill]] %s5814_s6 }
  0x6d   :  { %s5829_s12 = sld [smem:[%s6587_s0 + %s5536_s7]]   ;;  %s5540_s7 = smov 58  }
  0x6e   :  { %6688 = sst [smem:[#allocation61_spill]] %s5819_s9 }
  0x6f   :  { %6689 = sst [smem:[#allocation62_spill]] %s5824_s8 }
  0x70   :  { %s5834_s6 = sld [smem:[%s6587_s0 + %s5537_s15]]   ;;  %s5541_s15 = smov 59  }
  0x71   :  { %s5839_s9 = sld [smem:[%s6587_s0 + %s5538_s22]]   ;;  %s5542_s22 = smov 60  }
  0x72   :  { %s5844_s8 = sld [smem:[%s6587_s0 + %s5539_s28]]   ;;  %s5543_s28 = smov 61  }
  0x73   :  { %6690 = sst [smem:[#allocation63_spill]] %s5829_s12 }
  0x74   :  { %s5849_s17 = sld [smem:[%s6587_s0 + %s5540_s7]]   ;;  %s5544_s7 = smov 62  }
  0x76   :  { %6691 = sst [smem:[#allocation64_spill]] %s5834_s6 }
  0x77   :  { %6692 = sst [smem:[#allocation65_spill]] %s5839_s9 }
  0x78   :  { %6693 = sst [smem:[#allocation66_spill]] %s5844_s8 }
  0x79   :  { %s5854_s6 = sld [smem:[%s6587_s0 + %s5541_s15]]   ;;  %s5545_s15 = smov 63  }
  0x7a   :  { %6694 = sst [smem:[#allocation67_spill]] %s5849_s17 }
  0x7b   :  { %s5859_s9 = sld [smem:[%s6587_s0 + %s5542_s22]]   ;;  %s5546_s22 = smov 64  }
  0x7c   :  { %s5864_s8 = sld [smem:[%s6587_s0 + %s5543_s28]]   ;;  %s5547_s28 = smov 65  }
  0x7d   :  { %s5869_s17 = sld [smem:[%s6587_s0 + %s5544_s7]]   ;;  %s5548_s7 = smov 66  }
  0x7e   :  { %s5884_s14 = sld [smem:[%s6587_s0 + %s5547_s28]]  }
  0x7f   :  { %6695 = sst [smem:[#allocation68_spill]] %s5854_s6 }
  0x80   :  { %s5874_s6 = sld [smem:[%s6587_s0 + %s5545_s15]]   ;;  %s5549_s15 = smov 67  }
  0x81   :  { %6696 = sst [smem:[#allocation69_spill]] %s5859_s9 }
  0x82   :  { %6697 = sst [smem:[#allocation70_spill]] %s5864_s8 }
  0x83   :  { %6698 = sst [smem:[#allocation71_spill]] %s5869_s17 }
  0x84   :  { %s5879_s9 = sld [smem:[%s6587_s0 + %s5546_s22]]  }
  0x85   :  { %s5889_s13 = sld [smem:[%s6587_s0 + %s5548_s7]]  }
  0x86   :  { %6699 = sst [smem:[#allocation72_spill]] %s5874_s6 }
  0x87   :  { %s5894_s4 = sld [smem:[%s6587_s0 + %s5549_s15]]  }
  0x8a   :  { %6700 = sst [smem:[#allocation73_spill]] %s5879_s9 }
  0x8b   :  { %141 = vsyncpa [#allocation3], 0 }
  0x8c   :  { %143 = vsyncpa [#allocation3 + $0x1], 0 }
  0x8d   :  { %144 = vsyncpa [#allocation5], 0 }
  0x8e   :  { %146 = vsyncpa [#allocation5 + $0x1], 0 }
  0x8f   :  { %147 = vsyncpa [#allocation8], 0 }
  0x90   :  { %149 = vsyncpa [#allocation8 + $0x1], 0  ;;  %s5896_s22 = smov 0   ;;  %s5898_s23 = smov 0  }
  0x91   :  { %s5900_s26 = smov 0   ;;  %s5902_s28 = smov 0  }
  0x92 LB: > { %s6701_s9 = sld [smem:[#allocation73_spill]]  ;;  %s5917_s0 = sadd.s32 4294967295, %s5481_s28   ;;  %s5477_s26 = sphi %s5900_s26, %s6771_s26   ;;  %s5473_s23 = sphi %s5898_s23, %s6770_s23   ;;  %s5469_s22 = sphi %s5896_s22, %s6769_s22   ;;  %s5481_s28 = sphi %s5902_s28, %s6772_s28  }
  0x93   : > { %s6702_s8 = sld [smem:[#allocation70_spill]]  ;;  %s6609_s1 = sadd.s32 4294967294, %s5481_s28  }
  0x94   : > { %s6703_s6 = sld [smem:[#allocation72_spill]]  ;;  %s5921_s2 = sadd.s32 1, %s5481_s28  }
  0x95   : > { %s6704_s3 = sld [smem:[#allocation36_spill]]  ;;  %s1521_s7 = sadd.s32 1, %s5477_s26 }
  0x96   : > { %s6705_s24 = sld [smem:[#allocation28_spill]]  ;;  %s1518_s10 = ssub.s32 %s5481_s28, %s5921_s2 }
  0x97   : > { %s6706_s21 = sld [smem:[#allocation16_spill]]  ;;  %p1531_p0 = scmp.ne.s32.totalorder %s5477_s26, %s5473_s23 }
  0x98   : > { %s6707_s19 = sld [smem:[#allocation21_spill]]  ;;  %p1519_p1 = scmp.eq.s32.totalorder %s1518_s10, 0 }
  0x99   : > { %p1532_p2 = scmp.eq.s32.totalorder %s5917_s0, 1  ;;  %p1537_p3 = scmp.ne.s32.totalorder %s5473_s23, %s5469_s22 }
  0x9a   : > { %p1538_p4 = scmp.eq.s32.totalorder %s6609_s1, 1  ;;  %p4706_p7 = scmp.ge.s32.totalorder %s5481_s28, 1 }
  0x9b   : > { %s5934_s11 = scalar_select %p1519_p1, %s5477_s26, %s1521_s7  }
  0x9c   : > { %p5936_p5 = por %p1532_p2, %p1531_p0  ;;  %p5940_p6 = por %p1538_p4, %p1537_p3 }
  0x9d   : > { %p1838_p8 = scmp.lt.s32.totalorder %s5481_s28, 3 }
  0x9f   : > { %p1839_p9 = pnand %p4706_p7, %p1838_p8 }
  0xa0   : > { %s6710_s5 = sld [smem:[#allocation12_spill]] (!%p1839_p9)  ;;  %p2012_p10 = scmp.lt.s32.totalorder (!%p1839_p9), %s5917_s0, 1 }
  0xa1   : > { %1842 = sbr.rel (%p1839_p9) target bundleno = 6846 (0x1abe), region = 276  ;;  %s6711_s17 = sld [smem:[#allocation71_spill]] (!%p1839_p9) }
  0xa2   : > { %s6712_s12 = sld [smem:[#allocation63_spill]] (!%p1839_p9) }
  0xa3   : > { %s6713_s20 = sld [smem:[#allocation26_spill]] (!%p1839_p9) }
  0xa4   : > { %s6714_s25 = sld [smem:[#allocation17_spill]] (!%p1839_p9) }
  0xa6   : > { %v2176_v0 = vld [vmem:[%s6702_s8] sm:$0xff]  ;;  %vm2182_vm0 = vcmask 261120   ;;  %s2013_s18 = scalar_select %p2012_p10, %s5917_s0, 1  ;;  %v5550_v4 = vmov 32.0   ;;  %v5026_v21 = vld [vmem:[%s5589_s29 + $0x8] sm:$0xff]  ;;  %vm2679_vm14 = vcmask 130048  }
  0xa7   : > { %v2276_v1 = vsel %vm2182_vm0, %v2176_v0, 0.0  ;;  %5221 = vrcp.f32 %v5550_v4  ;;  %v5038_v22 = vld [vmem:[%s6705_s24 + $0x8] sm:$0xff]  ;;  %2328 = vmatpush.bf16.msra.mxu2 %v5026_v21  ;;  %v5025_v23 = vld [vmem:[%s5589_s29] sm:$0xff]  ;;  %vm3056_vm15 = vcmask 1043456  }
  0xa8   : > { %2277 = vadd.xlane.f32.xlu0 %v2276_v1  ;;  %s5950_s7 = sshll.u32 %s2013_s18, 3  ;;  %2356 = vmatpush.bf16.msra.mxu3 %v5038_v22  ;;  %v5037_v24 = vld [vmem:[%s6705_s24] sm:$0xff]  ;;  %v5024_v25 = vld [vmem:[%s6706_s21 + $0x8] sm:$0xff]  ;;  %s6715_s18 = sld [smem:[#allocation27_spill]] }
  0xa9   : > { %s2015_s10 = scalar_lea.vmem %s6710_s5, %s5950_s7  ;;  %v5036_v26 = vld [vmem:[%s5639_s27 + $0x8] sm:$0xff]  ;;  %2241 = vmatpush.bf16.msra.mxu0 %v5024_v25  ;;  %v5023_v27 = vld [vmem:[%s6706_s21] sm:$0xff]  ;;  %s6716_s5 = sld [smem:[#allocation14_spill]] }
  0xaa   : > { %v2179_v2 = vld [vmem:[%s2015_s10] sm:$0xff]  ;;  %2269 = vmatpush.bf16.msra.mxu1 %v5036_v26  ;;  %v5030_v32 = vld [vmem:[%s6707_s19 + $0x8] sm:$0xff]  ;;  %s6016_s10 = sand.u32 1, %s5473_s23   ;;  %s6729_s24 = sld [smem:[#allocation67_spill]] }
  0xab   : > { %v2183_v3 = vsel %vm2182_vm0, %v2179_v2, 0.0  ;;  %2329 = vmatpush.bf16.msra.mxu2 %v5025_v23  ;;  %v5035_v28 = vld [vmem:[%s5639_s27] sm:$0xff]  ;;  %v5978_v40 = vld [vmem:[%s5679_s30 + $0x8] sm:$0xff]  ;;  %s6020_s1 = sshll.u32 %s6016_s10, 3 }
  0xac   : > { %2357 = vmatpush.bf16.msra.mxu3 %v5037_v24  ;;  %v5029_v33 = vld [vmem:[%s6707_s19] sm:$0xff]  ;;  %v5046_v41 = vld [vmem:[%s6704_s3 + $0x8] sm:$0xff]  ;;  %s6611_s19 = scalar_lea.vmem [#allocation7], %s6020_s1 }
  0xad   : > { %v5222_v5 = vpop.eup %5221  ;;  %2242 = vmatpush.bf16.msra.mxu0 %v5023_v27  ;;  %v5201_v47 = vld [vmem:[%s6711_s17] ss:$0 sm:$0xff]  ;;  %s6718_s17 = sld [smem:[#allocation15_spill]] }
  0xae   : > { %v2187_v6 = vmul.f32 32.0, %v5222_v5  ;;  %vm2191_vm1 = vweird.f32 %v5222_v5  ;;  %2270 = vmatpush.bf16.msra.mxu1 %v5035_v28  ;;  %v2178_v52 = vld [vmem:[%s6703_s6] sm:$0xff] }
  0xaf   : > { %2478 = vmatpush.bf16.msrb.mxu2 %v5030_v32  ;;  %v5202_v58 = vld [vmem:[%s6712_s12] ss:$0 sm:$0xff]  ;;  %s6717_s12 = sld [smem:[#allocation20_spill]] }
  0xb0   : > { %2184 = vadd.xlane.f32.xlu0 %v2183_v3  ;;  %v2188_v7 = vsub.f32 1.0, %v2187_v6  ;;  %v6005_v63 = vld [vmem:[%s5679_s30] sm:$0xff] }
  0xb1   : > { %2388 = vmatpush.bf16.msrb.mxu0 %v5978_v40  ;;  %v5204_v1 = vld [vmem:[%s6713_s20] ss:$0 sm:$0xff]  ;;  %s2023_s20 = scalar_lea.vmem %s6716_s5, %s5950_s7  ;;  %s6720_s5 = sld [smem:[#allocation51_spill]] }
  0xb2   : > { %v2189_v8 = vmul.f32 %v5222_v5, %v2188_v7  ;;  %2420 = vmatpush.bf16.msrb.mxu1 %v5046_v41  ;;  %v5206_v3 = vld [vmem:[%s6715_s18] ss:$0 sm:$0xff]  ;;  %s6719_s18 = sld [smem:[#allocation35_spill]] }
  0xb3   : > { %2479 = vmatpush.bf16.msrb.mxu2 %v5029_v33  ;;  %v5203_v22 = vld [vmem:[%s6718_s17] ss:$0 sm:$0xff]  ;;  %s6721_s17 = sld [smem:[#allocation33_spill]] }
  0xb4   : > { %v2190_v9 = vadd.f32 %v5222_v5, %v2189_v8 }
  0xb5   : > { %2389 = vmatpush.bf16.msrb.mxu0 %v6005_v63 }
  0xb6   : > { %v5955_v10 = vsel %vm2191_vm1, %v5222_v5, %v2190_v9  ;;  %vm2999_vm1 = vcmask 64512  }
  0xb8   : > { %v6045_v28 = vld [vmem:[%s6719_s18 + $0x8] sm:$0xff] }
 0x11b   : > { %v2278_v11 = vpop.xlane.xlu0 %2277 }
 0x11c   : > { %v2279_v12 = vmul.f32 %v2278_v11, %v5955_v10 }
 0x11e   : > { %v2280_v13 = vsub.f32 %v2176_v0, %v2279_v12  ;;  %v6008_v0 = vld [vmem:[%s6704_s3] sm:$0xff] }
 0x11f   : > { %2421 = vmatpush.bf16.msrb.mxu1 %v6008_v0 }
 0x120   : > { %v2281_v14 = vmul.f32 %v2280_v13, %v2280_v13 }
 0x122   : > { %v2282_v15 = vsel %vm2182_vm0, %v2281_v14, 0.0 }
 0x123   : > { %2283 = vadd.xlane.f32.xlu1 %v2282_v15  ;;  %v2185_v16 = vpop.xlane.xlu0 %2184 }
 0x124   : > { %v2193_v17 = vmul.f32 %v5955_v10, %v2185_v16 }
 0x126   : > { %v5960_v18 = vsub.f32 %v2179_v2, %v2193_v17  ;;  %v5205_v2 = vld [vmem:[%s6714_s25] ss:$0 sm:$0xff]  ;;  %s6615_s25 = scalar_lea.vmem [#allocation6], %s6020_s1 }
 0x128   : > { %v2195_v19 = vmul.f32 %v5960_v18, %v5960_v18 }
 0x12a   : > { %v2196_v20 = vsel %vm2182_vm0, %v2195_v19, 0.0  ;;  %v2181_v19 = vld [vmem:[%s2023_s20] sm:$0xff]  ;;  %s6723_s20 = sld [smem:[#allocation64_spill]] }
 0x12b   : > { %2197 = vadd.xlane.f32.xlu1 %v2196_v20 }
 0x196   : > { %v2284_v29 = vpop.xlane.xlu1 %2283 }
 0x197   : > { %v2285_v30 = vmul.f32 %v2284_v29, %v5955_v10  ;;  %v6049_v29 = vld [vmem:[%s6719_s18] sm:$0xff] }
 0x199   : > { %v2286_v31 = vadd.f32 1e-05, %v2285_v30 }
 0x19b   : > { %5223 = vrsqrt.f32 %v2286_v31  ;;  %vm2293_vm3 = vweird.f32 %v2286_v31 }
 0x19e   : > { %v2198_v34 = vpop.xlane.xlu1 %2197 }
 0x19f   : > { %v2199_v35 = vmul.f32 %v2198_v34, %v5955_v10 }
 0x1a1   : > { %v5224_v36 = vpop.eup %5223  ;;  %v2200_v37 = vadd.f32 1e-05, %v2199_v35 }
 0x1a2   : > { %v2288_v38 = vmul.f32 %v5224_v36, %v2286_v31  ;;  %vm2294_vm2 = vweird.f32 %v5224_v36 }
 0x1a3   : > { %5225 = vrsqrt.f32 %v2200_v37  ;;  %vm2295_vm4 = vmor %vm2293_vm3, %vm2294_vm2  ;;  %vm2207_vm5 = vweird.f32 %v2200_v37 }
 0x1a4   : > { %v2289_v39 = vmul.f32 %v5224_v36, %v2288_v38 }
 0x1a6   : > { %v2290_v42 = vmul.f32 0.5, %v2289_v39 }
 0x1a8   : > { %v2291_v43 = vsub.f32 1.5, %v2290_v42 }
 0x1a9   : > { %v5226_v44 = vpop.eup %5225 }
 0x1aa   : > { %v2292_v45 = vmul.f32 %v5224_v36, %v2291_v43  ;;  %v2202_v46 = vmul.f32 %v5226_v44, %v2200_v37  ;;  %vm2208_vm6 = vweird.f32 %v5226_v44  ;;  %v6065_v43 = vld [vmem:[%s6721_s17] ss:$0 sm:$0xff]  ;;  %s6725_s17 = sld [smem:[#allocation52_spill]] }
 0x1ab   : > { %vm2209_vm7 = vmor %vm2207_vm5, %vm2208_vm6  ;;  %vm3369_vm5 = vcmask 523264  }
 0x1ac   : > { %v2296_v48 = vsel %vm2295_vm4, %v5224_v36, %v2292_v45  ;;  %v2203_v49 = vmul.f32 %v5226_v44, %v2202_v46 }
 0x1ad   : > { %v2297_v50 = vmul.f32 %v2296_v48, %v2280_v13 }
 0x1ae   : > { %v2204_v51 = vmul.f32 0.5, %v2203_v49 }
 0x1af   : > { %v2301_v53 = vmul.f32 %v5201_v47, %v2297_v50 }
 0x1b0   : > { %v2205_v54 = vsub.f32 1.5, %v2204_v51 }
 0x1b1   : > { %v2302_v55 = vadd.f32 %v2301_v53, %v2178_v52 }
 0x1b2   : > { %v2206_v56 = vmul.f32 %v5226_v44, %v2205_v54 }
 0x1b3   : > { %v5984_v57 = vpack.c.bf16 %v2302_v55, %v2302_v55 }
 0x1b4   : > { %v2210_v59 = vsel %vm2209_vm7, %v5226_v44, %v2206_v56 }
 0x1b5   : > { %v2211_v60 = vmul.f32 %v2210_v59, %v5960_v18  ;;  %4740 = vmatmul.msk.bf16.vlgmr.msra.gmra.mxu2 %vm2182_vm0, %v5984_v57  ;;  %4749 = vmatmul.msk.bf16.vlgmr.msra.gmra.mxu3 %vm2182_vm0, %v5984_v57  ;;  %v5207_v18 = vld [vmem:[%s6717_s12] ss:$0 sm:$0xff]  ;;  %s6722_s12 = sld [smem:[#allocation69_spill]] }
 0x1b6   : > { %2637 = vmatpush.bf16.msra.mxu2 %v6045_v28 }
 0x1b7   : > { %v5992_v61 = vmul.f32 %v5202_v58, %v2211_v60 }
 0x1b9   : > { %v5996_v62 = vpack.c.bf16 %v5992_v61, %v5992_v61 }
 0x1ba   : > { %2638 = vmatpush.bf16.msra.mxu2 %v6049_v29 }
 0x1bb   : > { %4722 = vmatmul.msk.bf16.vlgmr.msra.gmra.mxu0 %vm2182_vm0, %v5996_v62  ;;  %4731 = vmatmul.msk.bf16.vlgmr.msra.gmra.mxu1 %vm2182_vm0, %v5996_v62 }
 0x1bc   : > { %2600 = vmatpush.bf16.msra.mxu1 %v5046_v41  ;;  %2582 = vmatpush.bf16.msra.mxu0 %v5978_v40  ;;  %v2118_v41 = vld [vmem:[%s6720_s5] sm:$0x3]  ;;  %s6724_s5 = sld [smem:[#allocation13_spill]] }
 0x1bd   : > { %v2697_v46 = vshrl.u32 %v2118_v41, 16  ;;  %v2646_v51 = vpack.i.b16 %v2118_v41, %v2118_v41 }
 0x1bf   : > { %v2698_v50 = vpack.i.b16 %v2697_v46, %v2697_v46  ;;  %v2648_v55 = vperm.slane %v2646_v51, 0  ;;  %v2775_v58 = vperm.slane %v2646_v51, 1 }
 0x1c0   : > { %2601 = vmatpush.bf16.msra.mxu1 %v6008_v0  ;;  %2583 = vmatpush.bf16.msra.mxu0 %v6005_v63 }
 0x1c1   : > { %v2700_v54 = vperm.slane %v2698_v50, 0  ;;  %v2835_v56 = vperm.slane %v2698_v50, 1 }
 0x1c2   : > { %s2019_s21 = scalar_lea.vmem %s6724_s5, %s5950_s7  ;;  %s6731_s7 = sld [smem:[#allocation32_spill]] }
 0x1c3   : > { %s6734_s5 = sld [smem:[#allocation25_spill]] }
 0x1c5   : > { %4776 = vmatmul.msk.bf16.vlgmr.msrb.gmra.mxu2 %vm2182_vm0, %v5996_v62 }
 0x238   : > { %v2244_v4 = vpop.f32.mrf.mxu0  ;;  %v2272_v5 = vpop.f32.mrf.mxu1 }
 0x239   : > { %v6024_v6 = vadd.f32 %v5204_v1, %v2272_v5  ;;  %v2331_v7 = vpop.f32.mrf.mxu2  ;;  %v2359_v8 = vpop.f32.mrf.mxu3  ;;  %v6040_v25 = vadd.f32 %v5203_v22, %v2244_v4  ;;  %v6079_v4 = vunpack.c.l.bf16 %v2835_v56  ;;  %v6081_v5 = vunpack.c.l.bf16 %v2775_v58  ;;  %v2174_v22 = vld [vmem:[%s6722_s12 + $0x10] sm:$0xff]  ;;  %v5211_v56 = vld [vmem:[%s6725_s17] ss:$0 sm:$0xff]  ;;  %s6735_s17 = sld [smem:[#allocation24_spill]] }
 0x23a   : > { %v2332_v9 = vadd.f32 %v5205_v2, %v2331_v7  ;;  %v2360_v11 = vadd.f32 %v5206_v3, %v2359_v8  ;;  %v6075_v2 = vunpack.c.l.bf16 %v2700_v54  ;;  %v6077_v3 = vunpack.c.l.bf16 %v2648_v55 }
 0x23b   : > { %2456 = vst.msk [vmem:[%s6611_s19] sm:$0xff] %vm2182_vm0, %v6024_v6  ;;  %v2590_v23 = vpack.c.bf16 %v6024_v6, %v2181_v19  ;;  %v2429_v27 = vsel %vm2182_vm0, %v6040_v25, 0.0  ;;  %s6726_s19 = sld [smem:[#allocation66_spill]] }
 0x23c   : > { %v2363_v12 = vpack.c.bf16 %v2332_v9, %v2332_v9  ;;  %v2395_v13 = vpack.c.bf16 %v2360_v11, %v2360_v11 }
 0x23e   : > { %4758 = vmatmul.msk.bf16.vlgmr.msrb.gmra.mxu0 %vm2182_vm0, %v2363_v12  ;;  %4767 = vmatmul.msk.bf16.vlgmr.msrb.gmra.mxu1 %vm2182_vm0, %v2395_v13 }
 0x240   : > { %v2246_v14 = vpop.f32.mrf.mxu0  ;;  %v2274_v15 = vpop.f32.mrf.mxu1 }
 0x241   : > { %v2333_v16 = vpop.f32.mrf.mxu2  ;;  %v2361_v17 = vpop.f32.mrf.mxu3 }
 0x249   : > { %v2481_v20 = vpop.f32.mrf.mxu2 }
 0x24a   : > { %v2482_v21 = vadd.f32 %v5207_v18, %v2481_v20 }
 0x24c   : > { %v2485_v24 = vsel %vm2182_vm0, %v2482_v21, 0.0 }
 0x24d   : > { %2486 = vadd.xlane.f32.xlu2 %v2485_v24  ;;  %v2172_v24 = vld [vmem:[%s6722_s12] sm:$0xff] }
 0x24e   : > { %4781 = vmatmul.msk.bf16.vlgmr.msra.gmra.mxu1 %vm2182_vm0, %v2590_v23  ;;  %v2173_v23 = vld [vmem:[%s6722_s12 + $0x8] sm:$0xff] }
 0x251   : > { %v2483_v26 = vpop.f32.mrf.mxu2 }
 0x255   : > { %2430 = vadd.xlane.f32.xlu2 %v2429_v27 }
 0x2bb   : > { %v6051_v30 = vpop.f32.mrf.mxu0  ;;  %v6053_v31 = vpop.f32.mrf.mxu1 }
 0x2c0   : > { %v2487_v32 = vpop.xlane.xlu2 %2486 }
 0x2c1   : > { %v2488_v33 = vmul.f32 %v2487_v32, %v5955_v10 }
 0x2c3   : > { %v6057_v34 = vsub.f32 %v2482_v21, %v2488_v33  ;;  %v2393_v35 = vpop.f32.mrf.mxu0  ;;  %v2425_v36 = vpop.f32.mrf.mxu1  ;;  %v2175_v21 = vld [vmem:[%s6722_s12 + $0x18] sm:$0xff]  ;;  %s6727_s12 = sld [smem:[#allocation68_spill]] }
 0x2c4   : > { %2526 = vmatpush.msrb.mxu3 %v2175_v21 }
 0x2c5   : > { %v2490_v37 = vmul.f32 %v6057_v34, %v6057_v34 }
 0x2c6   : > { %2527 = vmatpush.msrb.mxu3 %v2174_v22 }
 0x2c7   : > { %v2491_v38 = vsel %vm2182_vm0, %v2490_v37, 0.0 }
 0x2c8   : > { %2492 = vadd.xlane.f32.xlu0 %v2491_v38  ;;  %v2431_v39 = vpop.xlane.xlu2 %2430  ;;  %2528 = vmatpush.msrb.mxu3 %v2173_v23 }
 0x2c9   : > { %v2432_v42 = vmul.f32 %v2431_v39, %v5955_v10 }
 0x2ca   : > { %2529 = vmatpush.msrb.mxu3 %v2172_v24 }
 0x2cb   : > { %v6068_v44 = vsub.f32 %v6040_v25, %v2432_v42  ;;  %v2603_v45 = vpop.f32.mrf.mxu1 }
 0x2cc   : > { %v2604_v47 = vadd.f32 %v6065_v43, %v2603_v45  ;;  %2555 = vmatpush.msra.mxu3 %v2175_v21  ;;  %v2169_v21 = vld [vmem:[%s6729_s24] sm:$0xff] }
 0x2cd   : > { %v2434_v48 = vmul.f32 %v6068_v44, %v6068_v44 }
 0x2ce   : > { %v2610_v52 = vpack.c.bf16 %v2604_v47, %v2604_v47  ;;  %2556 = vmatpush.msra.mxu3 %v2174_v22 }
 0x2cf   : > { %v2435_v49 = vsel %vm2182_vm0, %v2434_v48, 0.0  ;;  %v5210_v48 = vld [vmem:[%s6723_s20] ss:$0 sm:$0xff]  ;;  %s6728_s20 = sld [smem:[#allocation65_spill]] }
 0x2d0   : > { %2436 = vadd.xlane.f32.xlu1 %v2435_v49  ;;  %v2692_v60 = vunpack.c.l.bf16 %v2610_v52  ;;  %2557 = vmatpush.msra.mxu3 %v2173_v23  ;;  %v2170_v23 = vld [vmem:[%s6729_s24 + $0x8] sm:$0xff] }
 0x2d2   : > { %v2740_v8 = vmul.f32 %v6075_v2, %v2692_v60  ;;  %v2694_v9 = vmul.f32 %v2692_v60, %v6077_v3  ;;  %v6086_v11 = vmul.f32 %v6079_v4, %v2692_v60  ;;  %v6089_v12 = vmul.f32 %v6081_v5, %v2692_v60  ;;  %2558 = vmatpush.msra.mxu3 %v2172_v24  ;;  %v2180_v60 = vld [vmem:[%s2019_s21] sm:$0xff]  ;;  %s6730_s21 = sld [smem:[#allocation30_spill]] }
 0x2d3   : > { %v2605_v53 = vpop.f32.mrf.mxu1 }
 0x2d4   : > { %v2606_v59 = vadd.f32 %v6065_v43, %v2605_v53 }
 0x2d5   : > { %v2167_v22 = vld [vmem:[%s6728_s20 + $0x8] sm:$0xff] }
 0x2d6   : > { %v2611_v1 = vpack.c.bf16 %v2606_v59, %v2606_v59 }
 0x2d8   : > { %v2693_v7 = vunpack.c.l.bf16 %v2611_v1  ;;  %v2168_v1 = vld [vmem:[%s6726_s19] sm:$0xff]  ;;  %s6732_s19 = sld [smem:[#allocation34_spill]] }
 0x2da   : > { %v2741_v13 = vmul.f32 %v6075_v2, %v2693_v7  ;;  %v2695_v14 = vmul.f32 %v2693_v7, %v6077_v3  ;;  %v6094_v15 = vmul.f32 %v6079_v4, %v2693_v7  ;;  %v6097_v16 = vmul.f32 %v6081_v5, %v2693_v7  ;;  %v2171_v7 = vld [vmem:[%s6727_s12] sm:$0xff]  ;;  %s6733_s12 = sld [smem:[#allocation29_spill]] }
 0x2dc   : > { %v2742_v17 = vpack.c.bf16 %v2741_v13, %v2740_v8  ;;  %v2696_v18 = vpack.c.bf16 %v2695_v14, %v2694_v9  ;;  %v2877_v19 = vpack.c.bf16 %v6094_v15, %v6086_v11  ;;  %v2817_v20 = vpack.c.bf16 %v6097_v16, %v6089_v12  ;;  %v6134_v15 = vld [vmem:[%s6730_s21] ss:$0 sm:$0xff]  ;;  %s6736_s21 = sld [smem:[#allocation56_spill]] }
 0x2de   : > { %2753 = vmatpush.bf16.msrb.mxu1 %v2742_v17  ;;  %2769 = vmatpush.bf16.msrb.mxu2 %v2696_v18  ;;  %v2166_v18 = vld [vmem:[%s6728_s20] sm:$0xff] }
 0x2df   : > { %v2566_v24 = vmul.f32 %v2180_v60, %v2166_v18 }
 0x33b   : > { %v2493_v26 = vpop.xlane.xlu0 %2492 }
 0x33c   : > { %v2494_v27 = vmul.f32 %v2493_v26, %v5955_v10 }
 0x33e   : > { %v2495_v32 = vadd.f32 1e-05, %v2494_v27 }
 0x340   : > { %5227 = vrsqrt.f32 %v2495_v32  ;;  %vm2502_vm9 = vweird.f32 %v2495_v32 }
 0x343   : > { %v2437_v33 = vpop.xlane.xlu1 %2436 }
 0x344   : > { %v2438_v35 = vmul.f32 %v2437_v33, %v5955_v10 }
 0x346   : > { %v5228_v36 = vpop.eup %5227  ;;  %v2439_v37 = vadd.f32 1e-05, %v2438_v35 }
 0x347   : > { %v2497_v38 = vmul.f32 %v5228_v36, %v2495_v32  ;;  %vm2503_vm8 = vweird.f32 %v5228_v36 }
 0x348   : > { %5229 = vrsqrt.f32 %v2439_v37  ;;  %vm2504_vm10 = vmor %vm2502_vm9, %vm2503_vm8  ;;  %vm2446_vm12 = vweird.f32 %v2439_v37 }
 0x349   : > { %v2498_v39 = vmul.f32 %v5228_v36, %v2497_v38 }
 0x34b   : > { %v2499_v41 = vmul.f32 0.5, %v2498_v39 }
 0x34d   : > { %v2500_v42 = vsub.f32 1.5, %v2499_v41  ;;  %v6138_v41 = vld [vmem:[%s6731_s7] ss:$0 sm:$0xff] }
 0x34e   : > { %v5230_v45 = vpop.eup %5229 }
 0x34f   : > { %v2501_v46 = vmul.f32 %v5228_v36, %v2500_v42  ;;  %v2441_v47 = vmul.f32 %v5230_v45, %v2439_v37  ;;  %vm2447_vm11 = vweird.f32 %v5230_v45 }
 0x350   : > { %vm2448_vm13 = vmor %vm2446_vm12, %vm2447_vm11 }
 0x351   : > { %v2505_v49 = vsel %vm2504_vm10, %v5228_v36, %v2501_v46  ;;  %v2442_v50 = vmul.f32 %v5230_v45, %v2441_v47 }
 0x352   : > { %v2506_v51 = vmul.f32 %v2505_v49, %v6057_v34 }
 0x353   : > { %v2443_v52 = vmul.f32 0.5, %v2442_v50 }
 0x354   : > { %v2510_v53 = vmul.f32 %v5210_v48, %v2506_v51 }
 0x355   : > { %v2444_v54 = vsub.f32 1.5, %v2443_v52 }
 0x356   : > { %4777 = vmatmul.msk.f32.vlgmr.msrb.gmra.mxu3 %vm2182_vm0, %v2510_v53  ;;  %v2534_v9 = vmul.f32 %v2510_v53, %v2168_v1 }
 0x357   : > { %v2445_v55 = vmul.f32 %v5230_v45, %v2444_v54 }
 0x359   : > { %v2449_v58 = vsel %vm2448_vm13, %v5230_v45, %v2445_v55 }
 0x35a   : > { %v2450_v59 = vmul.f32 %v2449_v58, %v6068_v44 }
 0x35c   : > { %v2454_v34 = vmul.f32 %v5211_v56, %v2450_v59 }
 0x35e   : > { %4778 = vmatmul.msk.f32.vlgmr.msra.gmra.mxu3 %vm2182_vm0, %v2180_v60  ;;  %2455 = vst.msk [vmem:[%s6615_s25] sm:$0xff] %vm2182_vm0, %v2454_v34  ;;  %v2567_v32 = vmul.f32 %v2454_v34, %v2167_v22  ;;  %v2392_v22 = vadd.f32 %v6134_v15, %v6051_v30  ;;  %s6740_s25 = sld [smem:[#allocation19_spill]] }
 0x366   : > { %4779 = vmatmul.msk.f32.gmra.mxu3 %vm2182_vm0, %v2454_v34 }
 0x3d9   : > { %v2531_v8 = vpop.f32.mrf.mxu3 }
 0x3da   : > { %v2535_v13 = vmul.f32 %v2531_v8, %v2171_v7 }
 0x3dc   : > { %v2536_v44 = vadd.f32 %v2535_v13, %v2534_v9 }
 0x3de   : > { %v2612_v14 = vpack.c.bf16 %v2536_v44, %v2536_v44 }
 0x3e0   : > { %4790 = vmatmul.msk.bf16.vlgmr.msra.gmra.mxu2 %vm2182_vm0, %v2612_v14 }
 0x3e1   : > { %2888 = vmatpush.bf16.msra.mxu2 %v2877_v19  ;;  %v2560_v17 = vpop.f32.mrf.mxu3 }
 0x3e2   : > { %v2568_v26 = vmul.f32 %v2560_v17, %v2169_v21 }
 0x3e4   : > { %v2570_v35 = vadd.f32 %v2568_v26, %v2566_v24 }
 0x3e9   : > { %v2563_v27 = vpop.f32.mrf.mxu3 }
 0x3ea   : > { %v2569_v33 = vmul.f32 %v2563_v27, %v2170_v23  ;;  %v6166_v23 = vld [vmem:[%s6732_s19 + $0x8] sm:$0xff]  ;;  %v2427_v27 = vpack.c.bf16 %v2392_v22, %v2392_v22 }
 0x3ec   : > { %v2571_v36 = vadd.f32 %v2569_v33, %v2567_v32  ;;  %v6172_v32 = vld [vmem:[%s6732_s19] sm:$0xff]  ;;  %v6174_v33 = vunpack.c.l.bf16 %v2427_v27 }
 0x3ee   : > { %v2572_v37 = vpack.c.bf16 %v2571_v36, %v2570_v35  ;;  %v3017_v30 = vmul.f32 %v6174_v33, %v6075_v2 }
 0x3f0   : > { %4780 = vmatmul.msk.bf16.vlgmr.msra.gmra.mxu0 %vm2182_vm0, %v2572_v37  ;;  %v3018_v16 = vpack.c.bf16 %v3017_v30, %v3017_v30  ;;  %v6187_v37 = vld [vmem:[%s6733_s12] sm:$0xff]  ;;  %s6737_s12 = sld [smem:[#allocation31_spill]] }
 0x3f2   : > { %v6183_v35 = vsel %vm2182_vm0, %v3018_v16, 0 }
 0x463   : > { %v2640_v38 = vpop.f32.mrf.mxu2 }
 0x464   : > { %v2641_v45 = vadd.f32 %v6138_v41, %v2640_v38 }
 0x466   : > { %v2644_v50 = vpack.c.bf16 %v2641_v45, %v2641_v45 }
 0x468   : > { %v6150_v34 = vunpack.c.l.bf16 %v2644_v50 }
 0x46a   : > { %v2651_v18 = vmul.f32 %v6077_v3, %v6150_v34  ;;  %v2702_v21 = vmul.f32 %v6075_v2, %v6150_v34  ;;  %v2777_v12 = vmul.f32 %v6081_v5, %v6150_v34 }
 0x46b   : > { %v2642_v11 = vpop.f32.mrf.mxu2 }
 0x46c   : > { %v2652_v24 = vpack.c.bf16 %v2651_v18, %v2651_v18  ;;  %v2703_v26 = vpack.c.bf16 %v2702_v21, %v2702_v21  ;;  %v2424_v18 = vadd.f32 %v6065_v43, %v6053_v31 }
 0x46d   : > { %v2585_v19 = vpop.f32.mrf.mxu0 }
 0x46e   : > { %v2586_v39 = vadd.f32 %v6134_v15, %v2585_v19  ;;  %v2428_v30 = vpack.c.bf16 %v2424_v18, %v2424_v18 }
 0x470   : > { %v2608_v42 = vpack.c.bf16 %v2586_v39, %v2586_v39 }
 0x472   : > { %v2653_v48 = vunpack.c.l.bf16 %v2608_v42 }
 0x474   : > { %v2655_v52 = vmul.f32 %v2653_v48, %v6077_v3  ;;  %v2704_v53 = vmul.f32 %v6075_v2, %v2653_v48  ;;  %v2839_v54 = vmul.f32 %v6079_v4, %v2653_v48  ;;  %v2779_v55 = vmul.f32 %v6081_v5, %v2653_v48 }
 0x475   : > { %v2587_v46 = vpop.f32.mrf.mxu0 }
 0x476   : > { %v2588_v47 = vadd.f32 %v6134_v15, %v2587_v46 }
 0x478   : > { %v2609_v49 = vpack.c.bf16 %v2588_v47, %v2588_v47 }
 0x47a   : > { %v2654_v51 = vunpack.c.l.bf16 %v2609_v49 }
 0x47c   : > { %v2656_v56 = vmul.f32 %v2654_v51, %v6077_v3  ;;  %v2705_v58 = vmul.f32 %v6075_v2, %v2654_v51  ;;  %v2840_v59 = vmul.f32 %v6079_v4, %v2654_v51  ;;  %v2780_v60 = vmul.f32 %v6081_v5, %v2654_v51 }
 0x47e   : > { %v2657_v1 = vpack.c.bf16 %v2656_v56, %v2655_v52  ;;  %v2706_v7 = vpack.c.bf16 %v2705_v58, %v2704_v53  ;;  %v2841_v8 = vpack.c.bf16 %v2840_v59, %v2839_v54  ;;  %v2781_v9 = vpack.c.bf16 %v2780_v60, %v2779_v55 }
 0x480   : > { %v2662_v13 = vsel %vm2182_vm0, %v2657_v1, 0  ;;  %v2711_v44 = vsel %vm2182_vm0, %v2706_v7, 0  ;;  %v2846_v14 = vsel %vm2182_vm0, %v2841_v8, 0  ;;  %v2786_v17 = vsel %vm2182_vm0, %v2781_v9, 0 }
 0x481   : > { %2671 = vmatpush.bf16.xpose.msrb.mxu3 %v2662_v13  ;;  %2720 = vmatpush.bf16.xpose.msrb.mxu0 %v2711_v44  ;;  %v5034_v13 = vld [vmem:[%s6734_s5 + $0x8] sm:$0xff] }
 0x482   : > { %2855 = vmatpush.bf16.xpose.msra.mxu1 %v2846_v14  ;;  %v5033_v14 = vld [vmem:[%s6734_s5] sm:$0xff]  ;;  %s6618_s5 = scalar_lea.vmem [#allocation2], %s6020_s1 }
 0x488   : > { %4791 = vmatmul.msk.bf16.vlgmr.msrb.gmra.mxu3 %vm2182_vm0, %v2652_v24  ;;  %4792 = vmatmul.msk.bf16.vlgmr.msrb.gmra.mxu0 %vm2182_vm0, %v2703_v26 }
 0x489   : > { %2795 = vmatpush.bf16.xpose.msra.mxu3 %v2786_v17  ;;  %2828 = vmatpush.bf16.msra.mxu0 %v2817_v20  ;;  %v2778_v20 = vpack.c.bf16 %v2777_v12, %v2777_v12  ;;  %v6203_v12 = vunpack.c.l.bf16 %v2428_v30 }
 0x48b   : > { %v3013_v31 = vmul.f32 %v6203_v12, %v6077_v3 }
 0x48d   : > { %2948 = vmatpush.bf16.msrb.mxu0 %v5034_v13 }
 0x491   : > { %2920 = vmatpush.bf16.msrb.mxu3 %v6166_v23  ;;  %2949 = vmatpush.bf16.msrb.mxu0 %v5033_v14  ;;  %v3186_v14 = vmul.f32 %v6203_v12, %v6079_v4 }
 0x495   : > { %2921 = vmatpush.bf16.msrb.mxu3 %v6172_v32 }
 0x498   : > { %4795 = vmatmul.msk.bf16.vlgmr.msra.gmra.mxu3 %vm2182_vm0, %v2778_v20 }
 0x499   : > { %3032 = vmatpush.bf16.xpose.msra.mxu3 %v6183_v35 }
 0x505   : > { %v2722_v36 = vpop.f32.mrf.mxu0 }
 0x506   : > { %v2726_v38 = vmul.f32 0.35355338, %v2722_v36  ;;  %v2837_v36 = vmul.f32 %v6079_v4, %v6150_v34 }
 0x508   : > { %v2727_v11 = vadd.f32 %v2726_v38, %v6187_v37 }
 0x50a   : > { %v2728_v19 = vsel %vm2679_vm14, %v2727_v11, -inf }
 0x50b   : > { %2729 = vmax.xlane.f32.xlu2 %v2728_v19  ;;  %v2673_v39 = vpop.f32.mrf.mxu3  ;;  %v2838_v19 = vpack.c.bf16 %v2837_v36, %v2837_v36 }
 0x50c   : > { %v2677_v55 = vmul.f32 0.35355338, %v2673_v39 }
 0x50d   : > { %v2724_v42 = vpop.f32.mrf.mxu0 }
 0x50e   : > { %v2678_v58 = vadd.f32 %v2677_v55, %v6187_v37 }
 0x510   : > { %v2680_v59 = vsel %vm2679_vm14, %v2678_v58, -inf }
 0x513   : > { %v2675_v45 = vpop.f32.mrf.mxu3 }
 0x51b   : > { %v2797_v46 = vpop.f32.mrf.mxu3 }
 0x51c   : > { %v2801_v47 = vmul.f32 0.35355338, %v2797_v46 }
 0x51e   : > { %v2802_v48 = vadd.f32 %v2801_v47, %v6187_v37  ;;  %v3152_v47 = vmul.f32 %v6174_v33, %v6079_v4 }
 0x520   : > { %v2803_v49 = vsel %vm2679_vm14, %v2802_v48, -inf }
 0x521   : > { %2804 = vmax.xlane.f32.xlu1 %v2803_v49 }
 0x523   : > { %v2799_v50 = vpop.f32.mrf.mxu3 }
 0x57e   : > { %v2730_v51 = vpop.xlane.xlu2 %2729 }
 0x57f   : > { %v2731_v52 = vsub.f32 %v2727_v11, %v2730_v51  ;;  %v3014_v11 = vpack.c.bf16 %v3013_v31, %v3013_v31 }
 0x581   : > { %v2732_v53 = vmul.f32 1.442695, %v2731_v52  ;;  %v2977_v52 = vmul.f32 %v6174_v33, %v6077_v3 }
 0x583   : > { %5231 = vpow2.f32 %v2732_v53  ;;  %v2978_v55 = vpack.c.bf16 %v2977_v52, %v2977_v52 }
 0x589   : > { %v5232_v54 = vpop.eup %5231 }
 0x58a   : > { %v2734_v56 = vsel %vm2679_vm14, %v5232_v54, 0.0 }
 0x58b   : > { %2735 = vadd.xlane.f32.xlu0 %v2734_v56 }
 0x593   : > { %2681 = vmax.xlane.f32.xlu0 %v2680_v59 }
 0x594   : > { %v2805_v60 = vpop.xlane.xlu1 %2804 }
 0x595   : > { %v2806_v1 = vsub.f32 %v2802_v48, %v2805_v60  ;;  %v3153_v48 = vpack.c.bf16 %v3152_v47, %v3152_v47 }
 0x597   : > { %v2807_v7 = vmul.f32 1.442695, %v2806_v1  ;;  %v6228_v49 = vsel %vm2182_vm0, %v3153_v48, 0 }
 0x599   : > { %5233 = vpow2.f32 %v2807_v7 }
 0x59f   : > { %v5234_v8 = vpop.eup %5233 }
 0x5a0   : > { %v2809_v9 = vsel %vm2679_vm14, %v5234_v8, 0.0 }
 0x5a1   : > { %2810 = vadd.xlane.f32.xlu2 %v2809_v9 }
 0x5fe   : > { %v2736_v44 = vpop.xlane.xlu0 %2735 }
 0x5ff   : > { %5235 = vrcp.f32 %v2736_v44  ;;  %v5213_v44 = vld [vmem:[%s6735_s17] ss:$0 sm:$0xff]  ;;  %s6738_s17 = sld [smem:[#allocation55_spill]] }
 0x605   : > { %v5236_v17 = vpop.eup %5235 }
 0x606   : > { %v2738_v21 = vmul.f32 %v5236_v17, %v5232_v54  ;;  %v2682_v22 = vpop.xlane.xlu0 %2681 }
 0x607   : > { %v2683_v24 = vsub.f32 %v2678_v58, %v2682_v22 }
 0x608   : > { %v2739_v26 = vpack.c.bf16 %v2738_v21, %v2738_v21  ;;  %v3187_v21 = vpack.c.bf16 %v3186_v14, %v3186_v14 }
 0x609   : > { %v2684_v27 = vmul.f32 1.442695, %v2683_v24 }
 0x60a   : > { %4793 = vmatmul.msk.bf16.vlgmr.msrb.gmra.mxu1 %vm2679_vm14, %v2739_v26  ;;  %v6245_v24 = vsel %vm3056_vm15, %v3187_v21, 0 }
 0x60b   : > { %5237 = vpow2.f32 %v2684_v27  ;;  %2965 = vmatpush.bf16.msrb.mxu1 %v6045_v28  ;;  %v3051_v28 = vmul.f32 %v6203_v12, %v6075_v2 }
 0x60d   : > { %v3052_v45 = vpack.c.bf16 %v3051_v28, %v3051_v28  ;;  %v3094_v28 = vmul.f32 %v6174_v33, %v6081_v5 }
 0x60f   : > { %2966 = vmatpush.bf16.msrb.mxu1 %v6049_v29  ;;  %v6215_v29 = vsel %vm3056_vm15, %v3014_v11, 0  ;;  %v6220_v34 = vsel %vm3056_vm15, %v3052_v45, 0  ;;  %v3095_v45 = vpack.c.bf16 %v3094_v28, %v3094_v28 }
 0x611   : > { %v5238_v16 = vpop.eup %5237  ;;  %v6254_v48 = vsel %vm2182_vm0, %v3095_v45, 0 }
 0x612   : > { %v2686_v20 = vsel %vm2679_vm14, %v5238_v16, 0.0 }
 0x613   : > { %2687 = vadd.xlane.f32.xlu2 %v2686_v20 }
 0x614   : > { %v2811_v38 = vpop.xlane.xlu2 %2810 }
 0x615   : > { %5239 = vrcp.f32 %v2811_v38 }
 0x61a   : > { %4797 = vmatmul.msk.bf16.vlgmr.msra.gmra.mxu1 %vm2182_vm0, %v2838_v19 }
 0x61b   : > { %v5240_v39 = vpop.eup %5239  ;;  %3086 = vmatpush.bf16.msra.mxu1 %v6215_v29 }
 0x61c   : > { %v2813_v42 = vmul.f32 %v5240_v39, %v5234_v8 }
 0x61e   : > { %v2814_v46 = vpack.c.bf16 %v2813_v42, %v2813_v42 }
 0x620   : > { %4796 = vmatmul.msk.bf16.vlgmr.msra.gmra.mxu0 %vm2679_vm14, %v2814_v46 }
 0x621   : > { %3067 = vmatpush.bf16.msra.mxu0 %v6220_v34 }
 0x630   : > { %4816 = vmatmul.msk.bf16.vlgmr.msrb.gmra.mxu0 %vm2182_vm0, %v5996_v62  ;;  %v6235_v62 = vsel %vm2182_vm0, %v2978_v55, 0 }
 0x631   : > { %3167 = vmatpush.bf16.xpose.msrb.mxu0 %v6228_v49 }
 0x686   : > { %v2688_v50 = vpop.xlane.xlu2 %2687 }
 0x687   : > { %5241 = vrcp.f32 %v2688_v50  ;;  %v2755_v51 = vpop.f32.mrf.mxu1 }
 0x68d   : > { %v5242_v53 = vpop.eup %5241 }
 0x68e   : > { %v2690_v54 = vmul.f32 %v5242_v53, %v5238_v16 }
 0x68f   : > { %v2757_v56 = vpop.f32.mrf.mxu1 }
 0x690   : > { %v2691_v58 = vpack.c.bf16 %v2690_v54, %v2690_v54 }
 0x692   : > { %4794 = vmatmul.msk.bf16.vlgmr.msrb.gmra.mxu2 %vm2679_vm14, %v2691_v58  ;;  %v3128_v58 = vmul.f32 %v6203_v12, %v6081_v5 }
 0x693   : > { %2992 = vmatpush.bf16.xpose.msrb.mxu2 %v6235_v62 }
 0x697   : > { %v2857_v59 = vpop.f32.mrf.mxu1 }
 0x698   : > { %v2861_v60 = vmul.f32 0.35355338, %v2857_v59 }
 0x69a   : > { %v2862_v1 = vadd.f32 %v2861_v60, %v6187_v37 }
 0x69c   : > { %v2863_v7 = vsel %vm2679_vm14, %v2862_v1, -inf }
 0x69d   : > { %2864 = vmax.xlane.f32.xlu1 %v2863_v7  ;;  %v2830_v8 = vpop.f32.mrf.mxu0  ;;  %v3129_v7 = vpack.c.bf16 %v3128_v58, %v3128_v58 }
 0x69f   : > { %v2859_v9 = vpop.f32.mrf.mxu1 }
 0x6a5   : > { %v2832_v13 = vpop.f32.mrf.mxu0 }
 0x6a6   : > { %v6271_v13 = vsel %vm3056_vm15, %v3129_v7, 0  ;;  %v5066_v7 = vld [vmem:[%s6736_s21 + $0x18] sm:$0xff] }
 0x6ad   : > { %v2951_v17 = vpop.f32.mrf.mxu0 }
 0x6ae   : > { %v2952_v18 = vadd.f32 %v5213_v44, %v2951_v17 }
 0x6b0   : > { %v2955_v22 = vpack.c.bf16 %v2952_v18, %v2952_v18 }
 0x6b2   : > { %4817 = vmatmul.msk.bf16.vlgmr.msrb.gmra.mxu1 %vm2182_vm0, %v2955_v22 }
 0x6b3   : > { %3201 = vmatpush.bf16.msrb.mxu1 %v6245_v24 }
 0x6b5   : > { %v2953_v37 = vpop.f32.mrf.mxu0 }
 0x710   : > { %v2865_v26 = vpop.xlane.xlu1 %2864 }
 0x711   : > { %v2866_v27 = vsub.f32 %v2862_v1, %v2865_v26 }
 0x713   : > { %v2867_v30 = vmul.f32 1.442695, %v2866_v27 }
 0x715   : > { %5243 = vpow2.f32 %v2867_v30  ;;  %v2771_v16 = vpop.f32.mrf.mxu2 }
 0x716   : > { %v2772_v56 = vadd.f32 %v2771_v16, %v2755_v51 }
 0x718   : > { %v2834_v59 = vadd.f32 %v2830_v8, %v2772_v56 }
 0x71b   : > { %v5244_v20 = vpop.eup %5243 }
 0x71c   : > { %v2869_v31 = vsel %vm2679_vm14, %v5244_v20, 0.0 }
 0x71d   : > { %v2773_v36 = vpop.f32.mrf.mxu2  ;;  %2870 = vadd.xlane.f32.xlu0 %v2869_v31 }
 0x72f   : > { %v2968_v38 = vpop.f32.mrf.mxu1 }
 0x730   : > { %v2969_v46 = vadd.f32 %v6138_v41, %v2968_v38 }
 0x732   : > { %v2972_v50 = vpack.c.bf16 %v2969_v46, %v2969_v46 }
 0x734   : > { %v6257_v52 = vunpack.c.l.bf16 %v2972_v50 }
 0x736   : > { %v2974_v53 = vmul.f32 %v6257_v52, %v6077_v3  ;;  %v3092_v54 = vmul.f32 %v6257_v52, %v6081_v5  ;;  %v3015_v14 = vmul.f32 %v6257_v52, %v6075_v2 }
 0x737   : > { %v2970_v11 = vpop.f32.mrf.mxu1 }
 0x738   : > { %v2975_v33 = vpack.c.bf16 %v2974_v53, %v2974_v53  ;;  %v3093_v55 = vpack.c.bf16 %v3092_v54, %v3092_v54  ;;  %v3016_v12 = vpack.c.bf16 %v3015_v14, %v3015_v14 }
 0x790   : > { %v2871_v19 = vpop.xlane.xlu0 %2870 }
 0x791   : > { %5245 = vrcp.f32 %v2871_v19 }
 0x797   : > { %v5246_v39 = vpop.eup %5245 }
 0x798   : > { %v2873_v42 = vmul.f32 %v5246_v39, %v5244_v20 }
 0x79a   : > { %v2874_v47 = vpack.c.bf16 %v2873_v42, %v2873_v42 }
 0x79c   : > { %4798 = vmatmul.msk.bf16.vlgmr.msra.gmra.mxu2 %vm2679_vm14, %v2874_v47 }
 0x79d   : > { %3109 = vmatpush.bf16.xpose.msra.mxu2 %v6254_v48 }
 0x7ac   : > { %4818 = vmatmul.msk.bf16.vlgmr.msrb.gmra.mxu2 %vm2182_vm0, %v2975_v33 }
 0x7ad   : > { %3218 = vmatpush.bf16.msrb.mxu2 %v6166_v23 }
 0x7b1   : > { %3219 = vmatpush.bf16.msrb.mxu2 %v6172_v32 }
 0x7bc   : > { %4822 = vmatmul.msk.bf16.vlgmr.msra.gmra.mxu2 %vm2182_vm0, %v3093_v55 }
 0x81f   : > { %v2890_v60 = vpop.f32.mrf.mxu2 }
 0x820   : > { %v2894_v1 = vadd.f32 %v2890_v60, %v2834_v59 }
 0x822   : > { %v2895_v9 = vpack.c.bf16 %v2894_v1, %v2894_v1 }
 0x824   : > { %4807 = vmatmul.msk.bf16.vlgmr.msrb.gmra.mxu3 %vm2182_vm0, %v2895_v9  ;;  %v5065_v9 = vld [vmem:[%s6736_s21 + $0x10] sm:$0xff] }
 0x825   : > { %3143 = vmatpush.bf16.msrb.mxu3 %v6271_v13 }
 0x827   : > { %v2892_v44 = vpop.f32.mrf.mxu2 }
 0x82f   : > { %v2994_v51 = vpop.f32.mrf.mxu2 }
 0x830   : > { %v2998_v17 = vmul.f32 0.35355338, %v2994_v51 }
 0x832   : > { %v3000_v8 = vsel %vm2999_vm1, %v2998_v17, -inf }
 0x833   : > { %3001 = vmax.xlane.f32.xlu0 %v3000_v8 }
 0x834   : > { %4819 = vmatmul.msk.bf16.vlgmr.msra.gmra.mxu3 %vm2182_vm0, %v3016_v12 }
 0x835   : > { %3248 = vmatpush.bf16.msra.mxu3 %v5066_v7 }
 0x837   : > { %v2996_v18 = vpop.f32.mrf.mxu2 }
 0x839   : > { %3249 = vmatpush.bf16.msra.mxu3 %v5065_v9 }
 0x83f   : > { %v3111_v21 = vpop.f32.mrf.mxu2 }
 0x840   : > { %v3115_v19 = vmul.f32 0.35355338, %v3111_v21 }
 0x842   : > { %v3116_v39 = vsel %vm2999_vm1, %v3115_v19, -inf }
 0x847   : > { %v3113_v22 = vpop.f32.mrf.mxu2 }
 0x8a6   : > { %v3002_v37 = vpop.xlane.xlu0 %3001 }
 0x8a7   : > { %v3003_v26 = vsub.f32 %v2998_v17, %v3002_v37  ;;  %v2923_v27 = vpop.f32.mrf.mxu3 }
 0x8a9   : > { %v3004_v30 = vmul.f32 1.442695, %v3003_v26  ;;  %v3150_v26 = vmul.f32 %v6257_v52, %v6079_v4 }
 0x8ab   : > { %5247 = vpow2.f32 %v3004_v30  ;;  %v3151_v30 = vpack.c.bf16 %v3150_v26, %v3150_v26 }
 0x8af   : > { %v2925_v16 = vpop.f32.mrf.mxu3 }
 0x8b0   : > { %v6293_v16 = vld [vmem:[%s6737_s12] ss:$0 sm:$0xff]  ;;  %s6739_s12 = sld [smem:[#allocation61_spill]] }
 0x8b1   : > { %v5248_v20 = vpop.eup %5247 }
 0x8b2   : > { %v3006_v31 = vsel %vm2999_vm1, %v5248_v20, 0.0 }
 0x8b3   : > { %3007 = vadd.xlane.f32.xlu0 %v3006_v31 }
 0x8b7   : > { %v3034_v36 = vpop.f32.mrf.mxu3 }
 0x8b8   : > { %v3038_v38 = vmul.f32 0.35355338, %v3034_v36  ;;  %v3387_v36 = vpack.c.bf16 %v6040_v25, %v6040_v25 }
 0x8ba   : > { %v3039_v11 = vsel %vm2999_vm1, %v3038_v38, -inf }
 0x8bb   : > { %3040 = vmax.xlane.f32.xlu1 %v3039_v11 }
 0x8bf   : > { %v3036_v28 = vpop.f32.mrf.mxu3 }
 0x8c3   : > { %3117 = vmax.xlane.f32.xlu1 %v3116_v39 }
 0x926   : > { %v3008_v42 = vpop.xlane.xlu0 %3007 }
 0x927   : > { %5249 = vrcp.f32 %v3008_v42 }
 0x92d   : > { %v5250_v45 = vpop.eup %5249 }
 0x92e   : > { %v3010_v46 = vmul.f32 %v5250_v45, %v5248_v20  ;;  %v3041_v47 = vpop.xlane.xlu1 %3040  ;;  %v2924_v20 = vadd.f32 %v6293_v16, %v2923_v27 }
 0x92f   : > { %v3042_v50 = vsub.f32 %v3038_v38, %v3041_v47 }
 0x930   : > { %v3011_v53 = vpack.c.bf16 %v3010_v46, %v3010_v46  ;;  %v3226_v31 = vpack.c.bf16 %v2924_v20, %v2924_v20 }
 0x931   : > { %v3043_v33 = vmul.f32 1.442695, %v3042_v50 }
 0x932   : > { %4821 = vmatmul.msk.bf16.vlgmr.msra.gmra.mxu1 %vm2999_vm1, %v3011_v53 }
 0x933   : > { %5251 = vpow2.f32 %v3043_v33 }
 0x936   : > { %v3118_v54 = vpop.xlane.xlu1 %3117 }
 0x937   : > { %v3119_v55 = vsub.f32 %v3115_v19, %v3118_v54 }
 0x939   : > { %v5252_v56 = vpop.eup %5251  ;;  %v3120_v58 = vmul.f32 1.442695, %v3119_v55 }
 0x93a   : > { %v3045_v59 = vsel %vm2999_vm1, %v5252_v56, 0.0 }
 0x93b   : > { %5253 = vpow2.f32 %v3120_v58  ;;  %3046 = vadd.xlane.f32.xlu2 %v3045_v59 }
 0x941   : > { %v5254_v60 = vpop.eup %5253 }
 0x942   : > { %v3122_v1 = vsel %vm2999_vm1, %v5254_v60, 0.0 }
 0x943   : > { %3123 = vadd.xlane.f32.xlu1 %v3122_v1 }
 0x9ae   : > { %v3047_v44 = vpop.xlane.xlu2 %3046 }
 0x9af   : > { %5255 = vrcp.f32 %v3047_v44  ;;  %v3088_v14 = vpop.f32.mrf.mxu1 }
 0x9b5   : > { %v5256_v51 = vpop.eup %5255 }
 0x9b6   : > { %v3049_v17 = vmul.f32 %v5256_v51, %v5252_v56  ;;  %v3124_v12 = vpop.xlane.xlu1 %3123 }
 0x9b7   : > { %5257 = vrcp.f32 %v3124_v12  ;;  %v3090_v8 = vpop.f32.mrf.mxu1 }
 0x9b8   : > { %v3050_v18 = vpack.c.bf16 %v3049_v17, %v3049_v17  ;;  %v5064_v8 = vld [vmem:[%s6736_s21 + $0x8] sm:$0xff] }
 0x9ba   : > { %4820 = vmatmul.msk.bf16.vlgmr.msra.gmra.mxu0 %vm2999_vm1, %v3050_v18  ;;  %v5063_v18 = vld [vmem:[%s6736_s21] sm:$0xff] }
 0x9bb   : > { %3276 = vmatpush.bf16.msra.mxu0 %v5064_v8 }
 0x9bd   : > { %v5258_v21 = vpop.eup %5257 }
 0x9be   : > { %v3126_v22 = vmul.f32 %v5258_v21, %v5254_v60  ;;  %v5319_v21 = vld [vmem:[%s6704_s3 + $0x8] sm:$0xff]  ;;  %s6742_s3 = sld [smem:[#allocation60_spill]] }
 0x9bf   : > { %3277 = vmatpush.bf16.msra.mxu0 %v5063_v18 }
 0x9c0   : > { %v3127_v37 = vpack.c.bf16 %v3126_v22, %v3126_v22 }
 0x9c2   : > { %4823 = vmatmul.msk.bf16.vlgmr.msrb.gmra.mxu3 %vm2999_vm1, %v3127_v37 }
 0x9c3   : > { %3397 = vmatpush.bf16.msrb.mxu3 %v5978_v40 }
 0x9c7   : > { %3398 = vmatpush.bf16.msrb.mxu3 %v6005_v63 }
 0x9ca   : > { %4824 = vmatmul.msk.bf16.vlgmr.msrb.gmra.mxu0 %vm2182_vm0, %v3151_v30 }
 0x9cb   : > { %3414 = vmatpush.bf16.msrb.mxu0 %v5319_v21 }
 0x9cf   : > { %3415 = vmatpush.bf16.msrb.mxu0 %v6008_v0 }
 0x9d2   : > { %4835 = vmatmul.msk.bf16.vlgmr.msra.gmra.mxu3 %vm2182_vm0, %v3226_v31 }
 0x9e2   : > { %4871 = vmatmul.msk.bf16.vlgmr.msrb.gmra.mxu3 %vm2182_vm0, %v3387_v36 }
 0xa37   : > { %v3069_v40 = vpop.f32.mrf.mxu0 }
 0xa38   : > { %v3089_v52 = vadd.f32 %v3088_v14, %v3069_v40 }
 0xa3f   : > { %v3071_v38 = vpop.f32.mrf.mxu0 }
 0xa45   : > { %v3145_v11 = vpop.f32.mrf.mxu3 }
 0xa46   : > { %v3149_v63 = vadd.f32 %v3145_v11, %v3089_v52  ;;  %v3404_v11 = vpack.c.bf16 %v6024_v6, %v6024_v6 }
 0xa47   : > { %v3169_v19 = vpop.f32.mrf.mxu0 }
 0xa48   : > { %v3173_v28 = vmul.f32 0.35355338, %v3169_v19 }
 0xa4a   : > { %v3174_v39 = vsel %vm2999_vm1, %v3173_v28, -inf }
 0xa4b   : > { %3175 = vmax.xlane.f32.xlu2 %v3174_v39 }
 0xa4d   : > { %v3147_v42 = vpop.f32.mrf.mxu3 }
 0xa4f   : > { %v3171_v27 = vpop.f32.mrf.mxu0 }
 0xa55   : > { %v3251_v45 = vpop.f32.mrf.mxu3 }
 0xa5d   : > { %v3253_v46 = vpop.f32.mrf.mxu3 }
 0xa65   : > { %v3400_v47 = vpop.f32.mrf.mxu3 }
 0xa66   : > { %v3401_v50 = vadd.f32 %v6134_v15, %v3400_v47 }
 0xa68   : > { %v3421_v25 = vpack.c.bf16 %v3401_v50, %v3401_v50 }
 0xa6a   : > { %v6303_v53 = vunpack.c.l.bf16 %v3421_v25 }
 0xa6c   : > { %v3478_v33 = vmul.f32 %v6303_v53, %v6077_v3  ;;  %v3593_v54 = vmul.f32 %v6303_v53, %v6081_v5  ;;  %v3517_v20 = vmul.f32 %v6303_v53, %v6075_v2 }
 0xa6d   : > { %v3402_v55 = vpop.f32.mrf.mxu3 }
 0xa6e   : > { %v3479_v56 = vpack.c.bf16 %v3478_v33, %v3478_v33  ;;  %v3594_v58 = vpack.c.bf16 %v3593_v54, %v3593_v54  ;;  %v3518_v40 = vpack.c.bf16 %v3517_v20, %v3517_v20 }
 0xa70   : > { %v3484_v59 = vsel %vm2182_vm0, %v3479_v56, 0  ;;  %v3599_v60 = vsel %vm2182_vm0, %v3594_v58, 0  ;;  %v3523_v52 = vsel %vm2182_vm0, %v3518_v40, 0 }
 0xa71   : > { %3493 = vmatpush.bf16.xpose.msra.mxu3 %v3484_v59 }
 0xa79   : > { %3608 = vmatpush.bf16.xpose.msrb.mxu3 %v3599_v60  ;;  %v5074_v60 = vld [vmem:[%s6739_s12 + $0x8] sm:$0xff] }
 0xa7a   : > { %3336 = vmatpush.bf16.msra.mxu1 %v5074_v60 }
 0xabe   : > { %v3176_v15 = vpop.xlane.xlu2 %3175 }
 0xabf   : > { %v3177_v1 = vsub.f32 %v3173_v28, %v3176_v15  ;;  %v5073_v15 = vld [vmem:[%s6739_s12] sm:$0xff]  ;;  %s6751_s12 = sld [smem:[#allocation41_spill]] }
 0xac0   : > { %3337 = vmatpush.bf16.msra.mxu1 %v5073_v15 }
 0xac1   : > { %v3178_v7 = vmul.f32 1.442695, %v3177_v1  ;;  %v5028_v1 = vld [vmem:[%s6740_s25 + $0x8] sm:$0xff] }
 0xac3   : > { %5259 = vpow2.f32 %v3178_v7  ;;  %v5027_v7 = vld [vmem:[%s6740_s25] sm:$0xff] }
 0xac9   : > { %v5260_v9 = vpop.eup %5259 }
 0xaca   : > { %v3180_v44 = vsel %vm2999_vm1, %v5260_v9, 0.0 }
 0xacb   : > { %3181 = vadd.xlane.f32.xlu2 %v3180_v44 }
 0xb3e   : > { %v3182_v14 = vpop.xlane.xlu2 %3181 }
 0xb3f   : > { %5261 = vrcp.f32 %v3182_v14 }
 0xb45   : > { %v5262_v51 = vpop.eup %5261 }
 0xb46   : > { %v3184_v17 = vmul.f32 %v5262_v51, %v5260_v9 }
 0xb48   : > { %v3185_v12 = vpack.c.bf16 %v3184_v17, %v3184_v17 }
 0xb4a   : > { %4825 = vmatmul.msk.bf16.vlgmr.msrb.gmra.mxu1 %vm2999_vm1, %v3185_v12 }
 0xb4b   : > { %3449 = vmatpush.bf16.msrb.mxu1 %v5028_v1 }
 0xb4f   : > { %3450 = vmatpush.bf16.msrb.mxu1 %v5027_v7 }
 0xbc7   : > { %v3203_v22 = vpop.f32.mrf.mxu1 }
 0xbc8   : > { %v3207_v37 = vadd.f32 %v3203_v22, %v3149_v63  ;;  %v5215_v63 = vld [vmem:[%s6738_s17] ss:$0 sm:$0xff]  ;;  %s6741_s17 = sld [smem:[#allocation62_spill]] }
 0xbca   : > { %v3208_v26 = vpack.c.bf16 %v3207_v37, %v3207_v37 }
 0xbcc   : > { %4826 = vmatmul.msk.bf16.vlgmr.msrb.gmra.mxu2 %vm2182_vm0, %v3208_v26 }
 0xbce   : > { %v5078_v8 = vld [vmem:[%s6741_s17 + $0x18] sm:$0xff]  ;;  %v5077_v21 = vld [vmem:[%s6741_s17 + $0x10] sm:$0xff]  ;;  %v5076_v26 = vld [vmem:[%s6741_s17 + $0x8] sm:$0xff] }
 0xbcf   : > { %v3205_v30 = vpop.f32.mrf.mxu1  ;;  %3377 = vmatpush.bf16.msra.mxu2 %v5078_v8  ;;  %v5075_v40 = vld [vmem:[%s6741_s17] sm:$0xff]  ;;  %s6752_s17 = sld [smem:[#allocation43_spill]] }
 0xbd0   : > { %v5216_v30 = vld [vmem:[%s6742_s3] ss:$0 sm:$0xff]  ;;  %s6743_s3 = sld [smem:[#allocation18_spill]] }
 0xbd3   : > { %3378 = vmatpush.bf16.msra.mxu2 %v5077_v21 }
 0xbd7   : > { %3379 = vmatpush.bf16.msra.mxu2 %v5076_v26 }
 0xbdb   : > { %3380 = vmatpush.bf16.msra.mxu2 %v5075_v40 }
 0xc4f   : > { %v3221_v31 = vpop.f32.mrf.mxu2 }
 0xc50   : > { %v3222_v36 = vadd.f32 %v6293_v16, %v3221_v31 }
 0xc52   : > { %v3225_v38 = vpack.c.bf16 %v3222_v36, %v3222_v36 }
 0xc54   : > { %4844 = vmatmul.msk.bf16.vlgmr.msra.gmra.mxu0 %vm2182_vm0, %v3225_v38 }
 0xc55   : > { %3532 = vmatpush.bf16.xpose.msra.mxu0 %v3523_v52 }
 0xc57   : > { %v3223_v0 = vpop.f32.mrf.mxu2 }
 0xc64   : > { %4872 = vmatmul.msk.bf16.vlgmr.msrb.gmra.mxu0 %vm2182_vm0, %v3404_v11 }
 0xcd1   : > { %v3279_v19 = vpop.f32.mrf.mxu0 }
 0xcd2   : > { %v3280_v28 = vadd.f32 %v3279_v19, %v3251_v45  ;;  %v6360_v19 = vld [vmem:[%s6719_s18] sm:$0xff] }
 0xcd4   : > { %v3286_v39 = vadd.f32 %v5215_v63, %v3280_v28  ;;  %v6356_v63 = vld [vmem:[%s6719_s18 + $0x8] sm:$0xff]  ;;  %v6364_v28 = vld [vmem:[%s6702_s8] sm:$0xff]  ;;  %s6750_s8 = sld [smem:[#allocation53_spill]] }
 0xcd5   : > { %3466 = vmatpush.bf16.msrb.mxu2 %v6356_v63 }
 0xcd6   : > { %v6328_v42 = vadd.f32 %v3286_v39, %v5992_v61  ;;  %v5323_v39 = vld [vmem:[%s6703_s6] sm:$0xff]  ;;  %s6748_s6 = sld [smem:[#allocation37_spill]] }
 0xcd8   : > { %v3288_v27 = vsel %vm2182_vm0, %v6328_v42, 0.0 }
 0xcd9   : > { %v3281_v46 = vpop.f32.mrf.mxu0  ;;  %3289 = vadd.xlane.f32.xlu0 %v3288_v27  ;;  %3467 = vmatpush.bf16.msrb.mxu2 %v6360_v19  ;;  %v3423_v27 = vadd.f32 %v5323_v39, %v6364_v28 }
 0xcda   : > { %v3651_v46 = vmul.f32 %v6303_v53, %v6079_v4 }
 0xce1   : > { %v3417_v47 = vpop.f32.mrf.mxu0 }
 0xce2   : > { %v3418_v50 = vadd.f32 %v6065_v43, %v3417_v47  ;;  %v3424_v47 = vpack.c.bf16 %v3423_v27, %v3423_v27 }
 0xce4   : > { %v3422_v6 = vpack.c.bf16 %v3418_v50, %v3418_v50  ;;  %v3652_v50 = vpack.c.bf16 %v3651_v46, %v3651_v46 }
 0xce6   : > { %v6333_v25 = vunpack.c.l.bf16 %v3422_v6  ;;  %v3657_v6 = vsel %vm2182_vm0, %v3652_v50, 0 }
 0xce8   : > { %v3627_v45 = vmul.f32 %v6333_v25, %v6081_v5  ;;  %v3551_v20 = vmul.f32 %v6333_v25, %v6075_v2 }
 0xce9   : > { %v3419_v33 = vpop.f32.mrf.mxu0 }
 0xcea   : > { %v3628_v61 = vpack.c.bf16 %v3627_v45, %v3627_v45  ;;  %v3552_v52 = vpack.c.bf16 %v3551_v20, %v3551_v20  ;;  %v3513_v45 = vmul.f32 %v6333_v25, %v6077_v3 }
 0xcec   : > { %v3633_v54 = vsel %vm3056_vm15, %v3628_v61, 0  ;;  %v3557_v11 = vsel %vm3056_vm15, %v3552_v52, 0 }
 0xced   : > { %3642 = vmatpush.bf16.msrb.mxu0 %v3633_v54  ;;  %v3514_v54 = vpack.c.bf16 %v3513_v45, %v3513_v45 }
 0xcef   : > { %v3576_v53 = vsel %vm3056_vm15, %v3514_v54, 0 }
 0xd4c   : > { %v3290_v55 = vpop.xlane.xlu0 %3289 }
 0xd4d   : > { %v3291_v56 = vmul.f32 %v3290_v55, %v5955_v10 }
 0xd4f   : > { %v3292_v58 = vsub.f32 %v6328_v42, %v3291_v56 }
 0xd51   : > { %v3293_v43 = vmul.f32 %v3292_v58, %v3292_v58 }
 0xd53   : > { %v3294_v59 = vsel %vm2182_vm0, %v3293_v43, 0.0  ;;  %v3685_v43 = vmul.f32 %v6333_v25, %v6079_v4 }
 0xd54   : > { %3295 = vadd.xlane.f32.xlu1 %v3294_v59 }
 0xd55   : > { %v3686_v15 = vpack.c.bf16 %v3685_v43, %v3685_v43 }
 0xd57   : > { %v3691_v7 = vsel %vm3056_vm15, %v3686_v15, 0 }
 0xdc7   : > { %v3296_v9 = vpop.xlane.xlu1 %3295 }
 0xdc8   : > { %v3297_v44 = vmul.f32 %v3296_v9, %v5955_v10 }
 0xdca   : > { %v3298_v14 = vadd.f32 1e-05, %v3297_v44 }
 0xdcc   : > { %5263 = vrsqrt.f32 %v3298_v14  ;;  %vm3305_vm3 = vweird.f32 %v3298_v14 }
 0xdd2   : > { %v5264_v51 = vpop.eup %5263 }
 0xdd3   : > { %v3300_v17 = vmul.f32 %v5264_v51, %v3298_v14  ;;  %vm3306_vm2 = vweird.f32 %v5264_v51 }
 0xdd4   : > { %vm3307_vm4 = vmor %vm3305_vm3, %vm3306_vm2 }
 0xdd5   : > { %v3301_v12 = vmul.f32 %v5264_v51, %v3300_v17 }
 0xdd7   : > { %v3302_v18 = vmul.f32 0.5, %v3301_v12 }
 0xdd9   : > { %v3303_v22 = vsub.f32 1.5, %v3302_v18 }
 0xddb   : > { %v3304_v37 = vmul.f32 %v5264_v51, %v3303_v22 }
 0xddd   : > { %v3308_v31 = vsel %vm3307_vm4, %v5264_v51, %v3304_v37 }
 0xdde   : > { %v3309_v36 = vmul.f32 %v3308_v31, %v3292_v58  ;;  %v5217_v58 = vld [vmem:[%s6743_s3] ss:$0 sm:$0xff]  ;;  %s6744_s3 = sld [smem:[#allocation23_spill]] }
 0xde0   : > { %v3313_v38 = vmul.f32 %v5216_v30, %v3309_v36 }
 0xde2   : > { %v3314_v0 = vpack.c.bf16 %v3313_v38, %v3313_v38 }
 0xde4   : > { %4853 = vmatmul.msk.bf16.vlgmr.msra.gmra.mxu1 %vm2182_vm0, %v3314_v0 }
 0xde5   : > { %3566 = vmatpush.bf16.msra.mxu1 %v3557_v11 }
 0xdf4   : > { %4881 = vmatmul.msk.bf16.vlgmr.msrb.gmra.mxu1 %vm2182_vm0, %v3424_v47 }
 0xdf5   : > { %3666 = vmatpush.bf16.xpose.msrb.mxu1 %v3657_v6 }
 0xe61   : > { %v3339_v33 = vpop.f32.mrf.mxu1 }
 0xe62   : > { %v3343_v61 = vmax.f32 %v3339_v33, 0.0 }
 0xe64   : > { %v3344_v55 = vpack.c.bf16 %v3343_v61, %v3343_v61 }
 0xe66   : > { %4870 = vmatmul.msk.bf16.vlgmr.msra.gmra.mxu2 %vm3369_vm5, %v3344_v55 }
 0xe67   : > { %3585 = vmatpush.bf16.msra.mxu2 %v3576_v53  ;;  %v5032_v53 = vld [vmem:[%s6744_s3 + $0x8] sm:$0xff] }
 0xe69   : > { %v3341_v56 = vpop.f32.mrf.mxu1 }
 0xe6a   : > { %v5031_v56 = vld [vmem:[%s6744_s3] sm:$0xff]  ;;  %s6747_s3 = sld [smem:[#allocation38_spill]] }
 0xe71   : > { %v3452_v59 = vpop.f32.mrf.mxu1 }
 0xe72   : > { %v3453_v60 = vadd.f32 %v5217_v58, %v3452_v59 }
 0xe74   : > { %v3456_v1 = vpack.c.bf16 %v3453_v60, %v3453_v60 }
 0xe76   : > { %4882 = vmatmul.msk.bf16.vlgmr.msrb.gmra.mxu2 %vm2182_vm0, %v3456_v1 }
 0xe77   : > { %3700 = vmatpush.bf16.msrb.mxu2 %v3691_v7 }
 0xe79   : > { %v3454_v9 = vpop.f32.mrf.mxu1 }
 0xee9   : > { %v3382_v44 = vpop.f32.mrf.mxu2 }
 0xeea   : > { %v3383_v14 = vadd.f32 %v3382_v44, %v6328_v42 }
 0xeec   : > { %3386 = vst.msk [vmem:[%s6618_s5] sm:$0xff] %vm2182_vm0, %v3383_v14  ;;  %s6745_s5 = sld [smem:[#allocation22_spill]] }
 0xef1   : > { %v3384_v51 = vpop.f32.mrf.mxu2 }
 0xef9   : > { %v3469_v17 = vpop.f32.mrf.mxu2 }
 0xefa   : > { %v3470_v25 = vadd.f32 %v6138_v41, %v3469_v17 }
 0xefc   : > { %v3473_v12 = vpack.c.bf16 %v3470_v25, %v3470_v25 }
 0xefe   : > { %v3474_v8 = vunpack.c.l.bf16 %v3473_v12 }
 0xf00   : > { %v3475_v18 = vmul.f32 %v3474_v8, %v6077_v3  ;;  %v3515_v21 = vmul.f32 %v3474_v8, %v6075_v2  ;;  %v3591_v42 = vmul.f32 %v3474_v8, %v6081_v5  ;;  %v3649_v44 = vmul.f32 %v3474_v8, %v6079_v4 }
 0xf01   : > { %v3471_v22 = vpop.f32.mrf.mxu2 }
 0xf02   : > { %v3476_v37 = vpack.c.bf16 %v3475_v18, %v3475_v18  ;;  %v3516_v26 = vpack.c.bf16 %v3515_v21, %v3515_v21  ;;  %v3592_v41 = vpack.c.bf16 %v3591_v42, %v3591_v42  ;;  %v3650_v51 = vpack.c.bf16 %v3649_v44, %v3649_v44  ;;  %v5218_v42 = vld [vmem:[%s6745_s5] ss:$0 sm:$0xff]  ;;  %s6746_s5 = sld [smem:[#allocation54_spill]] }
 0xf04   : > { %4883 = vmatmul.msk.bf16.vlgmr.msra.gmra.mxu3 %vm2182_vm0, %v3476_v37  ;;  %4884 = vmatmul.msk.bf16.vlgmr.msra.gmra.mxu0 %vm2182_vm0, %v3516_v26 }
 0xf05   : > { %3717 = vmatpush.bf16.msra.mxu3 %v6166_v23  ;;  %3745 = vmatpush.bf16.msra.mxu0 %v5032_v53 }
 0xf09   : > { %3718 = vmatpush.bf16.msra.mxu3 %v6172_v32  ;;  %3746 = vmatpush.bf16.msra.mxu0 %v5031_v56 }
 0xf14   : > { %4887 = vmatmul.msk.bf16.vlgmr.msrb.gmra.mxu3 %vm2182_vm0, %v3592_v41 }
 0xf15   : > { %3814 = vmatpush.bf16.xpose.msrb.mxu3 %v6183_v35 }
 0xf81   : > { %v3534_v30 = vpop.f32.mrf.mxu0 }
 0xf82   : > { %v3538_v20 = vmul.f32 0.35355338, %v3534_v30 }
 0xf84   : > { %v3539_v31 = vsel %vm2999_vm1, %v3538_v20, -inf }
 0xf85   : > { %3540 = vmax.xlane.f32.xlu2 %v3539_v31 }
 0xf87   : > { %v3495_v36 = vpop.f32.mrf.mxu3 }
 0xf88   : > { %v3499_v47 = vmul.f32 0.35355338, %v3495_v36 }
 0xf89   : > { %v3536_v40 = vpop.f32.mrf.mxu0 }
 0xf8a   : > { %v3500_v50 = vsel %vm2999_vm1, %v3499_v47, -inf }
 0xf8f   : > { %v3497_v38 = vpop.f32.mrf.mxu3 }
 0xf97   : > { %v3610_v52 = vpop.f32.mrf.mxu3 }
 0xf98   : > { %v3614_v0 = vmul.f32 0.35355338, %v3610_v52 }
 0xf9a   : > { %v3615_v23 = vsel %vm2999_vm1, %v3614_v0, -inf }
 0xf9b   : > { %3616 = vmax.xlane.f32.xlu1 %v3615_v23 }
 0xf9f   : > { %v3612_v32 = vpop.f32.mrf.mxu3 }
 0xff8   : > { %v3541_v11 = vpop.xlane.xlu2 %3540 }
 0xff9   : > { %v3542_v39 = vsub.f32 %v3538_v20, %v3541_v11 }
 0xffb   : > { %v3543_v27 = vmul.f32 1.442695, %v3542_v39 }
 0xffd   : > { %5265 = vpow2.f32 %v3543_v27 }
0x1003   : > { %v5266_v35 = vpop.eup %5265 }
0x1004   : > { %v3545_v46 = vsel %vm2999_vm1, %v5266_v35, 0.0 }
0x1005   : > { %3546 = vadd.xlane.f32.xlu0 %v3545_v46 }
0x100d   : > { %3501 = vmax.xlane.f32.xlu0 %v3500_v50 }
0x100e   : > { %v3617_v6 = vpop.xlane.xlu1 %3616 }
0x100f   : > { %v3618_v45 = vsub.f32 %v3614_v0, %v3617_v6 }
0x1011   : > { %v3619_v33 = vmul.f32 1.442695, %v3618_v45 }
0x1013   : > { %5267 = vpow2.f32 %v3619_v33 }
0x1019   : > { %v5268_v61 = vpop.eup %5267 }
0x101a   : > { %v3621_v54 = vsel %vm2999_vm1, %v5268_v61, 0.0 }
0x101b   : > { %3622 = vadd.xlane.f32.xlu2 %v3621_v54  ;;  %v5326_v54 = vld [vmem:[%s6732_s19] sm:$0xff] }
0x1078   : > { %v3547_v55 = vpop.xlane.xlu0 %3546 }
0x1079   : > { %5269 = vrcp.f32 %v3547_v55 }
0x107f   : > { %v5270_v58 = vpop.eup %5269 }
0x1080   : > { %v3549_v43 = vmul.f32 %v5270_v58, %v5266_v35  ;;  %v3502_v59 = vpop.xlane.xlu0 %3501  ;;  %v5324_v35 = vld [vmem:[%s6731_s7] ss:$0 sm:$0xff]  ;;  %s6749_s7 = sld [smem:[#allocation39_spill]] }
0x1081   : > { %v3503_v60 = vsub.f32 %v3499_v47, %v3502_v59 }
0x1082   : > { %v3550_v15 = vpack.c.bf16 %v3549_v43, %v3549_v43 }
0x1083   : > { %v3504_v1 = vmul.f32 1.442695, %v3503_v60 }
0x1084   : > { %4885 = vmatmul.msk.bf16.vlgmr.msra.gmra.mxu1 %vm2999_vm1, %v3550_v15 }
0x1085   : > { %5271 = vpow2.f32 %v3504_v1  ;;  %3762 = vmatpush.bf16.msra.mxu1 %v6356_v63 }
0x1089   : > { %3763 = vmatpush.bf16.msra.mxu1 %v6360_v19 }
0x108b   : > { %v5272_v7 = vpop.eup %5271 }
0x108c   : > { %v3506_v9 = vsel %vm2999_vm1, %v5272_v7, 0.0 }
0x108d   : > { %3507 = vadd.xlane.f32.xlu2 %v3506_v9 }
0x108e   : > { %v3623_v14 = vpop.xlane.xlu2 %3622 }
0x108f   : > { %5273 = vrcp.f32 %v3623_v14 }
0x1094   : > { %4889 = vmatmul.msk.bf16.vlgmr.msrb.gmra.mxu1 %vm2182_vm0, %v3650_v51 }
0x1095   : > { %v5274_v17 = vpop.eup %5273  ;;  %3859 = vmatpush.bf16.msrb.mxu1 %v6215_v29 }
0x1096   : > { %v3625_v25 = vmul.f32 %v5274_v17, %v5268_v61  ;;  %v5325_v61 = vld [vmem:[%s6732_s19 + $0x8] sm:$0xff]  ;;  %s5347_s19 = scalar_lea.hbm %s6701_s9, 16 }
0x1098   : > { %v3626_v12 = vpack.c.bf16 %v3625_v25, %v3625_v25 }
0x109a   : > { %4888 = vmatmul.msk.bf16.vlgmr.msrb.gmra.mxu0 %vm2999_vm1, %v3626_v12 }
0x109b   : > { %3843 = vmatpush.bf16.msrb.mxu0 %v6220_v34 }
0x10aa   : > { %4900 = vmatmul.msk.bf16.vlgmr.msra.gmra.mxu0 %vm2182_vm0, %v5984_v57 }
0x10ab   : > { %3925 = vmatpush.bf16.xpose.msra.mxu0 %v6228_v49 }
0x1100   : > { %v3508_v63 = vpop.xlane.xlu2 %3507 }
0x1101   : > { %5275 = vrcp.f32 %v3508_v63  ;;  %v3568_v19 = vpop.f32.mrf.mxu1 }
0x1107   : > { %v5276_v8 = vpop.eup %5275 }
0x1108   : > { %v3510_v18 = vmul.f32 %v5276_v8, %v5272_v7 }
0x1109   : > { %v3570_v21 = vpop.f32.mrf.mxu1 }
0x110a   : > { %v3511_v22 = vpack.c.bf16 %v3510_v18, %v3510_v18 }
0x110c   : > { %4886 = vmatmul.msk.bf16.vlgmr.msra.gmra.mxu2 %vm2999_vm1, %v3511_v22 }
0x110d   : > { %3783 = vmatpush.bf16.xpose.msra.mxu2 %v6235_v62 }
0x1111   : > { %v3668_v29 = vpop.f32.mrf.mxu1 }
0x1112   : > { %v3672_v37 = vmul.f32 0.35355338, %v3668_v29 }
0x1114   : > { %v3673_v34 = vsel %vm2999_vm1, %v3672_v37, -inf }
0x1115   : > { %3674 = vmax.xlane.f32.xlu1 %v3673_v34 }
0x1117   : > { %v3644_v57 = vpop.f32.mrf.mxu0 }
0x1119   : > { %v3670_v26 = vpop.f32.mrf.mxu1 }
0x111f   : > { %v3646_v49 = vpop.f32.mrf.mxu0 }
0x1127   : > { %v3748_v41 = vpop.f32.mrf.mxu0 }
0x1128   : > { %v3749_v30 = vadd.f32 %v5218_v42, %v3748_v41 }
0x112a   : > { %v3752_v20 = vpack.c.bf16 %v3749_v30, %v3749_v30 }
0x112c   : > { %4901 = vmatmul.msk.bf16.vlgmr.msra.gmra.mxu1 %vm2182_vm0, %v3752_v20 }
0x112d   : > { %3954 = vmatpush.bf16.msra.mxu1 %v6245_v24 }
0x112f   : > { %v3750_v31 = vpop.f32.mrf.mxu0 }
0x1188   : > { %v3675_v36 = vpop.xlane.xlu1 %3674 }
0x1189   : > { %v3676_v62 = vsub.f32 %v3672_v37, %v3675_v36 }
0x118b   : > { %v3677_v40 = vmul.f32 1.442695, %v3676_v62 }
0x118d   : > { %5277 = vpow2.f32 %v3677_v40 }
0x118f   : > { %v3587_v38 = vpop.f32.mrf.mxu2 }
0x1193   : > { %v5278_v52 = vpop.eup %5277 }
0x1194   : > { %v3679_v0 = vsel %vm2999_vm1, %v5278_v52, 0.0 }
0x1195   : > { %3680 = vadd.xlane.f32.xlu0 %v3679_v0  ;;  %v5061_v0 = vld [vmem:[%s6746_s5 + $0x10] sm:$0xff] }
0x1197   : > { %v3589_v23 = vpop.f32.mrf.mxu2 }
0x11a9   : > { %v3765_v32 = vpop.f32.mrf.mxu1 }
0x11aa   : > { %v3766_v46 = vadd.f32 %v5324_v35, %v3765_v32 }
0x11ac   : > { %v3769_v50 = vpack.c.bf16 %v3766_v46, %v3766_v46 }
0x11ae   : > { %v6425_v6 = vunpack.c.l.bf16 %v3769_v50 }
0x11b0   : > { %v3771_v45 = vmul.f32 %v6425_v6, %v6077_v3  ;;  %v3865_v55 = vmul.f32 %v6425_v6, %v6081_v5  ;;  %v3802_v60 = vmul.f32 %v6425_v6, %v6075_v2 }
0x11b1   : > { %v3767_v11 = vpop.f32.mrf.mxu1 }
0x11b2   : > { %v3772_v33 = vpack.c.bf16 %v3771_v45, %v3771_v45  ;;  %v3866_v53 = vpack.c.bf16 %v3865_v55, %v3865_v55  ;;  %v3803_v7 = vpack.c.bf16 %v3802_v60, %v3802_v60  ;;  %v3913_v45 = vmul.f32 %v6425_v6, %v6079_v4 }
0x1208   : > { %v3681_v39 = vpop.xlane.xlu0 %3680 }
0x1209   : > { %5279 = vrcp.f32 %v3681_v39 }
0x120f   : > { %v5280_v27 = vpop.eup %5279 }
0x1210   : > { %v3683_v24 = vmul.f32 %v5280_v27, %v5278_v52  ;;  %v5062_v52 = vld [vmem:[%s6746_s5 + $0x18] sm:$0xff] }
0x1212   : > { %v3684_v47 = vpack.c.bf16 %v3683_v24, %v3683_v24 }
0x1214   : > { %4890 = vmatmul.msk.bf16.vlgmr.msrb.gmra.mxu2 %vm2999_vm1, %v3684_v47 }
0x1215   : > { %3877 = vmatpush.bf16.xpose.msrb.mxu2 %v6254_v48  ;;  %v3588_v48 = vadd.f32 %v3587_v38, %v3568_v19 }
0x1217   : > { %v3648_v56 = vadd.f32 %v3644_v57, %v3588_v48 }
0x1224   : > { %4902 = vmatmul.msk.bf16.vlgmr.msra.gmra.mxu2 %vm2182_vm0, %v3772_v33  ;;  %v3914_v33 = vpack.c.bf16 %v3913_v45, %v3913_v45 }
0x1225   : > { %3971 = vmatpush.bf16.msra.mxu2 %v5325_v61 }
0x1229   : > { %3972 = vmatpush.bf16.msra.mxu2 %v5326_v54 }
0x1234   : > { %4906 = vmatmul.msk.bf16.vlgmr.msrb.gmra.mxu2 %vm2182_vm0, %v3866_v53 }
0x1297   : > { %v3702_v58 = vpop.f32.mrf.mxu2 }
0x1298   : > { %v3706_v43 = vadd.f32 %v3702_v58, %v3648_v56 }
0x129a   : > { %v3707_v59 = vpack.c.bf16 %v3706_v43, %v3706_v43 }
0x129c   : > { %4891 = vmatmul.msk.bf16.vlgmr.msra.gmra.mxu3 %vm2182_vm0, %v3707_v59 }
0x129d   : > { %3906 = vmatpush.bf16.msra.mxu3 %v6271_v13 }
0x129f   : > { %v3704_v3 = vpop.f32.mrf.mxu2 }
0x12a7   : > { %v3785_v15 = vpop.f32.mrf.mxu2 }
0x12a8   : > { %v3789_v1 = vmul.f32 0.35355338, %v3785_v15 }
0x12aa   : > { %v3790_v5 = vsel %vm2999_vm1, %v3789_v1, -inf }
0x12ab   : > { %3791 = vmax.xlane.f32.xlu0 %v3790_v5 }
0x12ac   : > { %4903 = vmatmul.msk.bf16.vlgmr.msrb.gmra.mxu3 %vm2182_vm0, %v3803_v7 }
0x12ad   : > { %4001 = vmatpush.bf16.msrb.mxu3 %v5062_v52 }
0x12af   : > { %v3787_v9 = vpop.f32.mrf.mxu2 }
0x12b1   : > { %4002 = vmatpush.bf16.msrb.mxu3 %v5061_v0 }
0x12b7   : > { %v3879_v44 = vpop.f32.mrf.mxu2 }
0x12b8   : > { %v3883_v21 = vmul.f32 0.35355338, %v3879_v44 }
0x12ba   : > { %v3884_v29 = vsel %vm2999_vm1, %v3883_v21, -inf }
0x12bf   : > { %v3881_v14 = vpop.f32.mrf.mxu2 }
0x131e   : > { %v3792_v51 = vpop.xlane.xlu0 %3791 }
0x131f   : > { %v3793_v17 = vsub.f32 %v3789_v1, %v3792_v51  ;;  %v3720_v25 = vpop.f32.mrf.mxu3 }
0x1320   : > { %v3721_v61 = vadd.f32 %v6293_v16, %v3720_v25 }
0x1321   : > { %v3794_v12 = vmul.f32 1.442695, %v3793_v17 }
0x1322   : > { %v3979_v54 = vpack.c.bf16 %v3721_v61, %v3721_v61 }
0x1323   : > { %5281 = vpow2.f32 %v3794_v12  ;;  %v5060_v12 = vld [vmem:[%s6746_s5 + $0x8] sm:$0xff] }
0x1327   : > { %v3722_v13 = vpop.f32.mrf.mxu3 }
0x1329   : > { %v5282_v63 = vpop.eup %5281 }
0x132a   : > { %v3796_v2 = vsel %vm2999_vm1, %v5282_v63, 0.0 }
0x132b   : > { %3797 = vadd.xlane.f32.xlu0 %v3796_v2 }
0x132f   : > { %v3816_v19 = vpop.f32.mrf.mxu3 }
0x1330   : > { %v3820_v8 = vmul.f32 0.35355338, %v3816_v19 }
0x1332   : > { %v3821_v18 = vsel %vm2999_vm1, %v3820_v8, -inf }
0x1333   : > { %3822 = vmax.xlane.f32.xlu1 %v3821_v18 }
0x1337   : > { %v3818_v22 = vpop.f32.mrf.mxu3 }
0x133b   : > { %3885 = vmax.xlane.f32.xlu1 %v3884_v29 }
0x139e   : > { %v3798_v37 = vpop.xlane.xlu0 %3797 }
0x139f   : > { %5283 = vrcp.f32 %v3798_v37  ;;  %v5050_v37 = vld [vmem:[%s6747_s3 + $0x8] sm:$0xff] }
0x13a5   : > { %v5284_v34 = vpop.eup %5283 }
0x13a6   : > { %v3800_v57 = vmul.f32 %v5284_v34, %v5282_v63  ;;  %v3823_v26 = vpop.xlane.xlu1 %3822  ;;  %v5048_v34 = vld [vmem:[%s6748_s6 + $0x8] sm:$0xff] }
0x13a7   : > { %v3824_v49 = vsub.f32 %v3820_v8, %v3823_v26  ;;  %v5059_v8 = vld [vmem:[%s6746_s5] sm:$0xff]  ;;  %4107 = vmatpush.bf16.msrb.mxu2 %v5048_v34  ;;  %s6753_s5 = sld [smem:[#allocation40_spill]] }
0x13a8   : > { %v3801_v42 = vpack.c.bf16 %v3800_v57, %v3800_v57  ;;  %v5052_v57 = vld [vmem:[%s6749_s7 + $0x8] sm:$0xff]  ;;  %v5049_v26 = vld [vmem:[%s6747_s3] sm:$0xff]  ;;  %s6759_s3 = sld [smem:[#allocation44_spill]] }
0x13a9   : > { %v3825_v41 = vmul.f32 1.442695, %v3824_v49  ;;  %v5047_v49 = vld [vmem:[%s6748_s6] sm:$0xff]  ;;  %s6760_s6 = sld [smem:[#allocation46_spill]] }
0x13aa   : > { %4905 = vmatmul.msk.bf16.vlgmr.msrb.gmra.mxu1 %vm2999_vm1, %v3801_v42  ;;  %v5051_v42 = vld [vmem:[%s6749_s7] sm:$0xff] }
0x13ab   : > { %5285 = vpow2.f32 %v3825_v41  ;;  %4062 = vmatpush.bf16.msrb.mxu1 %v5050_v37  ;;  %4108 = vmatpush.bf16.msrb.mxu2 %v5047_v49 }
0x13ae   : > { %v3886_v30 = vpop.xlane.xlu1 %3885 }
0x13af   : > { %v3887_v20 = vsub.f32 %v3883_v21, %v3886_v30  ;;  %4063 = vmatpush.bf16.msrb.mxu1 %v5049_v26 }
0x13b1   : > { %v5286_v31 = vpop.eup %5285  ;;  %v3888_v36 = vmul.f32 1.442695, %v3887_v20 }
0x13b2   : > { %v3827_v62 = vsel %vm2999_vm1, %v5286_v31, 0.0 }
0x13b3   : > { %5287 = vpow2.f32 %v3888_v36  ;;  %3828 = vadd.xlane.f32.xlu2 %v3827_v62  ;;  %v2099_v62 = vld [vmem:[%s6751_s12] sm:$0xff]  ;;  %s6755_s12 = sld [smem:[#allocation58_spill]] }
0x13b9   : > { %v5288_v40 = vpop.eup %5287  ;;  %v5068_v34 = vld [vmem:[%s6755_s12 + $0x8] sm:$0xff] }
0x13ba   : > { %v3890_v38 = vsel %vm2999_vm1, %v5288_v40, 0.0 }
0x13bb   : > { %3891 = vadd.xlane.f32.xlu1 %v3890_v38 }
0x1426   : > { %v3829_v23 = vpop.xlane.xlu2 %3828 }
0x1427   : > { %5289 = vrcp.f32 %v3829_v23  ;;  %v3861_v32 = vpop.f32.mrf.mxu1  ;;  %v2098_v23 = vld [vmem:[%s6753_s5] sm:$0xff]  ;;  %s6757_s5 = sld [smem:[#allocation57_spill]] }
0x142d   : > { %v5290_v11 = vpop.eup %5289 }
0x142e   : > { %v3831_v39 = vmul.f32 %v5290_v11, %v5286_v31  ;;  %v3892_v27 = vpop.xlane.xlu1 %3891 }
0x142f   : > { %5291 = vrcp.f32 %v3892_v27  ;;  %v3863_v24 = vpop.f32.mrf.mxu1 }
0x1430   : > { %v3832_v35 = vpack.c.bf16 %v3831_v39, %v3831_v39 }
0x1432   : > { %4904 = vmatmul.msk.bf16.vlgmr.msrb.gmra.mxu0 %vm2999_vm1, %v3832_v35 }
0x1433   : > { %4029 = vmatpush.bf16.msrb.mxu0 %v5060_v12 }
0x1435   : > { %v5292_v46 = vpop.eup %5291 }
0x1436   : > { %v3894_v47 = vmul.f32 %v5292_v46, %v5288_v40  ;;  %v2101_v40 = vld [vmem:[%s6752_s17] sm:$0xff]  ;;  %s6756_s17 = sld [smem:[#allocation59_spill]] }
0x1437   : > { %4030 = vmatpush.bf16.msrb.mxu0 %v5059_v8 }
0x1438   : > { %v3895_v50 = vpack.c.bf16 %v3894_v47, %v3894_v47 }
0x143a   : > { %4907 = vmatmul.msk.bf16.vlgmr.msra.gmra.mxu3 %vm2999_vm1, %v3895_v50 }
0x143b   : > { %4152 = vmatpush.bf16.msra.mxu3 %v5052_v57 }
0x143c   : > { %v5072_v57 = vld [vmem:[%s6756_s17 + $0x18] sm:$0xff]  ;;  %v5071_v26 = vld [vmem:[%s6756_s17 + $0x10] sm:$0xff] }
0x143f   : > { %4153 = vmatpush.bf16.msra.mxu3 %v5051_v42 }
0x1442   : > { %4908 = vmatmul.msk.bf16.vlgmr.msra.gmra.mxu0 %vm2182_vm0, %v3914_v33 }
0x1443   : > { %4211 = vmatpush.bf16.msra.mxu0 %v5068_v34 }
0x144a   : > { %4919 = vmatmul.msk.bf16.vlgmr.msrb.gmra.mxu3 %vm2182_vm0, %v3979_v54 }
0x14af   : > { %v3845_v55 = vpop.f32.mrf.mxu0 }
0x14b0   : > { %v3862_v48 = vadd.f32 %v3861_v32, %v3845_v55 }
0x14b7   : > { %v3847_v53 = vpop.f32.mrf.mxu0 }
0x14bd   : > { %v3908_v56 = vpop.f32.mrf.mxu3 }
0x14be   : > { %v3912_v58 = vadd.f32 %v3908_v56, %v3862_v48 }
0x14bf   : > { %v3927_v43 = vpop.f32.mrf.mxu0 }
0x14c0   : > { %v3931_v59 = vmul.f32 0.35355338, %v3927_v43 }
0x14c2   : > { %v3932_v3 = vsel %vm2999_vm1, %v3931_v59, -inf }
0x14c3   : > { %3933 = vmax.xlane.f32.xlu2 %v3932_v3 }
0x14c5   : > { %v3910_v60 = vpop.f32.mrf.mxu3 }
0x14c7   : > { %v3929_v4 = vpop.f32.mrf.mxu0 }
0x14cd   : > { %v4004_v6 = vpop.f32.mrf.mxu3 }
0x14d5   : > { %v4006_v15 = vpop.f32.mrf.mxu3 }
0x1536   : > { %v3934_v1 = vpop.xlane.xlu2 %3933 }
0x1537   : > { %v3935_v7 = vsub.f32 %v3931_v59, %v3934_v1 }
0x1539   : > { %v3936_v5 = vmul.f32 1.442695, %v3935_v7 }
0x153b   : > { %5293 = vpow2.f32 %v3936_v5 }
0x1541   : > { %v5294_v9 = vpop.eup %5293 }
0x1542   : > { %v3938_v44 = vsel %vm2999_vm1, %v5294_v9, 0.0 }
0x1543   : > { %3939 = vadd.xlane.f32.xlu2 %v3938_v44 }
0x15b6   : > { %v3940_v14 = vpop.xlane.xlu2 %3939 }
0x15b7   : > { %5295 = vrcp.f32 %v3940_v14 }
0x15bd   : > { %v5296_v51 = vpop.eup %5295 }
0x15be   : > { %v3942_v17 = vmul.f32 %v5296_v51, %v5294_v9 }
0x15c0   : > { %v3943_v25 = vpack.c.bf16 %v3942_v17, %v3942_v17 }
0x15c2   : > { %4909 = vmatmul.msk.bf16.vlgmr.msra.gmra.mxu1 %vm2999_vm1, %v3943_v25 }
0x15c3   : > { %4251 = vmatpush.bf16.msra.mxu1 %v5072_v57 }
0x15c7   : > { %4252 = vmatpush.bf16.msra.mxu1 %v5071_v26 }
0x163f   : > { %v3956_v13 = vpop.f32.mrf.mxu1 }
0x1640   : > { %v3960_v63 = vadd.f32 %v3956_v13, %v3912_v58 }
0x1642   : > { %v3961_v2 = vpack.c.bf16 %v3960_v63, %v3960_v63 }
0x1644   : > { %4910 = vmatmul.msk.bf16.vlgmr.msra.gmra.mxu2 %vm2182_vm0, %v3961_v2 }
0x1647   : > { %v3958_v19 = vpop.f32.mrf.mxu1 }
0x16c7   : > { %v3974_v18 = vpop.f32.mrf.mxu2 }
0x16c8   : > { %v3975_v21 = vadd.f32 %v6293_v16, %v3974_v18  ;;  %v5219_v16 = vld [vmem:[%s6750_s8] ss:$0 sm:$0xff]  ;;  %s6754_s8 = sld [smem:[#allocation42_spill]] }
0x16ca   : > { %v3978_v22 = vpack.c.bf16 %v3975_v21, %v3975_v21 }
0x16cc   : > { %4928 = vmatmul.msk.bf16.vlgmr.msrb.gmra.mxu0 %vm2182_vm0, %v3978_v22 }
0x16ce   : > { %v2100_v56 = vld [vmem:[%s6754_s8] sm:$0xff]  ;;  %s6758_s8 = sld [smem:[#allocation45_spill]] }
0x16cf   : > { %v3976_v29 = vpop.f32.mrf.mxu2 }
0x1749   : > { %v4032_v41 = vpop.f32.mrf.mxu0 }
0x174a   : > { %v4033_v30 = vadd.f32 %v4032_v41, %v4004_v6  ;;  %v5070_v41 = vld [vmem:[%s6756_s17 + $0x8] sm:$0xff] }
0x174b   : > { %4253 = vmatpush.bf16.msra.mxu1 %v5070_v41 }
0x174c   : > { %v4039_v20 = vadd.f32 %v5219_v16, %v4033_v30 }
0x174e   : > { %v4040_v31 = vpack.c.bf16 %v4039_v20, %v4039_v20 }
0x1750   : > { %4937 = vmatmul.msk.bf16.vlgmr.msrb.gmra.mxu1 %vm2182_vm0, %v4040_v31  ;;  %4947 = vmatmul.msk.bf16.vlgmr.msrb.gmra.mxu2 %vm2182_vm0, %v4040_v31 }
0x1751   : > { %4957 = vmatmul.msk.bf16.vlgmr.msra.gmra.mxu3 %vm2182_vm0, %v4040_v31  ;;  %v4034_v36 = vpop.f32.mrf.mxu0 }
0x17cd   : > { %v4065_v38 = vpop.f32.mrf.mxu1 }
0x17ce   : > { %v4066_v52 = vadd.f32 %v4065_v38, %v2099_v62  ;;  %v5220_v38 = vld [vmem:[%s6757_s5] ss:$0 sm:$0xff]  ;;  %s6506_s5 = sshll.u32 %s5917_s0, 3 }
0x17d0   : > { %v4069_v0 = vsub.f32 %v4066_v52, %v2101_v40 }
0x17d2   : > { %v4938_v32 = vmul.f32 -1.442695, %v4069_v0 }
0x17d3   : > { %v4110_v11 = vpop.f32.mrf.mxu2 }
0x17d4   : > { %5297 = vpow2.f32 %v4938_v32  ;;  %v4111_v39 = vadd.f32 %v4110_v11, %v2098_v23  ;;  %v4155_v27 = vpop.f32.mrf.mxu3  ;;  %v5069_v32 = vld [vmem:[%s6756_s17] sm:$0xff]  ;;  %v5056_v11 = vld [vmem:[%s6758_s8 + $0x8] sm:$0xff] }
0x17d5   : > { %v4067_v24 = vpop.f32.mrf.mxu1  ;;  %v4156_v59 = vadd.f32 %v4155_v27, %v2100_v56  ;;  %4254 = vmatpush.bf16.msra.mxu1 %v5069_v32  ;;  %v5058_v27 = vld [vmem:[%s6760_s6 + $0x8] sm:$0xff]  ;;  %4282 = vmatpush.bf16.msra.mxu2 %v5056_v11 }
0x17d6   : > { %v4114_v35 = vadd.f32 %v4111_v39, %v2101_v40  ;;  %v5054_v39 = vld [vmem:[%s6759_s3 + $0x8] sm:$0xff] }
0x17d7   : > { %4327 = vmatpush.bf16.msrb.mxu3 %v5054_v39 }
0x17d8   : > { %v4948_v46 = vmul.f32 -1.442695, %v4114_v35 }
0x17da   : > { %v5298_v47 = vpop.eup %5297  ;;  %5299 = vpow2.f32 %v4948_v46 }
0x17db   : > { %v4073_v50 = vadd.f32 1.0, %v5298_v47  ;;  %v4112_v45 = vpop.f32.mrf.mxu2 }
0x17dc   : > { %v4157_v33 = vpop.f32.mrf.mxu3  ;;  %v5053_v45 = vld [vmem:[%s6759_s3] sm:$0xff]  ;;  %s4410_s3 = scalar_lea.hbm %s6701_s9, %s6506_s5 }
0x17dd   : > { %5301 = vrcp.f32 %v4073_v50  ;;  %v4085_v4 = vand.u32 2147483648, %v4073_v50  ;;  %vm4079_vm7 = vweird.f32 %v4073_v50  ;;  %v4083_v15 = vand.u32 2147483647, %v4073_v50  ;;  %v5057_v33 = vld [vmem:[%s6760_s6] sm:$0xff]  ;;  %4328 = vmatpush.bf16.msrb.mxu3 %v5053_v45  ;;  %s6761_s6 = scalar_lea.vmem [#allocation2], %s6020_s1 }
0x17de   : > { %s4412_s7 = sshll.u32 %s6761_s6, 4  ;;  %s4413_s7 = int_to_ptr.vmem [resolvable:$true] %s4412_s7 }
0x17df   : > { %v4086_v44 = vor.u32 1.1754944e-38, %v4085_v4  ;;  %vm4084_vm10 = vcmp.eq.f32.partialorder %v4083_v15, 8.507059e+37 }
0x17e0   : > { %v5300_v61 = vpop.eup %5299 }
0x17e1   : > { %v4118_v54 = vadd.f32 1.0, %v5300_v61 }
0x17e3   : > { %v5302_v55 = vpop.eup %5301  ;;  %5303 = vrcp.f32 %v4118_v54  ;;  %v4130_v1 = vand.u32 2147483648, %v4118_v54  ;;  %v4128_v9 = vand.u32 2147483647, %v4118_v54  ;;  %vm4124_vm11 = vweird.f32 %v4118_v54 }
0x17e4   : > { %v4075_v53 = vmul.f32 %v5302_v55, %v4073_v50  ;;  %vm4080_vm6 = vweird.f32 %v5302_v55  ;;  %5305 = vtanh.f32 %v4156_v59  ;;  %v5055_v50 = vld [vmem:[%s6758_s8] sm:$0xff]  ;;  %s4414_s8 = sshll.u32 %s4410_s3, 4  ;;  %s4415_s8 = int_to_ptr.hbm [resolvable:$true] %s4414_s8 }
0x17e5   : > { %vm4081_vm8 = vmor %vm4079_vm7, %vm4080_vm6  ;;  %v4131_v17 = vor.u32 1.1754944e-38, %v4130_v1  ;;  %vm4129_vm13 = vcmp.eq.f32.partialorder %v4128_v9, 8.507059e+37  ;;  %4283 = vmatpush.bf16.msra.mxu2 %v5055_v50  ;;  %s5341_s17 = sshra.s32 %s4415_s8, 4  ;;  %s5342_s17 = int_to_ptr.hbm [resolvable:$true] %s5341_s17 }
0x17e6   : > { %v4076_v48 = vsub.f32 1.0, %v4075_v53  ;;  %s5343_s18 = scalar_lea.hbm %s5342_s17, 8  ;;  %p5348_p0 = scmp.lt.s32.totalorder %s5342_s17, %s6701_s9 }
0x17e7   : > { %p5344_p11 = scmp.ne.s32.totalorder %s5342_s17, %s5343_s18  ;;  %p5349_p1 = scmp.lt.s32.totalorder %s5347_s19, %s5343_s18 }
0x17e8   : > { %v4077_v58 = vmul.f32 %v5302_v55, %v4076_v48 }
0x17e9   : > { %v5304_v43 = vpop.eup %5303  ;;  %p5345_p12 = pnand %p5344_p11, %p5936_p5  ;;  %p5350_p2 = por %p5349_p1, %p5348_p0 }
0x17ea   : > { %v4120_v3 = vmul.f32 %v5304_v43, %v4118_v54  ;;  %v4078_v60 = vadd.f32 %v5302_v55, %v4077_v58  ;;  %vm4125_vm9 = vweird.f32 %v5304_v43  ;;  %v5306_v12 = vpop.eup %5305 }
0x17eb   : > { %vm4126_vm12 = vmor %vm4124_vm11, %vm4125_vm9  ;;  %p5346_p13 = pneg %p5345_p12 }
0x17ec   : > { %v4121_v6 = vsub.f32 1.0, %v4120_v3  ;;  %v4082_v7 = vsel %vm4081_vm8, %v5302_v55, %v4078_v60 }
0x17ed   : > { %v4087_v51 = vsel %vm4084_vm10, %v4086_v44, %v4082_v7  ;;  %p5351_p3 = pnand %p5350_p2, %p5346_p13 }
0x17ee   : > { %v4122_v5 = vmul.f32 %v5304_v43, %v4121_v6  ;;  %v4161_v2 = vmul.f32 %v5306_v12, %v4087_v51 }
0x17f0   : > { %v4123_v14 = vadd.f32 %v5304_v43, %v4122_v5 }
0x17f2   : > { %v4127_v25 = vsel %vm4126_vm12, %v5304_v43, %v4123_v14 }
0x17f3   : > { %v4132_v13 = vsel %vm4129_vm13, %v4131_v17, %v4127_v25 }
0x17f4   : > { %v4160_v63 = vmul.f32 %v6364_v28, %v4132_v13  ;;  %v5067_v28 = vld [vmem:[%s6755_s12] sm:$0xff]  ;;  %s4385_s12 = scalar_lea.sflag [#allocation3], %s6016_s10 }
0x17f5   : > { %4212 = vmatpush.bf16.msra.mxu0 %v5067_v28 }
0x17f6   : > { %v6479_v19 = vadd.f32 %v4161_v2, %v4160_v63 }
0x17f8   : > { %v4163_v8 = vsel %vm2182_vm0, %v6479_v19, 0.0 }
0x17f9   : > { %4164 = vadd.xlane.f32.xlu0 %v4163_v8  ;;  %4372 = vmatpush.bf16.msrb.mxu0 %v5058_v27 }
0x17fd   : > { %4373 = vmatpush.bf16.msrb.mxu0 %v5057_v33 }
0x186c   : > { %v4165_v18 = vpop.xlane.xlu0 %4164 }
0x186d   : > { %v4166_v21 = vmul.f32 %v4165_v18, %v5955_v10 }
0x186f   : > { %v4167_v22 = vsub.f32 %v6479_v19, %v4166_v21 }
0x1871   : > { %v4168_v29 = vmul.f32 %v4167_v22, %v4167_v22 }
0x1873   : > { %v4169_v37 = vsel %vm2182_vm0, %v4168_v29, 0.0 }
0x1874   : > { %4170 = vadd.xlane.f32.xlu1 %v4169_v37 }
0x18e7   : > { %v4171_v49 = vpop.xlane.xlu1 %4170 }
0x18e8   : > { %v4172_v42 = vmul.f32 %v4171_v49, %v5955_v10 }
0x18ea   : > { %v4173_v16 = vadd.f32 1e-05, %v4172_v42 }
0x18ec   : > { %5307 = vrsqrt.f32 %v4173_v16  ;;  %vm4180_vm15 = vweird.f32 %v4173_v16 }
0x18f2   : > { %v5308_v30 = vpop.eup %5307 }
0x18f3   : > { %v4175_v20 = vmul.f32 %v5308_v30, %v4173_v16  ;;  %vm4181_vm14 = vweird.f32 %v5308_v30 }
0x18f4   : > { %vm4182_vm1 = vmor %vm4180_vm15, %vm4181_vm14 }
0x18f5   : > { %v4176_v31 = vmul.f32 %v5308_v30, %v4175_v20 }
0x18f7   : > { %v4177_v36 = vmul.f32 0.5, %v4176_v31 }
0x18f9   : > { %v4178_v62 = vsub.f32 1.5, %v4177_v36 }
0x18fb   : > { %v4179_v40 = vmul.f32 %v5308_v30, %v4178_v62 }
0x18fd   : > { %v4183_v10 = vsel %vm4182_vm1, %v5308_v30, %v4179_v40 }
0x18fe   : > { %v4184_v52 = vmul.f32 %v4183_v10, %v4167_v22 }
0x1900   : > { %v4188_v0 = vmul.f32 %v5220_v38, %v4184_v52 }
0x1902   : > { %v4189_v23 = vpack.c.bf16 %v4188_v0, %v4188_v0 }
0x1904   : > { %4966 = vmatmul.msk.bf16.vlgmr.msra.gmra.mxu0 %vm2182_vm0, %v4189_v23 }
0x1981   : > { %v4214_v24 = vpop.f32.mrf.mxu0 }
0x1982   : > { %v4218_v35 = vmax.f32 %v4214_v24, 0.0 }
0x1984   : > { %v4219_v46 = vpack.c.bf16 %v4218_v35, %v4218_v35 }
0x1986   : > { %4983 = vmatmul.msk.bf16.vlgmr.msra.gmra.mxu1 %vm3369_vm5, %v4219_v46 }
0x1989   : > { %v4216_v47 = vpop.f32.mrf.mxu0 }
0x1a03   : > { %v4256_v61 = vpop.f32.mrf.mxu1 }
0x1a04   : > { %v4260_v54 = vpack.c.bf16 %v4256_v61, %v4256_v61 }
0x1a06   : > { %4992 = vmatmul.msk.bf16.vlgmr.msra.gmra.mxu2 %vm2182_vm0, %v4260_v54  ;;  %5002 = vmatmul.msk.bf16.vlgmr.msrb.gmra.mxu3 %vm2182_vm0, %v4260_v54 }
0x1a07   : > { %5012 = vmatmul.msk.bf16.vlgmr.msrb.gmra.mxu0 %vm2182_vm0, %v4260_v54 }
0x1a0b   : > { %v4258_v55 = vpop.f32.mrf.mxu1 }
0x1a0c   : > { %5354 = shalt.err (!%p5351_p3)
}
0x1a0d   : > { %5079 = dma.vmem_to_hbm [thread:$0]  (%p5936_p5), %s4413_s7, 128, %s4415_s8, %s4385_s12  }
0x1a0e   : > { %s4452_s6 = scalar_lea.hbm %s5894_s4, %s6506_s5  ;;  %s6762_s3 = scalar_lea.vmem [#allocation7], %s6020_s1 }
0x1a0f   : > { %s4454_s20 = sshll.u32 %s6762_s3, 4  ;;  %s4456_s21 = sshll.u32 %s4452_s6, 4  ;;  %s4455_s20 = int_to_ptr.vmem [resolvable:$true] %s4454_s20  ;;  %s4457_s21 = int_to_ptr.hbm [resolvable:$true] %s4456_s21 }
0x1a10   : > { %s4400_s18 = scalar_lea.sflag [#allocation8], %s6016_s10  ;;  %s5369_s19 = sshra.s32 %s4457_s21, 4  ;;  %s5370_s19 = int_to_ptr.hbm [resolvable:$true] %s5369_s19 }
0x1a11   : > { %s5371_s17 = scalar_lea.hbm %s5370_s19, 8  ;;  %s5375_s9 = scalar_lea.hbm %s5894_s4, 16 }
0x1a12   : > { %p5372_p4 = scmp.ne.s32.totalorder %s5370_s19, %s5371_s17  ;;  %p5376_p9 = scmp.lt.s32.totalorder %s5370_s19, %s5894_s4 }
0x1a13   : > { %p5377_p10 = scmp.lt.s32.totalorder %s5375_s9, %s5371_s17 }
0x1a14   : > { %p5373_p7 = pnand %p5372_p4, %p5936_p5 }
0x1a15   : > { %p5378_p11 = por %p5377_p10, %p5376_p9 }
0x1a16   : > { %p5374_p8 = pneg %p5373_p7 }
0x1a18   : > { %p5379_p12 = pnand %p5378_p11, %p5374_p8 }
0x1a1a   : > { %5382 = shalt.err (!%p5379_p12)
}
0x1a1b   : > { %s6763_s7 = sld [smem:[#allocation48_spill]]  ;;  %s4424_s9 = scalar_lea.hbm %s5884_s14, %s6506_s5 }
0x1a1c   : > { %s6764_s12 = sld [smem:[#allocation47_spill]]  ;;  %s1997_s6 = scalar_lea.vmem [#allocation4], %s6020_s1 }
0x1a1d   : > { %s6765_s8 = sld [smem:[#allocation50_spill]]  ;;  %s4426_s3 = sshll.u32 %s1997_s6, 4  ;;  %s4427_s3 = int_to_ptr.vmem [resolvable:$true] %s4426_s3 }
0x1a1e   : > { %5082 = dma.vmem_to_hbm [thread:$0]  (%p5936_p5), %s4455_s20, 128, %s4457_s21, %s4400_s18  }
0x1a1f   : > { %s6766_s10 = sld [smem:[#allocation49_spill]]  ;;  %s4438_s20 = scalar_lea.hbm %s5889_s13, %s6506_s5 }
0x1a20   : > { %s4389_s21 = sand.u32 1, %s5917_s0   ;;  %s4428_s18 = sshll.u32 %s4424_s9, 4  ;;  %s4429_s18 = int_to_ptr.hbm [resolvable:$true] %s4428_s18 }
0x1a21   : > { %v2115_v48 = vld [vmem:[%s6763_s7] sm:$0xff]  ;;  %s6767_s19 = scalar_lea.vmem [#allocation6], %s6020_s1  ;;  %s6545_s5 = sshll.u32 %s4438_s20, 4  ;;  %s4443_s5 = int_to_ptr.hbm [resolvable:$true] %s6545_s5 }
0x1a22   : > { %v2114_v56 = vld [vmem:[%s6764_s12] sm:$0xff]  ;;  %s6543_s17 = sshll.u32 %s6767_s19, 4  ;;  %s4390_s0 = scalar_lea.sflag [#allocation5], %s4389_s21  ;;  %s4441_s17 = int_to_ptr.vmem [resolvable:$true] %s6543_s17 }
0x1a23   : > { %v2117_v58 = vld [vmem:[%s6765_s8] sm:$0xff]  ;;  %s5397_s7 = sshra.s32 %s4429_s18, 4  ;;  %s5403_s1 = scalar_lea.hbm %s5884_s14, 16  ;;  %s5398_s7 = int_to_ptr.hbm [resolvable:$true] %s5397_s7 }
0x1a24   : > { %s5399_s12 = scalar_lea.hbm %s5398_s7, 8  ;;  %p5404_p2 = scmp.lt.s32.totalorder %s5398_s7, %s5884_s14 }
0x1a25   : > { %v2116_v25 = vld [vmem:[%s6766_s10] sm:$0xff]  ;;  %p5400_p13 = scmp.ne.s32.totalorder %s5398_s7, %s5399_s12  ;;  %p5405_p3 = scmp.lt.s32.totalorder %s5403_s1, %s5399_s12 }
0x1a27   : > { %p5401_p0 = pnand %p5400_p13, %p5936_p5  ;;  %p5406_p4 = por %p5405_p3, %p5404_p2 }
0x1a29   : > { %p5402_p1 = pneg %p5401_p0 }
0x1a2b   : > { %p5407_p7 = pnand %p5406_p4, %p5402_p1 }
0x1a84   : > { %v4375_v53 = vpop.f32.mrf.mxu0 }
0x1a85   : > { %v4376_v13 = vadd.f32 %v4375_v53, %v2116_v25 }
0x1a89   : > { %v4285_v43 = vpop.f32.mrf.mxu2  ;;  %v4330_v59 = vpop.f32.mrf.mxu3 }
0x1a8a   : > { %v4286_v3 = vadd.f32 %v4285_v43, %v2115_v48  ;;  %v4331_v60 = vadd.f32 %v4330_v59, %v2114_v56 }
0x1a8c   : > { %v4289_v4 = vsub.f32 %v4286_v3, %v2117_v58  ;;  %v4334_v6 = vadd.f32 %v4331_v60, %v2117_v58  ;;  %v4377_v15 = vpop.f32.mrf.mxu0 }
0x1a8e   : > { %v4993_v1 = vmul.f32 -1.442695, %v4289_v4  ;;  %v5003_v7 = vmul.f32 -1.442695, %v4334_v6 }
0x1a90   : > { %5309 = vpow2.f32 %v4993_v1 }
0x1a91   : > { %5311 = vpow2.f32 %v5003_v7  ;;  %v4287_v5 = vpop.f32.mrf.mxu2  ;;  %v4332_v9 = vpop.f32.mrf.mxu3 }
0x1a96   : > { %v5310_v44 = vpop.eup %5309 }
0x1a97   : > { %v5312_v14 = vpop.eup %5311  ;;  %v4293_v51 = vadd.f32 1.0, %v5310_v44 }
0x1a98   : > { %v4338_v17 = vadd.f32 1.0, %v5312_v14 }
0x1a99   : > { %5313 = vrcp.f32 %v4293_v51  ;;  %v4305_v22 = vand.u32 2147483648, %v4293_v51  ;;  %v4303_v37 = vand.u32 2147483647, %v4293_v51  ;;  %vm4299_vm4 = vweird.f32 %v4293_v51 }
0x1a9a   : > { %5315 = vrcp.f32 %v4338_v17  ;;  %v4350_v34 = vand.u32 2147483648, %v4338_v17  ;;  %v4348_v57 = vand.u32 2147483647, %v4338_v17  ;;  %vm4344_vm6 = vweird.f32 %v4338_v17 }
0x1a9b   : > { %5317 = vtanh.f32 %v4376_v13  ;;  %v4306_v49 = vor.u32 1.1754944e-38, %v4305_v22  ;;  %vm4304_vm7 = vcmp.eq.f32.partialorder %v4303_v37, 8.507059e+37 }
0x1a9c   : > { %v4351_v41 = vor.u32 1.1754944e-38, %v4350_v34  ;;  %vm4349_vm9 = vcmp.eq.f32.partialorder %v4348_v57, 8.507059e+37 }
0x1a9f   : > { %v5314_v12 = vpop.eup %5313 }
0x1aa0   : > { %v5316_v63 = vpop.eup %5315  ;;  %v4295_v2 = vmul.f32 %v5314_v12, %v4293_v51  ;;  %vm4300_vm2 = vweird.f32 %v5314_v12 }
0x1aa1   : > { %v4340_v8 = vmul.f32 %v5316_v63, %v4338_v17  ;;  %vm4345_vm3 = vweird.f32 %v5316_v63  ;;  %vm4301_vm5 = vmor %vm4299_vm4, %vm4300_vm2  ;;  %v5318_v30 = vpop.eup %5317 }
0x1aa2   : > { %v4296_v18 = vsub.f32 1.0, %v4295_v2  ;;  %vm4346_vm8 = vmor %vm4344_vm6, %vm4345_vm3 }
0x1aa3   : > { %v4341_v21 = vsub.f32 1.0, %v4340_v8 }
0x1aa4   : > { %v4297_v29 = vmul.f32 %v5314_v12, %v4296_v18 }
0x1aa5   : > { %v4342_v28 = vmul.f32 %v5316_v63, %v4341_v21 }
0x1aa6   : > { %v4298_v26 = vadd.f32 %v5314_v12, %v4297_v29 }
0x1aa7   : > { %v4343_v42 = vadd.f32 %v5316_v63, %v4342_v28 }
0x1aa8   : > { %v4302_v16 = vsel %vm4301_vm5, %v5314_v12, %v4298_v26 }
0x1aa9   : > { %v4307_v20 = vsel %vm4304_vm7, %v4306_v49, %v4302_v16  ;;  %v4347_v31 = vsel %vm4346_vm8, %v5316_v63, %v4343_v42 }
0x1aaa   : > { %v4352_v36 = vsel %vm4349_vm9, %v4351_v41, %v4347_v31  ;;  %v4381_v62 = vmul.f32 %v5318_v30, %v4307_v20 }
0x1aab   : > { %v4380_v40 = vmul.f32 %v4352_v36, %v6479_v19 }
0x1aad   : > { %v4382_v38 = vadd.f32 %v4381_v62, %v4380_v40 }
0x1aaf   : > { %4383 = vst.msk [vmem:[%s1997_s6] sm:$0xff] %vm2182_vm0, %v4382_v38 }
0x1ab0   : > { %5410 = shalt.err (!%p5407_p7)
}
0x1ab1   : > { %5080 = dma.vmem_to_hbm [thread:$0]  (%p5936_p5), %s4427_s3, 128, %s4429_s18, %s4390_s0  }
0x1ab2   : > { %s5425_s8 = sshra.s32 %s4443_s5, 4  ;;  %s5431_s9 = scalar_lea.hbm %s5889_s13, 16  ;;  %s5426_s8 = int_to_ptr.hbm [resolvable:$true] %s5425_s8 }
0x1ab3   : > { %s5427_s10 = scalar_lea.hbm %s5426_s8, 8  ;;  %p5432_p11 = scmp.lt.s32.totalorder %s5426_s8, %s5889_s13 }
0x1ab4   : > { %p5428_p8 = scmp.ne.s32.totalorder %s5426_s8, %s5427_s10  ;;  %p5433_p12 = scmp.lt.s32.totalorder %s5431_s9, %s5427_s10 }
0x1ab6   : > { %p5429_p9 = pnand %p5428_p8, %p5936_p5  ;;  %p5434_p13 = por %p5433_p12, %p5432_p11 }
0x1ab8   : > { %p5430_p10 = pneg %p5429_p9 }
0x1aba   : > { %p5435_p0 = pnand %p5434_p13, %p5430_p10 }
0x1abc   : > { %5438 = shalt.err (!%p5435_p0)
}
0x1abd   : > { %5081 = dma.vmem_to_hbm [thread:$0]  (%p5936_p5), %s4441_s17, 128, %s4443_s5, %s4390_s0  }
0x1abe PF: > { %p5100_p1 = scmp.ge.s32.totalorder %s5481_s28, 2  ;;  %s4468_s20 = sand.u32 1, %s5469_s22  }
0x1abf   : > { %s4469_s21 = scalar_lea.sflag [#allocation3], %s4468_s20 }
0x1ac0   : > { %p5088_p2 = pnand %p5100_p1, %p5940_p6 }
0x1ac2   : > { %p5089_p3 = pneg %p5088_p2 }
0x1ac4   : > { %5456 = dma.done.wait (%p5089_p3), %s4469_s21, 128  }
0x1ac5   : > { %5458 = vsyncadd (%p5089_p3), %s4469_s21, 4294967168  ;;  %s6768_s6 = sadd.s32 4294967294, %s5481_s28  }
0x1ac6   : > { %s4478_s15 = sand.u32 1, %s6768_s6  }
0x1ac7   : > { %s4479_s3 = scalar_lea.sflag [#allocation5], %s4478_s15 }
0x1ac8   : > { %5460 = dma.done.wait (%p5089_p3), %s4479_s3, 256  }
0x1ac9   : > { %5462 = vsyncadd (%p5089_p3), %s4479_s3, 4294967040  ;;  %s4499_s18 = scalar_lea.sflag [#allocation8], %s4468_s20 }
0x1aca   : > { %5464 = dma.done.wait (%p5089_p3), %s4499_s18, 128  }
0x1acb   : > { %5466 = vsyncadd (%p5089_p3), %s4499_s18, 4294967168  ;;  %p152_p5 = scmp.ge.s32.totalorder %s5921_s2, 4   ;;  %s6769_s22 = smov %s5473_s23 }
0x1acc   : > { %s6770_s23 = smov %s5477_s26  ;;  %s6771_s26 = smov %s5934_s11 }
0x1acd   : > { %s6772_s28 = smov %s5921_s2  ;;  %154 = sbr.rel (!%p152_p5) target bundleno = 146 (0x92), region = 433 }
0x1ad2   :  { %4505 = vsyncpa [#allocation3], 1 }
0x1ad3   :  { %4507 = vsyncpa [#allocation3 + $0x1], 1 }
0x1ad4   :  { %4508 = vsyncpa [#allocation5], 1 }
0x1ad5   :  { %4510 = vsyncpa [#allocation5 + $0x1], 1 }
0x1ad6   :  { %4511 = vsyncpa [#allocation8], 1 }
0x1ad7   :  { %4513 = vsyncpa [#allocation8 + $0x1], 1 }

</bundles_post_ra>
